<compile_context>
chip_gen: v6e
topology: v6e:2x2x1
jax: 0.10.0
libtpu: 0.0.40
codegen_flags: <defaults>
</compile_context>

<pallas_src>
import functools

import jax
import jax.numpy as jnp
from jax.experimental import pallas as pl
from jax.experimental.pallas import tpu as pltpu


def _mlp_kernel(x_ref, w1_ref, b1_ref, w2_ref, b2_ref, w3_ref, b3_ref,
                w4_ref, b4_ref, o_ref):
    # Transposed layout: features on sublanes, batch on lanes.
    x = x_ref[...].astype(jnp.bfloat16)                       # (8, tm)

    # ---- layer 1 on the MXU: (256, 8) @ (8, tm) ----------------------------
    h = jnp.dot(w1_ref[...], x, preferred_element_type=jnp.float32)
    h = jnp.maximum(h.astype(b1_ref.dtype) + b1_ref[...], 0.0).astype(jnp.bfloat16)

    # ---- layers 2 & 3: 256x256 bf16 matmuls, f32 accumulate ----------------
    h = jnp.dot(w2_ref[...], h, preferred_element_type=jnp.float32)
    h = jnp.maximum(h.astype(b2_ref.dtype) + b2_ref[...], 0.0).astype(jnp.bfloat16)
    h = jnp.dot(w3_ref[...], h, preferred_element_type=jnp.float32)
    h = jnp.maximum(h.astype(b3_ref.dtype) + b3_ref[...], 0.0).astype(jnp.bfloat16)

    # ---- layer 4: 3 real output rows padded to 8 sublanes, dense store -----
    out = jnp.dot(w4_ref[...], h, preferred_element_type=jnp.float32)  # (8, tm)
    o_ref[...] = (out + b4_ref[...]).astype(o_ref.dtype)


def _round_up(n, m):
    return (n + m - 1) // m * m


def _cdiv(a, b):
    return -(-a // b)


def _default_bf16_epilogue():
    # v5e's VPU has no native bf16 ALU -> keep bias/ReLU epilogues in f32 there.
    # v6e/v7x pack 2x bf16 per vreg, so bf16 epilogues halve VALU work.
    try:
        kind = jax.devices()[0].device_kind.lower()
    except Exception:
        return True
    return not ("v5 lite" in kind or "v5lite" in kind or "v5e" in kind)


@functools.partial(jax.jit, static_argnames=("tm", "bf16_epilogue"))
def _forward_impl(x, params, *, tm, bf16_epilogue):
    N, Din = x.shape
    assert Din == 3
    ep = jnp.bfloat16 if bf16_epilogue else jnp.float32

    # Balanced, padding-minimizing row tiling (granularity 256); at least two
    # grid steps whenever possible so v7x's two TensorCores both get work.
    tm_cap = _round_up(max(tm, 256), 256)
    num_tiles = max(2, _cdiv(N, tm_cap))
    tm_eff = min(_round_up(_cdiv(N, num_tiles), 256), tm_cap)
    n_pad = _round_up(N, tm_eff)
    grid = n_pad // tm_eff

    # Features on sublanes, batch on lanes: x^T zero-padded to 8 sublane rows.
    xt = jnp.zeros((8, n_pad), jnp.float32).at[:3, :N].set(x.T)

    # Weights transposed once at trace time; MXU operands in bf16.
    w1 = jnp.zeros((256, 8), jnp.bfloat16).at[:, :3].set(
        params["w1"].T.astype(jnp.bfloat16))
    b1 = params["b1"].reshape(256, 1).astype(ep)
    w2 = params["w2"].T.astype(jnp.bfloat16)
    b2 = params["b2"].reshape(256, 1).astype(ep)
    w3 = params["w3"].T.astype(jnp.bfloat16)
    b3 = params["b3"].reshape(256, 1).astype(ep)
    # 3 output channels zero-padded to 8 sublane rows for a dense store.
    w4 = jnp.zeros((8, 256), jnp.bfloat16).at[:3, :].set(
        params["w4"].T.astype(jnp.bfloat16))
    b4 = jnp.zeros((8, 1), jnp.float32).at[:3, :].set(
        params["b4"].reshape(3, 1).astype(jnp.float32))

    # Resident (constant index_map) weights/biases: single-buffered in VMEM.
    def resident(a):
        return pl.BlockSpec(a.shape, lambda i: (0, 0),
                            pipeline_mode=pl.Buffered(1))

    operands = (xt, w1, b1, w2, b2, w3, b3, w4, b4)
    flops = 2 * n_pad * (8 * 256 + 256 * 256 + 256 * 256 + 256 * 8)
    bytes_accessed = (xt.size * 4 + n_pad * 8 * 4
                      + sum(int(a.size) * a.dtype.itemsize for a in operands[1:]))

    out = pl.pallas_call(
        _mlp_kernel,
        out_shape=jax.ShapeDtypeStruct((8, n_pad), jnp.float32),
        grid_spec=pltpu.PrefetchScalarGridSpec(
            num_scalar_prefetch=0,
            grid=(grid,),
            in_specs=[
                pl.BlockSpec((8, tm_eff), lambda i: (0, i)),   # x^T column tile
                resident(w1), resident(b1),
                resident(w2), resident(b2),
                resident(w3), resident(b3),
                resident(w4), resident(b4),
            ],
            out_specs=pl.BlockSpec((8, tm_eff), lambda i: (0, i)),
        ),
        compiler_params=pltpu.CompilerParams(
            dimension_semantics=("parallel",)),
        cost_estimate=pl.CostEstimate(
            flops=flops, transcendentals=0, bytes_accessed=bytes_accessed),
    )(*operands)

    # 3 contiguous rows -> (N, 3); near-free compared to the old lane-padded slice.
    return out[:3, :N].T


def radiance_field_forward(x, params, *, tm=2048, bf16_epilogue=None):
    """x: (N, 3) float32.  params: dict of (in,out) f32 weights + (1,out) biases."""
    if bf16_epilogue is None:
        bf16_epilogue = _default_bf16_epilogue()
    return _forward_impl(x, params, tm=tm, bf16_epilogue=bool(bf16_epilogue))


def init_params(key):
    """Deterministic init matching nn.Linear default: U(-1/sqrt(fan_in), +)."""
    dims = [(3, 256), (256, 256), (256, 256), (256, 3)]
    params = {}
    for idx, (din, dout) in enumerate(dims, start=1):
        key, kw, kb = jax.random.split(key, 3)
        bound = 1.0 / jnp.sqrt(jnp.float32(din))
        # stored as (in, out): y = x @ W + b
        params[f"w{idx}"] = jax.random.uniform(
            kw, (din, dout), jnp.float32, -bound, bound)
        params[f"b{idx}"] = jax.random.uniform(
            kb, (1, dout), jnp.float32, -bound, bound)
    return params


def reference_forward(x, params):
    h = jnp.maximum(x @ params["w1"] + params["b1"], 0.0)
    h = jnp.maximum(h @ params["w2"] + params["b2"], 0.0)
    h = jnp.maximum(h @ params["w3"] + params["b3"], 0.0)
    return h @ params["w4"] + params["b4"]


if __name__ == "__main__":
    key = jax.random.PRNGKey(0)
    kp, kx = jax.random.split(key)

    params = init_params(kp)
    # batch of 3-D sample points; N is deliberately not a multiple of the tile
    # size so padding / multi-step grid paths are exercised.
    x = jax.random.normal(kx, (1000, 3), jnp.float32)

    y = radiance_field_forward(x, params)
    jax.block_until_ready(y)

    y_ref = reference_forward(x, params)
    assert y.shape == (1000, 3)
    # bf16 MXU operands with f32 accumulation -> small difference vs f32 ref
    err = float(jnp.max(jnp.abs(y - y_ref)))
    assert err < 5e-2, f"max abs err {err}"

    print("KERNEL_OK")
</pallas_src>

<mosaic_0001>
module attributes {stable_mosaic.version = 11 : i64} {
  func.func @_mlp_kernel(%arg0: i32, %arg1: memref<8x512xf32, #tpu.memory_space<vmem>>, %arg2: memref<256x8xbf16, #tpu.memory_space<vmem>>, %arg3: memref<256x1xbf16, #tpu.memory_space<vmem>>, %arg4: memref<256x256xbf16, #tpu.memory_space<vmem>>, %arg5: memref<256x1xbf16, #tpu.memory_space<vmem>>, %arg6: memref<256x256xbf16, #tpu.memory_space<vmem>>, %arg7: memref<256x1xbf16, #tpu.memory_space<vmem>>, %arg8: memref<8x256xbf16, #tpu.memory_space<vmem>>, %arg9: memref<8x1xf32, #tpu.memory_space<vmem>>, %arg10: memref<8x512xf32, #tpu.memory_space<vmem>>) attributes {dimension_semantics = [#tpu.dimension_semantics<parallel>], iteration_bounds = array<i64: 2>, scalar_prefetch = 0 : i64, scratch_operands = 0 : i64, tpu.core_type = #tpu.core_type<tc>, window_params = [{transform_indices = @transform_0, window_bounds = array<i64: 8, 512>}, {pipeline_mode = #tpu.pipeline_mode<synchronous>, transform_indices = @transform_1, window_bounds = array<i64: 256, 8>}, {pipeline_mode = #tpu.pipeline_mode<synchronous>, transform_indices = @transform_2, window_bounds = array<i64: 256, 1>}, {pipeline_mode = #tpu.pipeline_mode<synchronous>, transform_indices = @transform_3, window_bounds = array<i64: 256, 256>}, {pipeline_mode = #tpu.pipeline_mode<synchronous>, transform_indices = @transform_4, window_bounds = array<i64: 256, 1>}, {pipeline_mode = #tpu.pipeline_mode<synchronous>, transform_indices = @transform_5, window_bounds = array<i64: 256, 256>}, {pipeline_mode = #tpu.pipeline_mode<synchronous>, transform_indices = @transform_6, window_bounds = array<i64: 256, 1>}, {pipeline_mode = #tpu.pipeline_mode<synchronous>, transform_indices = @transform_7, window_bounds = array<i64: 8, 256>}, {pipeline_mode = #tpu.pipeline_mode<synchronous>, transform_indices = @transform_8, window_bounds = array<i64: 8, 1>}, {transform_indices = @transform_9, window_bounds = array<i64: 8, 512>}]} {
    %c0 = arith.constant 0 : index
    %c0_0 = arith.constant 0 : index
    %0 = vector.load %arg1[%c0, %c0_0] : memref<8x512xf32, #tpu.memory_space<vmem>>, vector<8x512xf32>
    %1 = arith.truncf %0 : vector<8x512xf32> to vector<8x512xbf16>
    %c0_1 = arith.constant 0 : index
    %c0_2 = arith.constant 0 : index
    %2 = vector.load %arg2[%c0_1, %c0_2] : memref<256x8xbf16, #tpu.memory_space<vmem>>, vector<256x8xbf16>
    %cst = arith.constant dense<0.000000e+00> : vector<256x512xf32>
    %3 = tpu.matmul %2, %1, %cst {dimension_numbers = #tpu.dot_dimension_numbers<[1], [0], [0], [1], [0, 0, 1, 1], [], []>} : vector<256x8xbf16>, vector<8x512xbf16>, vector<256x512xf32> -> vector<256x512xf32>
    %4 = arith.truncf %3 : vector<256x512xf32> to vector<256x512xbf16>
    %c0_3 = arith.constant 0 : index
    %c0_4 = arith.constant 0 : index
    %5 = vector.load %arg3[%c0_3, %c0_4] : memref<256x1xbf16, #tpu.memory_space<vmem>>, vector<256x1xbf16>
    %6 = vector.broadcast %5 : vector<256x1xbf16> to vector<256x512xbf16>
    %7 = arith.addf %4, %6 : vector<256x512xbf16>
    %cst_5 = arith.constant 0.000000e+00 : bf16
    %8 = vector.broadcast %cst_5 : bf16 to vector<256x512xbf16>
    %9 = arith.maximumf %7, %8 : vector<256x512xbf16>
    %c0_6 = arith.constant 0 : index
    %c0_7 = arith.constant 0 : index
    %10 = vector.load %arg4[%c0_6, %c0_7] : memref<256x256xbf16, #tpu.memory_space<vmem>>, vector<256x256xbf16>
    %cst_8 = arith.constant dense<0.000000e+00> : vector<256x512xf32>
    %11 = tpu.matmul %10, %9, %cst_8 {dimension_numbers = #tpu.dot_dimension_numbers<[1], [0], [0], [1], [0, 0, 1, 1], [], []>} : vector<256x256xbf16>, vector<256x512xbf16>, vector<256x512xf32> -> vector<256x512xf32>
    %12 = arith.truncf %11 : vector<256x512xf32> to vector<256x512xbf16>
    %c0_9 = arith.constant 0 : index
    %c0_10 = arith.constant 0 : index
    %13 = vector.load %arg5[%c0_9, %c0_10] : memref<256x1xbf16, #tpu.memory_space<vmem>>, vector<256x1xbf16>
    %14 = vector.broadcast %13 : vector<256x1xbf16> to vector<256x512xbf16>
    %15 = arith.addf %12, %14 : vector<256x512xbf16>
    %cst_11 = arith.constant 0.000000e+00 : bf16
    %16 = vector.broadcast %cst_11 : bf16 to vector<256x512xbf16>
    %17 = arith.maximumf %15, %16 : vector<256x512xbf16>
    %c0_12 = arith.constant 0 : index
    %c0_13 = arith.constant 0 : index
    %18 = vector.load %arg6[%c0_12, %c0_13] : memref<256x256xbf16, #tpu.memory_space<vmem>>, vector<256x256xbf16>
    %cst_14 = arith.constant dense<0.000000e+00> : vector<256x512xf32>
    %19 = tpu.matmul %18, %17, %cst_14 {dimension_numbers = #tpu.dot_dimension_numbers<[1], [0], [0], [1], [0, 0, 1, 1], [], []>} : vector<256x256xbf16>, vector<256x512xbf16>, vector<256x512xf32> -> vector<256x512xf32>
    %20 = arith.truncf %19 : vector<256x512xf32> to vector<256x512xbf16>
    %c0_15 = arith.constant 0 : index
    %c0_16 = arith.constant 0 : index
    %21 = vector.load %arg7[%c0_15, %c0_16] : memref<256x1xbf16, #tpu.memory_space<vmem>>, vector<256x1xbf16>
    %22 = vector.broadcast %21 : vector<256x1xbf16> to vector<256x512xbf16>
    %23 = arith.addf %20, %22 : vector<256x512xbf16>
    %cst_17 = arith.constant 0.000000e+00 : bf16
    %24 = vector.broadcast %cst_17 : bf16 to vector<256x512xbf16>
    %25 = arith.maximumf %23, %24 : vector<256x512xbf16>
    %c0_18 = arith.constant 0 : index
    %c0_19 = arith.constant 0 : index
    %26 = vector.load %arg8[%c0_18, %c0_19] : memref<8x256xbf16, #tpu.memory_space<vmem>>, vector<8x256xbf16>
    %cst_20 = arith.constant dense<0.000000e+00> : vector<8x512xf32>
    %27 = tpu.matmul %26, %25, %cst_20 {dimension_numbers = #tpu.dot_dimension_numbers<[1], [0], [0], [1], [0, 0, 1, 1], [], []>} : vector<8x256xbf16>, vector<256x512xbf16>, vector<8x512xf32> -> vector<8x512xf32>
    %c0_21 = arith.constant 0 : index
    %c0_22 = arith.constant 0 : index
    %28 = vector.load %arg9[%c0_21, %c0_22] : memref<8x1xf32, #tpu.memory_space<vmem>>, vector<8x1xf32>
    %29 = vector.broadcast %28 : vector<8x1xf32> to vector<8x512xf32>
    %30 = arith.addf %27, %29 : vector<8x512xf32>
    %c0_23 = arith.constant 0 : index
    %c0_24 = arith.constant 0 : index
    %31 = vector.load %arg10[%c0_23, %c0_24] : memref<8x512xf32, #tpu.memory_space<vmem>>, vector<8x512xf32>
    tpu.vector_store %arg10[%c0_23, %c0_24], %30 {strides = array<i32>} : memref<8x512xf32, #tpu.memory_space<vmem>>, vector<8x512xf32>,
    return
  }
  func.func @transform_0(%arg0: i32) -> (i32, i32) {
    %c0_i32 = arith.constant 0 : i32
    %c0_i32_0 = arith.constant 0 : i32
    return %c0_i32, %arg0 : i32, i32
  }
  func.func @transform_1(%arg0: i32) -> (i32, i32) {
    %c0_i32 = arith.constant 0 : i32
    %c0_i32_0 = arith.constant 0 : i32
    %c0_i32_1 = arith.constant 0 : i32
    return %c0_i32, %c0_i32_0 : i32, i32
  }
  func.func @transform_2(%arg0: i32) -> (i32, i32) {
    %c0_i32 = arith.constant 0 : i32
    %c0_i32_0 = arith.constant 0 : i32
    %c0_i32_1 = arith.constant 0 : i32
    return %c0_i32, %c0_i32_0 : i32, i32
  }
  func.func @transform_3(%arg0: i32) -> (i32, i32) {
    %c0_i32 = arith.constant 0 : i32
    %c0_i32_0 = arith.constant 0 : i32
    %c0_i32_1 = arith.constant 0 : i32
    return %c0_i32, %c0_i32_0 : i32, i32
  }
  func.func @transform_4(%arg0: i32) -> (i32, i32) {
    %c0_i32 = arith.constant 0 : i32
    %c0_i32_0 = arith.constant 0 : i32
    %c0_i32_1 = arith.constant 0 : i32
    return %c0_i32, %c0_i32_0 : i32, i32
  }
  func.func @transform_5(%arg0: i32) -> (i32, i32) {
    %c0_i32 = arith.constant 0 : i32
    %c0_i32_0 = arith.constant 0 : i32
    %c0_i32_1 = arith.constant 0 : i32
    return %c0_i32, %c0_i32_0 : i32, i32
  }
  func.func @transform_6(%arg0: i32) -> (i32, i32) {
    %c0_i32 = arith.constant 0 : i32
    %c0_i32_0 = arith.constant 0 : i32
    %c0_i32_1 = arith.constant 0 : i32
    return %c0_i32, %c0_i32_0 : i32, i32
  }
  func.func @transform_7(%arg0: i32) -> (i32, i32) {
    %c0_i32 = arith.constant 0 : i32
    %c0_i32_0 = arith.constant 0 : i32
    %c0_i32_1 = arith.constant 0 : i32
    return %c0_i32, %c0_i32_0 : i32, i32
  }
  func.func @transform_8(%arg0: i32) -> (i32, i32) {
    %c0_i32 = arith.constant 0 : i32
    %c0_i32_0 = arith.constant 0 : i32
    %c0_i32_1 = arith.constant 0 : i32
    return %c0_i32, %c0_i32_0 : i32, i32
  }
  func.func @transform_9(%arg0: i32) -> (i32, i32) {
    %c0_i32 = arith.constant 0 : i32
    %c0_i32_0 = arith.constant 0 : i32
    return %c0_i32, %arg0 : i32, i32
  }
}

</mosaic_0001>

<bundles_post_ra>
// kernel: _forward_impl.1
= control target key start
LH: loop header
LB: loop body
LE: loop exit
PB: predicated region body
PF: predicated region fallthrough
CT: control target
= control target key end

     0   :  { %s4690_s30 = smov 0   ;;  %s6655_s0 = inlined_call_operand.vmem [shape: f32[8,1024], index: 0, kind: input, shape index: {}]   ;;  %s6656_s1 = inlined_call_operand.vmem [shape: bf16[256,8], index: 1, kind: input, shape index: {}]   ;;  %s6657_s2 = inlined_call_operand.vmem [shape: bf16[256,1], index: 2, kind: input, shape index: {}]   ;;  %s6658_s3 = inlined_call_operand.vmem [shape: bf16[256,256], index: 3, kind: input, shape index: {}]   ;;  %s6659_s4 = inlined_call_operand.vmem [shape: bf16[256,1], index: 4, kind: input, shape index: {}]   ;;  %s6660_s5 = inlined_call_operand.vmem [shape: bf16[256,256], index: 5, kind: input, shape index: {}]   ;;  %s6661_s6 = inlined_call_operand.vmem [shape: bf16[256,1], index: 6, kind: input, shape index: {}]   ;;  %s6662_s7 = inlined_call_operand.vmem [shape: bf16[8,256], index: 7, kind: input, shape index: {}]   ;;  %s6663_s8 = inlined_call_operand.vmem [shape: f32[8,1], index: 8, kind: input, shape index: {}]   ;;  %s6664_s9 = inlined_call_operand.vmem [shape: f32[8,1024], index: 9, kind: output, shape index: {}]  }
   0x1 LB: > { %s4329_s10 = sadd.s32 4294967295, %s4636_s30   ;;  %p4333_p0 = scmp.ge.s32.totalorder %s4636_s30, 1  ;;  %s4636_s30 = sphi %s4690_s30, %s19_s30  }
   0x2   : > { %p288_p1 = scmp.lt.s32.totalorder %s4636_s30, 3 }
   0x4   : > { %p289_p2 = pnand %p4333_p0, %p288_p1 }
   0x6   : > { %292 = sbr.rel (%p289_p2) target bundleno = 1296 (0x510), region = 56 }
   0xb   : > { %v981_v0 = vld [vmem:[%s6657_s2 + $0x30] sm:$0xf]  ;;  %v983_v1 = vld [vmem:[%s6657_s2 + $0x38] sm:$0xf]  ;;  %s4334_s15 = sshll.u32 %s4329_s10, 2  ;;  %v6665_v2 = vmov 0  }
   0xc   : > { %4515 = vset.pattern.permute.xlu1 %v6665_v2  ;;  %4514 = vset.pattern.permute.xlu0 %v6665_v2  ;;  %v982_v3 = vld [vmem:[%s6657_s2 + $0x34] sm:$0xf]  ;;  %p325_p3 = scmp.lt.s32.totalorder %s4334_s15, 7  ;;  %v984_v4 = vld [vmem:[%s6657_s2 + $0x3c] sm:$0xf]  ;;  %vm506_vm0 = vcmask 1043456  }
   0xd   : > { %1147 = vperm.xlu1 %4515, %v981_v0   ;;  %1171 = vperm.xlu0 %4514, %v983_v1   ;;  %v980_v5 = vld [vmem:[%s6657_s2 + $0x2c] sm:$0xf]  ;;  %v979_v6 = vld [vmem:[%s6657_s2 + $0x28] sm:$0xf]  ;;  %v978_v16 = vld [vmem:[%s6657_s2 + $0x24] sm:$0xf] }
   0xe   : > { %551 = vmatprep.mubr.bf16.mxu0 %v6665_v2  ;;  %744 = vmatprep.mubr.bf16.mxu1 %v6665_v2  ;;  %s7062_s15 = smov (!%p325_p3, %s4334_s15), 7  ;;  %v977_v17 = vld [vmem:[%s6657_s2 + $0x20] sm:$0xf]  ;;  %vm457_vm1 = vcmask 64512   ;;  %v976_v20 = vld [vmem:[%s6657_s2 + $0x1c] sm:$0xf] }
   0xf   : > { %s4335_s20 = sshll.u32 %s7062_s15, 3  ;;  %v4516_v18 = vld [vmem:[%s6656_s1] sm:$0xff]   ;;  %v975_v21 = vld [vmem:[%s6657_s2 + $0x18] sm:$0xf]  ;;  %v4517_v22 = vld [vmem:[%s6656_s1 + $0x8] sm:$0xff]  }
  0x10   : > { %s328_s27 = scalar_lea.vmem %s6655_s0, %s4335_s20  ;;  %v974_v23 = vld [vmem:[%s6657_s2 + $0x14] sm:$0xf]  ;;  %v973_v24 = vld [vmem:[%s6657_s2 + $0x10] sm:$0xf]  ;;  %v972_v25 = vld [vmem:[%s6657_s2 + $0xc] sm:$0xf]  ;;  %s334_s12 = scalar_lea.vmem %s6664_s9, %s4335_s20 }
  0x11   : > { %1159 = vperm.xlu1 %4515, %v982_v3   ;;  %1183 = vperm.xlu0 %4514, %v984_v4   ;;  %v338_v7 = vld [vmem:[%s328_s27 + $0x8] sm:$0xff]  ;;  %v340_v8 = vld [vmem:[%s328_s27 + $0x18] sm:$0xff]  ;;  %v337_v9 = vld [vmem:[%s328_s27] sm:$0xff] }
  0x12   : > { %v342_v10 = vpack.c.bf16 %v338_v7, %v338_v7  ;;  %v344_v11 = vpack.c.bf16 %v340_v8, %v340_v8  ;;  %v341_v12 = vpack.c.bf16 %v337_v9, %v337_v9  ;;  %v339_v13 = vld [vmem:[%s328_s27 + $0x10] sm:$0xff]  ;;  %v971_v26 = vld [vmem:[%s6657_s2 + $0x8] sm:$0xf]  ;;  %v970_v27 = vld [vmem:[%s6657_s2 + $0x4] sm:$0xf] }
  0x13   : > { %v343_v14 = vpack.c.bf16 %v339_v13, %v339_v13  ;;  %v969_v28 = vld [vmem:[%s6657_s2] sm:$0xf]  ;;  %v4518_v29 = vld [vmem:[%s6656_s1 + $0x10] sm:$0xff]   ;;  %v1000_v30 = vld [vmem:[%s6657_s2 + $0x7c] sm:$0xf] }
  0x14   : > { %4354 = vmatprep.subr.msk.bf16.mxu0 %vm506_vm0, %v342_v10  ;;  %4371 = vmatprep.subr.msk.bf16.mxu1 %vm506_vm0, %v344_v11  ;;  %v508_v15 = vsel %vm506_vm0, %v341_v12, 0  ;;  %v999_v31 = vld [vmem:[%s6657_s2 + $0x78] sm:$0xf]  ;;  %v998_v32 = vld [vmem:[%s6657_s2 + $0x74] sm:$0xf]  ;;  %v4520_v39 = vld [vmem:[%s6656_s1 + $0x20] sm:$0xff]  }
  0x15   : > { %1135 = vperm.xlu1 %4515, %v980_v5   ;;  %1123 = vperm.xlu0 %4514, %v979_v6   ;;  %v514_v19 = vsel %vm506_vm0, %v343_v14, 0  ;;  %v997_v33 = vld [vmem:[%s6657_s2 + $0x70] sm:$0xf]  ;;  %v4519_v34 = vld [vmem:[%s6656_s1 + $0x18] sm:$0xff]   ;;  %v996_v35 = vld [vmem:[%s6657_s2 + $0x6c] sm:$0xf] }
  0x16   : > { %534 = vmatpush1.bf16.msra.mxu0 %v508_v15  ;;  %727 = vmatpush1.bf16.msra.mxu1 %v514_v19  ;;  %v995_v36 = vld [vmem:[%s6657_s2 + $0x68] sm:$0xf]  ;;  %v994_v37 = vld [vmem:[%s6657_s2 + $0x64] sm:$0xf]  ;;  %v993_v38 = vld [vmem:[%s6657_s2 + $0x60] sm:$0xf] }
  0x17   : > { %v992_v40 = vld [vmem:[%s6657_s2 + $0x5c] sm:$0xf]  ;;  %v991_v41 = vld [vmem:[%s6657_s2 + $0x58] sm:$0xf]  ;;  %v990_v42 = vld [vmem:[%s6657_s2 + $0x54] sm:$0xf] }
  0x18   : > { %v989_v43 = vld [vmem:[%s6657_s2 + $0x50] sm:$0xf]  ;;  %v4521_v44 = vld [vmem:[%s6656_s1 + $0x28] sm:$0xff]   ;;  %v986_v47 = vld [vmem:[%s6657_s2 + $0x44] sm:$0xf] }
  0x19   : > { %1111 = vperm.xlu1 %4515, %v978_v16   ;;  %1099 = vperm.xlu0 %4514, %v977_v17   ;;  %v988_v45 = vld [vmem:[%s6657_s2 + $0x4c] sm:$0xf]  ;;  %v987_v46 = vld [vmem:[%s6657_s2 + $0x48] sm:$0xf]  ;;  %v985_v48 = vld [vmem:[%s6657_s2 + $0x40] sm:$0xf] }
  0x1a   : > { %4355 = vmatmul.mubr.msk.bf16.vlgmr.msra.gmra.mxu0 %vm457_vm1, %v4516_v18  ;;  %4372 = vmatmul.mubr.msk.bf16.vlgmr.msra.gmra.mxu1 %vm457_vm1, %v4516_v18  ;;  %v4522_v49 = vld [vmem:[%s6656_s1 + $0x30] sm:$0xff]   ;;  %v2266_v50 = vld [vmem:[%s6659_s4 + $0x3c] sm:$0xf]  ;;  %v2265_v51 = vld [vmem:[%s6659_s4 + $0x38] sm:$0xf] }
  0x1b   : > { %561 = vmatprep.mubr.bf16.mxu0 %v6665_v2  ;;  %754 = vmatprep.mubr.bf16.mxu1 %v6665_v2  ;;  %v2264_v52 = vld [vmem:[%s6659_s4 + $0x34] sm:$0xf]  ;;  %v2263_v53 = vld [vmem:[%s6659_s4 + $0x30] sm:$0xf]  ;;  %v4523_v54 = vld [vmem:[%s6656_s1 + $0x38] sm:$0xff]  }
  0x1c   : > { %v2262_v55 = vld [vmem:[%s6659_s4 + $0x2c] sm:$0xf]  ;;  %v2261_v56 = vld [vmem:[%s6659_s4 + $0x28] sm:$0xf]  ;;  %v2260_v57 = vld [vmem:[%s6659_s4 + $0x24] sm:$0xf] }
  0x1d   : > { %1087 = vperm.xlu1 %4515, %v976_v20   ;;  %1075 = vperm.xlu0 %4514, %v975_v21   ;;  %v2259_v58 = vld [vmem:[%s6659_s4 + $0x20] sm:$0xf]  ;;  %v2258_v60 = vld [vmem:[%s6659_s4 + $0x1c] sm:$0xf]  ;;  %v2257_v61 = vld [vmem:[%s6659_s4 + $0x18] sm:$0xf] }
  0x1e   : > { %v4524_v59 = vld [vmem:[%s6656_s1 + $0x40] sm:$0xff]   ;;  %v2256_v62 = vld [vmem:[%s6659_s4 + $0x14] sm:$0xf]  ;;  %v2255_v63 = vld [vmem:[%s6659_s4 + $0x10] sm:$0xf] }
  0x1f   : > { %v4525_v0 = vld [vmem:[%s6656_s1 + $0x48] sm:$0xff]   ;;  %v2252_v4 = vld [vmem:[%s6659_s4 + $0x4] sm:$0xf]  ;;  %v2251_v5 = vld [vmem:[%s6659_s4] sm:$0xf] }
  0x20   : > { %v2254_v1 = vld [vmem:[%s6659_s4 + $0xc] sm:$0xf]  ;;  %v2253_v3 = vld [vmem:[%s6659_s4 + $0x8] sm:$0xf]  ;;  %v4526_v6 = vld [vmem:[%s6656_s1 + $0x50] sm:$0xff]  }
  0x21   : > { %1063 = vperm.xlu1 %4515, %v974_v23   ;;  %1051 = vperm.xlu0 %4514, %v973_v24   ;;  %v2282_v7 = vld [vmem:[%s6659_s4 + $0x7c] sm:$0xf]  ;;  %v2281_v8 = vld [vmem:[%s6659_s4 + $0x78] sm:$0xf]  ;;  %v2280_v9 = vld [vmem:[%s6659_s4 + $0x74] sm:$0xf] }
  0x22   : > { %4356 = vmatmul.mubr.msk.bf16.gmra.mxu0 %vm457_vm1, %v4517_v22  ;;  %4373 = vmatmul.mubr.msk.bf16.gmra.mxu1 %vm457_vm1, %v4517_v22  ;;  %v2279_v10 = vld [vmem:[%s6659_s4 + $0x70] sm:$0xf]  ;;  %v4527_v11 = vld [vmem:[%s6656_s1 + $0x58] sm:$0xff]   ;;  %v2278_v12 = vld [vmem:[%s6659_s4 + $0x6c] sm:$0xf] }
  0x23   : > { %571 = vmatprep.mubr.bf16.mxu0 %v6665_v2  ;;  %764 = vmatprep.mubr.bf16.mxu1 %v6665_v2  ;;  %v2277_v13 = vld [vmem:[%s6659_s4 + $0x68] sm:$0xf]  ;;  %v2276_v14 = vld [vmem:[%s6659_s4 + $0x64] sm:$0xf]  ;;  %v2275_v15 = vld [vmem:[%s6659_s4 + $0x60] sm:$0xf] }
  0x24   : > { %v4528_v16 = vld [vmem:[%s6656_s1 + $0x60] sm:$0xff]   ;;  %v2274_v17 = vld [vmem:[%s6659_s4 + $0x5c] sm:$0xf]  ;;  %v2273_v18 = vld [vmem:[%s6659_s4 + $0x58] sm:$0xf] }
  0x25   : > { %1039 = vperm.xlu1 %4515, %v972_v25   ;;  %1027 = vperm.xlu0 %4514, %v971_v26   ;;  %v2272_v19 = vld [vmem:[%s6659_s4 + $0x54] sm:$0xf]  ;;  %v2271_v20 = vld [vmem:[%s6659_s4 + $0x50] sm:$0xf]  ;;  %v4529_v21 = vld [vmem:[%s6656_s1 + $0x68] sm:$0xff]  }
  0x26   : > { %v2270_v22 = vld [vmem:[%s6659_s4 + $0x4c] sm:$0xf]  ;;  %v2269_v23 = vld [vmem:[%s6659_s4 + $0x48] sm:$0xf]  ;;  %v2268_v24 = vld [vmem:[%s6659_s4 + $0x44] sm:$0xf] }
  0x27   : > { %v2267_v25 = vld [vmem:[%s6659_s4 + $0x40] sm:$0xf]  ;;  %v4530_v26 = vld [vmem:[%s6656_s1 + $0x70] sm:$0xff]  }
  0x29   : > { %1015 = vperm.xlu1 %4515, %v970_v27   ;;  %1003 = vperm.xlu0 %4514, %v969_v28   ;;  %v3548_v27 = vld [vmem:[%s6661_s6 + $0x3c] sm:$0xf]  ;;  %v3547_v28 = vld [vmem:[%s6661_s6 + $0x38] sm:$0xf] }
  0x2a   : > { %4357 = vmatmul.mubr.msk.bf16.gmra.mxu0 %vm457_vm1, %v4518_v29  ;;  %4374 = vmatmul.mubr.msk.bf16.gmra.mxu1 %vm457_vm1, %v4518_v29  ;;  %v3546_v29 = vld [vmem:[%s6661_s6 + $0x34] sm:$0xf] }
  0x2b   : > { %581 = vmatprep.mubr.bf16.mxu0 %v6665_v2  ;;  %774 = vmatprep.mubr.bf16.mxu1 %v6665_v2 }
  0x2d   : > { %1375 = vperm.xlu1 %4515, %v1000_v30   ;;  %1363 = vperm.xlu0 %4514, %v999_v31   ;;  %v3545_v30 = vld [vmem:[%s6661_s6 + $0x30] sm:$0xf]  ;;  %v4531_v31 = vld [vmem:[%s6656_s1 + $0x78] sm:$0xff]  }
  0x31   : > { %1351 = vperm.xlu1 %4515, %v998_v32   ;;  %1339 = vperm.xlu0 %4514, %v997_v33   ;;  %v3544_v32 = vld [vmem:[%s6661_s6 + $0x2c] sm:$0xf]  ;;  %v3543_v33 = vld [vmem:[%s6661_s6 + $0x28] sm:$0xf] }
  0x32   : > { %4358 = vmatmul.mubr.msk.bf16.gmra.mxu0 %vm457_vm1, %v4519_v34  ;;  %4375 = vmatmul.mubr.msk.bf16.gmra.mxu1 %vm457_vm1, %v4519_v34  ;;  %v3542_v34 = vld [vmem:[%s6661_s6 + $0x24] sm:$0xf] }
  0x33   : > { %591 = vmatprep.mubr.bf16.mxu0 %v6665_v2  ;;  %784 = vmatprep.mubr.bf16.mxu1 %v6665_v2 }
  0x35   : > { %1327 = vperm.xlu1 %4515, %v996_v35   ;;  %1315 = vperm.xlu0 %4514, %v995_v36   ;;  %v3541_v35 = vld [vmem:[%s6661_s6 + $0x20] sm:$0xf]  ;;  %v3540_v36 = vld [vmem:[%s6661_s6 + $0x1c] sm:$0xf] }
  0x39   : > { %1303 = vperm.xlu1 %4515, %v994_v37   ;;  %1291 = vperm.xlu0 %4514, %v993_v38   ;;  %v3539_v37 = vld [vmem:[%s6661_s6 + $0x18] sm:$0xf]  ;;  %v3538_v38 = vld [vmem:[%s6661_s6 + $0x14] sm:$0xf] }
  0x3a   : > { %4359 = vmatmul.mubr.msk.bf16.gmra.mxu0 %vm457_vm1, %v4520_v39  ;;  %4376 = vmatmul.mubr.msk.bf16.gmra.mxu1 %vm457_vm1, %v4520_v39  ;;  %v3537_v39 = vld [vmem:[%s6661_s6 + $0x10] sm:$0xf] }
  0x3b   : > { %601 = vmatprep.mubr.bf16.mxu0 %v6665_v2  ;;  %794 = vmatprep.mubr.bf16.mxu1 %v6665_v2 }
  0x3d   : > { %1279 = vperm.xlu1 %4515, %v992_v40   ;;  %1267 = vperm.xlu0 %4514, %v991_v41   ;;  %v3536_v40 = vld [vmem:[%s6661_s6 + $0xc] sm:$0xf]  ;;  %v3535_v41 = vld [vmem:[%s6661_s6 + $0x8] sm:$0xf] }
  0x41   : > { %1255 = vperm.xlu1 %4515, %v990_v42   ;;  %1243 = vperm.xlu0 %4514, %v989_v43   ;;  %v3534_v42 = vld [vmem:[%s6661_s6 + $0x4] sm:$0xf]  ;;  %v3533_v43 = vld [vmem:[%s6661_s6] sm:$0xf] }
  0x42   : > { %4360 = vmatmul.mubr.msk.bf16.gmra.mxu0 %vm457_vm1, %v4521_v44  ;;  %4377 = vmatmul.mubr.msk.bf16.gmra.mxu1 %vm457_vm1, %v4521_v44  ;;  %v3564_v44 = vld [vmem:[%s6661_s6 + $0x7c] sm:$0xf] }
  0x43   : > { %611 = vmatprep.mubr.bf16.mxu0 %v6665_v2  ;;  %804 = vmatprep.mubr.bf16.mxu1 %v6665_v2 }
  0x45   : > { %1231 = vperm.xlu1 %4515, %v988_v45   ;;  %1219 = vperm.xlu0 %4514, %v987_v46   ;;  %v3563_v45 = vld [vmem:[%s6661_s6 + $0x78] sm:$0xf]  ;;  %v3562_v46 = vld [vmem:[%s6661_s6 + $0x74] sm:$0xf] }
  0x49   : > { %1207 = vperm.xlu1 %4515, %v986_v47   ;;  %1195 = vperm.xlu0 %4514, %v985_v48   ;;  %v3561_v47 = vld [vmem:[%s6661_s6 + $0x70] sm:$0xf]  ;;  %v3560_v48 = vld [vmem:[%s6661_s6 + $0x6c] sm:$0xf] }
  0x4a   : > { %4361 = vmatmul.mubr.msk.bf16.gmra.mxu0 %vm457_vm1, %v4522_v49  ;;  %4378 = vmatmul.mubr.msk.bf16.gmra.mxu1 %vm457_vm1, %v4522_v49  ;;  %v3559_v49 = vld [vmem:[%s6661_s6 + $0x68] sm:$0xf] }
  0x4b   : > { %621 = vmatprep.mubr.bf16.mxu0 %v6665_v2  ;;  %814 = vmatprep.mubr.bf16.mxu1 %v6665_v2 }
  0x4d   : > { %2465 = vperm.xlu1 %4515, %v2266_v50   ;;  %2453 = vperm.xlu0 %4514, %v2265_v51   ;;  %v3558_v50 = vld [vmem:[%s6661_s6 + $0x64] sm:$0xf]  ;;  %v3557_v51 = vld [vmem:[%s6661_s6 + $0x60] sm:$0xf] }
  0x51   : > { %2441 = vperm.xlu1 %4515, %v2264_v52   ;;  %2429 = vperm.xlu0 %4514, %v2263_v53   ;;  %v3556_v52 = vld [vmem:[%s6661_s6 + $0x5c] sm:$0xf]  ;;  %v3555_v53 = vld [vmem:[%s6661_s6 + $0x58] sm:$0xf] }
  0x52   : > { %4362 = vmatmul.mubr.msk.bf16.gmra.mxu0 %vm457_vm1, %v4523_v54  ;;  %4379 = vmatmul.mubr.msk.bf16.gmra.mxu1 %vm457_vm1, %v4523_v54  ;;  %v3554_v54 = vld [vmem:[%s6661_s6 + $0x54] sm:$0xf] }
  0x53   : > { %631 = vmatprep.mubr.bf16.mxu0 %v6665_v2  ;;  %824 = vmatprep.mubr.bf16.mxu1 %v6665_v2 }
  0x55   : > { %2417 = vperm.xlu1 %4515, %v2262_v55   ;;  %2405 = vperm.xlu0 %4514, %v2261_v56   ;;  %v3553_v55 = vld [vmem:[%s6661_s6 + $0x50] sm:$0xf]  ;;  %v3552_v56 = vld [vmem:[%s6661_s6 + $0x4c] sm:$0xf] }
  0x59   : > { %2393 = vperm.xlu1 %4515, %v2260_v57   ;;  %2381 = vperm.xlu0 %4514, %v2259_v58   ;;  %v3551_v57 = vld [vmem:[%s6661_s6 + $0x48] sm:$0xf]  ;;  %v3550_v58 = vld [vmem:[%s6661_s6 + $0x44] sm:$0xf] }
  0x5a   : > { %4363 = vmatmul.mubr.msk.bf16.gmra.mxu0 %vm457_vm1, %v4524_v59  ;;  %4380 = vmatmul.mubr.msk.bf16.gmra.mxu1 %vm457_vm1, %v4524_v59  ;;  %v3549_v59 = vld [vmem:[%s6661_s6 + $0x40] sm:$0xf] }
  0x5b   : > { %641 = vmatprep.mubr.bf16.mxu0 %v6665_v2  ;;  %834 = vmatprep.mubr.bf16.mxu1 %v6665_v2 }
  0x5d   : > { %2369 = vperm.xlu1 %4515, %v2258_v60   ;;  %2357 = vperm.xlu0 %4514, %v2257_v61   ;;  %v4174_v60 = vld [vmem:[%s6663_s8] sm:$0xff] }
  0x61   : > { %2345 = vperm.xlu1 %4515, %v2256_v62   ;;  %2333 = vperm.xlu0 %4514, %v2255_v63  }
  0x62   : > { %4364 = vmatmul.mubr.msk.bf16.gmra.mxu0 %vm457_vm1, %v4525_v0  ;;  %4381 = vmatmul.mubr.msk.bf16.gmra.mxu1 %vm457_vm1, %v4525_v0 }
  0x63   : > { %651 = vmatprep.mubr.bf16.mxu0 %v6665_v2  ;;  %844 = vmatprep.mubr.bf16.mxu1 %v6665_v2 }
  0x65   : > { %2321 = vperm.xlu1 %4515, %v2254_v1   ;;  %2309 = vperm.xlu0 %4514, %v2253_v3  }
  0x69   : > { %2297 = vperm.xlu1 %4515, %v2252_v4   ;;  %2285 = vperm.xlu0 %4514, %v2251_v5  }
  0x6a   : > { %4365 = vmatmul.mubr.msk.bf16.gmra.mxu0 %vm457_vm1, %v4526_v6  ;;  %4382 = vmatmul.mubr.msk.bf16.gmra.mxu1 %vm457_vm1, %v4526_v6 }
  0x6b   : > { %661 = vmatprep.mubr.bf16.mxu0 %v6665_v2  ;;  %854 = vmatprep.mubr.bf16.mxu1 %v6665_v2 }
  0x6d   : > { %2657 = vperm.xlu1 %4515, %v2282_v7   ;;  %2645 = vperm.xlu0 %4514, %v2281_v8  }
  0x71   : > { %2633 = vperm.xlu1 %4515, %v2280_v9   ;;  %2621 = vperm.xlu0 %4514, %v2279_v10  }
  0x72   : > { %4366 = vmatmul.mubr.msk.bf16.gmra.mxu0 %vm457_vm1, %v4527_v11  ;;  %4383 = vmatmul.mubr.msk.bf16.gmra.mxu1 %vm457_vm1, %v4527_v11 }
  0x73   : > { %671 = vmatprep.mubr.bf16.mxu0 %v6665_v2  ;;  %864 = vmatprep.mubr.bf16.mxu1 %v6665_v2 }
  0x75   : > { %2609 = vperm.xlu1 %4515, %v2278_v12   ;;  %2597 = vperm.xlu0 %4514, %v2277_v13  }
  0x79   : > { %2585 = vperm.xlu1 %4515, %v2276_v14   ;;  %2573 = vperm.xlu0 %4514, %v2275_v15  }
  0x7a   : > { %4367 = vmatmul.mubr.msk.bf16.gmra.mxu0 %vm457_vm1, %v4528_v16  ;;  %4384 = vmatmul.mubr.msk.bf16.gmra.mxu1 %vm457_vm1, %v4528_v16 }
  0x7b   : > { %681 = vmatprep.mubr.bf16.mxu0 %v6665_v2  ;;  %874 = vmatprep.mubr.bf16.mxu1 %v6665_v2 }
  0x7d   : > { %2561 = vperm.xlu1 %4515, %v2274_v17   ;;  %2549 = vperm.xlu0 %4514, %v2273_v18  }
  0x81   : > { %2537 = vperm.xlu1 %4515, %v2272_v19   ;;  %2525 = vperm.xlu0 %4514, %v2271_v20  }
  0x82   : > { %4368 = vmatmul.mubr.msk.bf16.gmra.mxu0 %vm457_vm1, %v4529_v21  ;;  %4385 = vmatmul.mubr.msk.bf16.gmra.mxu1 %vm457_vm1, %v4529_v21 }
  0x83   : > { %691 = vmatprep.mubr.bf16.mxu0 %v6665_v2  ;;  %884 = vmatprep.mubr.bf16.mxu1 %v6665_v2 }
  0x85   : > { %2513 = vperm.xlu1 %4515, %v2270_v22   ;;  %2501 = vperm.xlu0 %4514, %v2269_v23  }
  0x89   : > { %2489 = vperm.xlu1 %4515, %v2268_v24   ;;  %2477 = vperm.xlu0 %4514, %v2267_v25  }
  0x8a   : > { %4369 = vmatmul.mubr.msk.bf16.gmra.mxu0 %vm457_vm1, %v4530_v26  ;;  %4386 = vmatmul.mubr.msk.bf16.gmra.mxu1 %vm457_vm1, %v4530_v26 }
  0x8b   : > { %701 = vmatprep.mubr.bf16.mxu0 %v6665_v2  ;;  %894 = vmatprep.mubr.bf16.mxu1 %v6665_v2 }
  0x8d   : > { %3747 = vperm.xlu1 %4515, %v3548_v27   ;;  %3735 = vperm.xlu0 %4514, %v3547_v28  }
  0x91   : > { %3723 = vperm.xlu1 %4515, %v3546_v29   ;;  %3711 = vperm.xlu0 %4514, %v3545_v30  }
  0x92   : > { %4370 = vmatmul.mubr.msk.bf16.gmra.mxu0 %vm457_vm1, %v4531_v31  ;;  %4387 = vmatmul.mubr.msk.bf16.gmra.mxu1 %vm457_vm1, %v4531_v31 }
  0x95   : > { %3699 = vperm.xlu1 %4515, %v3544_v32   ;;  %3687 = vperm.xlu0 %4514, %v3543_v33  }
  0x99   : > { %3675 = vperm.xlu1 %4515, %v3542_v34   ;;  %3663 = vperm.xlu0 %4514, %v3541_v35  }
  0x9d   : > { %3651 = vperm.xlu1 %4515, %v3540_v36   ;;  %3639 = vperm.xlu0 %4514, %v3539_v37  }
  0xa1   : > { %3627 = vperm.xlu1 %4515, %v3538_v38   ;;  %3615 = vperm.xlu0 %4514, %v3537_v39   ;;  %v4534_v38 = vld [vmem:[%s6658_s3 + $0x4] ss:$8 sps:$4 sm:$0xff]  }
  0xa2   : > { %1833 = vmatprep.mubr.bf16.mxu0 %v4534_v38  ;;  %2026 = vmatprep.mubr.bf16.mxu1 %v4534_v38 }
  0xa5   : > { %3603 = vperm.xlu1 %4515, %v3536_v40   ;;  %3591 = vperm.xlu0 %4514, %v3535_v41   ;;  %v1148_v40 = vpop.permute.xlu1 %1147 }
  0xa9   : > { %3579 = vperm.xlu1 %4515, %v3534_v42   ;;  %3567 = vperm.xlu0 %4514, %v3533_v43   ;;  %v1172_v42 = vpop.permute.xlu0 %1171 }
  0xad   : > { %3939 = vperm.xlu1 %4515, %v3564_v44   ;;  %3927 = vperm.xlu0 %4514, %v3563_v45  }
  0xb1   : > { %3915 = vperm.xlu1 %4515, %v3562_v46   ;;  %3903 = vperm.xlu0 %4514, %v3561_v47  }
  0xb5   : > { %3891 = vperm.xlu1 %4515, %v3560_v48   ;;  %3879 = vperm.xlu0 %4514, %v3559_v49   ;;  %v1160_v48 = vpop.permute.xlu1 %1159 }
  0xb9   : > { %3867 = vperm.xlu1 %4515, %v3558_v50   ;;  %3855 = vperm.xlu0 %4514, %v3557_v51   ;;  %v1184_v50 = vpop.permute.xlu0 %1183 }
  0xbd   : > { %3843 = vperm.xlu1 %4515, %v3556_v52   ;;  %3831 = vperm.xlu0 %4514, %v3555_v53   ;;  %v4639_v53 = vmov 839922192   ;;  %v1124_v3 = vpop.permute.xlu0 %1123 }
  0xc1   : > { %3819 = vperm.xlu1 %4515, %v3554_v54   ;;  %3807 = vperm.xlu0 %4514, %v3553_v55   ;;  %v1007_v54 = vunpack.c.l.s4 %v4639_v53  ;;  %v1009_v55 = vlaneseq }
  0xc3   : > { %v1008_v38 = vunpack.c.0.s8 %v1007_v54  ;;  %v1010_v5 = vshrl.u32 %v1009_v55, 7 }
  0xc5   : > { %3795 = vperm.xlu1 %4515, %v3552_v56   ;;  %3783 = vperm.xlu0 %4514, %v3551_v57  }
  0xc9   : > { %3771 = vperm.xlu1 %4515, %v3550_v58   ;;  %3759 = vperm.xlu0 %4514, %v3549_v59   ;;  %v1136_v59 = vpop.permute.xlu1 %1135 }
  0xcd   : > { %4177 = vperm.xlu0 %4514, %v4174_v60  }
  0xda   : > { %v5115_v61 = vpop.f32.mrf.mxu0  ;;  %v5117_v62 = vpop.f32.mrf.mxu1 }
  0xdb   : > { %6740 = vst [vmem:[#allocation2_spill] sm:$0xff] %v5115_v61  ;;  %6741 = vst [vmem:[#allocation3_spill] sm:$0xff] %v5117_v62  ;;  %v1112_v61 = vpop.permute.xlu1 %1111 }
  0xdc   : > { %v5119_v63 = vpop.f32.mrf.mxu0  ;;  %v5121_v0 = vpop.f32.mrf.mxu1 }
  0xdd   : > { %6742 = vst [vmem:[#allocation4_spill] sm:$0xff] %v5119_v63  ;;  %6743 = vst [vmem:[#allocation5_spill] sm:$0xff] %v5121_v0 }
  0xde   : > { %v5123_v1 = vpop.f32.mrf.mxu0  ;;  %v5127_v4 = vpop.f32.mrf.mxu1 }
  0xdf   : > { %6744 = vst [vmem:[#allocation6_spill] sm:$0xff] %v5123_v1  ;;  %6745 = vst [vmem:[#allocation7_spill] sm:$0xff] %v5127_v4  ;;  %v5226_v4 = vsub.s32 %v1008_v38, %v1010_v5 }
  0xe0   : > { %v5131_v6 = vpop.f32.mrf.mxu0  ;;  %v5133_v7 = vpop.f32.mrf.mxu1 }
  0xe1   : > { %6746 = vst [vmem:[#allocation8_spill] sm:$0xff] %v5131_v6  ;;  %6747 = vst [vmem:[#allocation9_spill] sm:$0xff] %v5133_v7  ;;  %v1156_v54 = vrot.slane %v1148_v40, %v5226_v4  ;;  %v1168_v55 = vrot.slane %v1160_v48, %v5226_v4  ;;  %v1144_v0 = vrot.slane %v1136_v59, %v5226_v4 }
  0xe2   : > { %v5135_v8 = vpop.f32.mrf.mxu0  ;;  %v5137_v9 = vpop.f32.mrf.mxu1  ;;  %v1132_v6 = vrot.slane %v1124_v3, %v5226_v4  ;;  %v1120_v38 = vrot.slane %v1112_v61, %v5226_v4 }
  0xe3   : > { %6748 = vst [vmem:[#allocation10_spill] sm:$0xff] %v5135_v8  ;;  %6749 = vst [vmem:[#allocation11_spill] sm:$0xff] %v5137_v9  ;;  %v1180_v9 = vrot.slane %v1172_v42, %v5226_v4  ;;  %v1100_v8 = vpop.permute.xlu0 %1099  ;;  %v4394_v40 = vcombine.low %v1156_v54, %v1168_v55 }
  0xe4   : > { %v5139_v10 = vpop.f32.mrf.mxu0  ;;  %v5141_v11 = vpop.f32.mrf.mxu1  ;;  %v1108_v63 = vrot.slane %v1100_v8, %v5226_v4 }
  0xe5   : > { %6750 = vst [vmem:[#allocation12_spill] sm:$0xff] %v5139_v10  ;;  %6751 = vst [vmem:[#allocation13_spill] sm:$0xff] %v5141_v11 }
  0xe6   : > { %v5143_v12 = vpop.f32.mrf.mxu0  ;;  %v5147_v14 = vpop.f32.mrf.mxu1  ;;  %v5240_v10 = vcombine.low %v1108_v63, %v1120_v38 }
  0xe7   : > { %6752 = vst [vmem:[#allocation14_spill] sm:$0xff] %v5143_v12  ;;  %6753 = vst [vmem:[#allocation15_spill] sm:$0xff] %v5147_v14  ;;  %v1192_v14 = vrot.slane %v1184_v50, %v5226_v4  ;;  %v5236_v50 = vpop.permute.xlu1 %1087  ;;  %v5238_v48 = vpop.permute.xlu0 %1075 }
  0xe8   : > { %v5151_v16 = vpop.f32.mrf.mxu0  ;;  %v5153_v17 = vpop.f32.mrf.mxu1  ;;  %v1096_v61 = vrot.slane %v5236_v50, %v5226_v4  ;;  %v1084_v8 = vrot.slane %v5238_v48, %v5226_v4 }
  0xe9   : > { %6754 = vst [vmem:[#allocation16_spill] sm:$0xff] %v5151_v16  ;;  %6755 = vst [vmem:[#allocation17_spill] sm:$0xff] %v5153_v17  ;;  %v4395_v42 = vcombine.low %v1180_v9, %v1192_v14 }
  0xea   : > { %v5155_v18 = vpop.f32.mrf.mxu0  ;;  %v5157_v19 = vpop.f32.mrf.mxu1 }
  0xeb   : > { %6756 = vst [vmem:[#allocation18_spill] sm:$0xff] %v5155_v18  ;;  %6757 = vst [vmem:[#allocation19_spill] sm:$0xff] %v5157_v19  ;;  %v4393_v18 = vcombine.low %v1132_v6, %v1144_v0  ;;  %v1064_v55 = vpop.permute.xlu1 %1063 }
  0xec   : > { %v5159_v20 = vpop.f32.mrf.mxu0  ;;  %v5161_v21 = vpop.f32.mrf.mxu1 }
  0xee   : > { %v5163_v22 = vpop.f32.mrf.mxu0  ;;  %v5165_v23 = vpop.f32.mrf.mxu1 }
  0xef   : > { %6758 = vst [vmem:[#allocation20_spill] sm:$0xff] %v5163_v22  ;;  %6759 = vst [vmem:[#allocation21_spill] sm:$0xff] %v5165_v23 }
  0xf0   : > { %v5167_v24 = vpop.f32.mrf.mxu0  ;;  %v5169_v25 = vpop.f32.mrf.mxu1 }
  0xf2   : > { %v5171_v26 = vpop.f32.mrf.mxu0  ;;  %v5173_v27 = vpop.f32.mrf.mxu1 }
  0xf4   : > { %v5175_v28 = vpop.f32.mrf.mxu0  ;;  %v5177_v29 = vpop.f32.mrf.mxu1 }
  0xf6   : > { %v5179_v30 = vpop.f32.mrf.mxu0  ;;  %v5181_v31 = vpop.f32.mrf.mxu1 }
  0xf8   : > { %v5183_v32 = vpop.f32.mrf.mxu0  ;;  %v5185_v33 = vpop.f32.mrf.mxu1 }
  0xfa   : > { %v5187_v34 = vpop.f32.mrf.mxu0  ;;  %v5189_v35 = vpop.f32.mrf.mxu1 }
  0xfc   : > { %v5191_v36 = vpop.f32.mrf.mxu0  ;;  %v5193_v37 = vpop.f32.mrf.mxu1 }
  0xfe   : > { %v5198_v39 = vpop.f32.mrf.mxu0  ;;  %v5200_v41 = vpop.f32.mrf.mxu1 }
 0x100   : > { %v5202_v43 = vpop.f32.mrf.mxu0  ;;  %v5204_v44 = vpop.f32.mrf.mxu1 }
 0x102   : > { %v5206_v45 = vpop.f32.mrf.mxu0  ;;  %v5208_v46 = vpop.f32.mrf.mxu1 }
 0x104   : > { %v5210_v47 = vpop.f32.mrf.mxu0  ;;  %v5212_v49 = vpop.f32.mrf.mxu1 }
 0x106   : > { %v5214_v51 = vpop.f32.mrf.mxu0  ;;  %v5216_v52 = vpop.f32.mrf.mxu1 }
 0x108   : > { %v5218_v56 = vpop.f32.mrf.mxu0  ;;  %v5220_v57 = vpop.f32.mrf.mxu1 }
 0x109   : > { %v928_v54 = vpack.c.bf16 %v5220_v57, %v5212_v49 }
 0x10a   : > { %v5222_v58 = vpop.f32.mrf.mxu0  ;;  %v5224_v60 = vpop.f32.mrf.mxu1 }
 0x10c   : > { %v615_v15 = vpop.f32.mrf.mxu0  ;;  %v808_v13 = vpop.f32.mrf.mxu1 }
 0x10e   : > { %v617_v2 = vpop.f32.mrf.mxu0  ;;  %v810_v62 = vpop.f32.mrf.mxu1 }
 0x10f   : > { %v929_v0 = vpack.c.bf16 %v617_v2, %v5222_v58  ;;  %v931_v63 = vpack.c.bf16 %v810_v62, %v5224_v60  ;;  %v925_v62 = vpack.c.bf16 %v5214_v51, %v5206_v45 }
 0x110   : > { %v619_v53 = vpop.f32.mrf.mxu0  ;;  %v812_v1 = vpop.f32.mrf.mxu1 }
 0x111   : > { %v930_v23 = vpack.c.bf16 %v619_v53, %v615_v15  ;;  %v932_v59 = vpack.c.bf16 %v812_v1, %v808_v13  ;;  %v922_v53 = vpack.c.bf16 %v5202_v43, %v5191_v36  ;;  %v1505_v58 = vadd.bf16 %v4394_v40, %v929_v0 }
 0x112   : > { %v623_v12 = vpop.f32.mrf.mxu0  ;;  %v816_v7 = vpop.f32.mrf.mxu1 }
 0x114   : > { %v625_v5 = vpop.f32.mrf.mxu0  ;;  %v818_v17 = vpop.f32.mrf.mxu1 }
 0x116   : > { %v627_v11 = vpop.f32.mrf.mxu0  ;;  %v820_v22 = vpop.f32.mrf.mxu1 }
 0x117   : > { %v933_v19 = vpack.c.bf16 %v627_v11, %v623_v12  ;;  %v935_v16 = vpack.c.bf16 %v820_v22, %v816_v7  ;;  %v926_v11 = vpack.c.bf16 %v5218_v56, %v5210_v47  ;;  %v1506_v7 = vadd.bf16 %v4394_v40, %v930_v23 }
 0x118   : > { %v629_v3 = vpop.f32.mrf.mxu0  ;;  %v822_v14 = vpop.f32.mrf.mxu1  ;;  %v1508_v47 = vadd.bf16 %v4394_v40, %v932_v59  ;;  %v6764_v23 = vmov 0   ;;  %v918_v59 = vpack.c.bf16 %v5183_v32, %v5175_v28 }
 0x119   : > { %v934_v9 = vpack.c.bf16 %v629_v3, %v625_v5  ;;  %v1509_v6 = vadd.bf16 %v4395_v42, %v933_v19  ;;  %v936_v12 = vpack.c.bf16 %v822_v14, %v818_v17  ;;  %v1511_v13 = vadd.bf16 %v4395_v42, %v935_v16 }
 0x11a   : > { %v5249_v1 = vpop.f32.mrf.mxu0  ;;  %v5252_v22 = vpop.f32.mrf.mxu1  ;;  %v924_v17 = vpack.c.bf16 %v5204_v44, %v5193_v37  ;;  %v927_v16 = vpack.c.bf16 %v5216_v52, %v5208_v46  ;;  %v1502_v43 = vadd.bf16 %v4393_v18, %v926_v11  ;;  %v1507_v37 = vadd.bf16 %v4394_v40, %v931_v63 }
 0x11b   : > { %6760 = vst [vmem:[#allocation22_spill] sm:$0xff] %v5249_v1  ;;  %v1510_v15 = vadd.bf16 %v4395_v42, %v934_v9  ;;  %6761 = vst [vmem:[#allocation23_spill] sm:$0xff] %v5252_v22  ;;  %v1512_v56 = vadd.bf16 %v4395_v42, %v936_v12  ;;  %v1573_v49 = vmax.bf16 %v6764_v23, %v1509_v6  ;;  %v1052_v52 = vpop.permute.xlu0 %1051 }
 0x11c   : > { %v5258_v2 = vpop.f32.mrf.mxu0  ;;  %v5266_v19 = vpop.f32.mrf.mxu1  ;;  %v1575_v44 = vmax.bf16 %v6764_v23, %v1511_v13  ;;  %v1570_v51 = vmax.bf16 %v6764_v23, %v1506_v7  ;;  %v1504_v5 = vadd.bf16 %v4393_v18, %v928_v54  ;;  %v1572_v50 = vmax.bf16 %v6764_v23, %v1508_v47 }
 0x11d   : > { %6762 = vst [vmem:[#allocation24_spill] sm:$0xff] %v5258_v2  ;;  %6763 = vst [vmem:[#allocation25_spill] sm:$0xff] %v5266_v19  ;;  %v1574_v36 = vmax.bf16 %v6764_v23, %v1510_v15  ;;  %v1576_v60 = vmax.bf16 %v6764_v23, %v1512_v56  ;;  %v1072_v40 = vrot.slane %v1064_v55, %v5226_v4 }
 0x11e   : > { %v5270_v57 = vpop.f32.mrf.mxu0  ;;  %v5276_v46 = vpop.f32.mrf.mxu1  ;;  %v1060_v48 = vrot.slane %v1052_v52, %v5226_v4  ;;  %v921_v9 = vpack.c.bf16 %v5198_v39, %v5187_v34  ;;  %v923_v14 = vpack.c.bf16 %v5200_v41, %v5189_v35  ;;  %v1501_v11 = vadd.bf16 %v4393_v18, %v925_v62  ;;  %v6782_v52 = vld [vmem:[#allocation21_spill] sm:$0xff] }
 0x11f   : > { %6765 = vst [vmem:[#allocation26_spill] sm:$0xff] %v5270_v57  ;;  %6766 = vst [vmem:[#allocation27_spill] sm:$0xff] %v5276_v46  ;;  %1801 = vmatprep.subr.bf16.mxu0 %v1574_v36  ;;  %1994 = vmatprep.subr.bf16.mxu1 %v1576_v60  ;;  %v1569_v0 = vmax.bf16 %v6764_v23, %v1505_v58  ;;  %v1498_v12 = vadd.bf16 %v5240_v10, %v922_v53  ;;  %v1040_v53 = vpop.permute.xlu1 %1039  ;;  %v6777_v60 = vld [vmem:[#allocation16_spill] sm:$0xff] }
 0x120   : > { %v5281_v42 = vpop.f32.mrf.mxu0  ;;  %1802 = vmatpush1.bf16.msra.mxu0 %v1573_v49  ;;  %v5288_v3 = vpop.f32.mrf.mxu1  ;;  %1995 = vmatpush1.bf16.msra.mxu1 %v1575_v44  ;;  %v1503_v63 = vadd.bf16 %v4393_v18, %v927_v16  ;;  %v1571_v28 = vmax.bf16 %v6764_v23, %v1507_v37  ;;  %v1566_v7 = vmax.bf16 %v6764_v23, %v1502_v43  ;;  %v6776_v49 = vld [vmem:[#allocation12_spill] sm:$0xff] }
 0x121   : > { %6767 = vst [vmem:[#allocation28_spill] sm:$0xff] %v5281_v42  ;;  %6768 = vst [vmem:[#allocation29_spill] sm:$0xff] %v5288_v3  ;;  %1803 = vmatprep.subr.bf16.mxu0 %v1570_v51  ;;  %1996 = vmatprep.subr.bf16.mxu1 %v1572_v50  ;;  %v4391_v13 = vcombine.low %v1084_v8, %v1096_v61  ;;  %v920_v34 = vpack.c.bf16 %v5185_v33, %v5177_v29  ;;  %v1028_v29 = vpop.permute.xlu0 %1027  ;;  %v6781_v51 = vld [vmem:[#allocation19_spill] sm:$0xff] }
 0x122   : > { %v5295_v6 = vpop.f32.mrf.mxu0  ;;  %v5299_v32 = vpop.f32.mrf.mxu1  ;;  %v1500_v35 = vadd.bf16 %v5240_v10, %v924_v17  ;;  %v1568_v41 = vmax.bf16 %v6764_v23, %v1504_v5  ;;  %v4390_v15 = vcombine.low %v1060_v48, %v1072_v40  ;;  %v914_v18 = vpack.c.bf16 %v5167_v24, %v5159_v20 }
 0x123   : > { %6769 = vst [vmem:[#allocation30_spill] sm:$0xff] %v5295_v6  ;;  %6770 = vst [vmem:[#allocation31_spill] sm:$0xff] %v5299_v32  ;;  %v917_v54 = vpack.c.bf16 %v5179_v30, %v5171_v26  ;;  %v919_v33 = vpack.c.bf16 %v5181_v31, %v5173_v27  ;;  %v1494_v61 = vadd.bf16 %v4391_v13, %v918_v59  ;;  %v1016_v59 = vpop.permute.xlu1 %1015 }
 0x124   : > { %v5305_v39 = vpop.f32.mrf.mxu0  ;;  %1804 = vmatpush1.bf16.msra.mxu0 %v1569_v0  ;;  %v5312_v47 = vpop.f32.mrf.mxu1  ;;  %1997 = vmatpush1.bf16.msra.mxu1 %v1571_v28  ;;  %v1497_v8 = vadd.bf16 %v5240_v10, %v921_v9  ;;  %v1565_v56 = vmax.bf16 %v6764_v23, %v1501_v11  ;;  %v1499_v20 = vadd.bf16 %v5240_v10, %v923_v14  ;;  %v6785_v28 = vld [vmem:[#allocation13_spill] sm:$0xff] }
 0x125   : > { %6771 = vst [vmem:[#allocation32_spill] sm:$0xff] %v5305_v39  ;;  %6772 = vst [vmem:[#allocation33_spill] sm:$0xff] %v5312_v47  ;;  %1805 = vmatprep.subr.bf16.mxu0 %v1566_v7  ;;  %1998 = vmatprep.subr.bf16.mxu1 %v1568_v41  ;;  %v1567_v24 = vmax.bf16 %v6764_v23, %v1503_v63  ;;  %v1562_v62 = vmax.bf16 %v6764_v23, %v1498_v12  ;;  %v1004_v63 = vpop.permute.xlu0 %1003  ;;  %v6786_v7 = vld [vmem:[#allocation17_spill] sm:$0xff] }
 0x126   : > { %v5318_v17 = vpop.f32.mrf.mxu0  ;;  %v5324_v30 = vpop.f32.mrf.mxu1  ;;  %v916_v27 = vpack.c.bf16 %v5169_v25, %v5161_v21  ;;  %v1496_v31 = vadd.bf16 %v4391_v13, %v920_v34  ;;  %v1564_v10 = vmax.bf16 %v6764_v23, %v1500_v35  ;;  %v1048_v43 = vrot.slane %v1040_v53, %v5226_v4  ;;  %v6779_v21 = vld [vmem:[#allocation18_spill] sm:$0xff]  ;;  %v6780_v25 = vld [vmem:[#allocation20_spill] sm:$0xff] }
 0x127   : > { %6773 = vst [vmem:[#allocation34_spill] sm:$0xff] %v5318_v17  ;;  %6774 = vst [vmem:[#allocation35_spill] sm:$0xff] %v5324_v30  ;;  %v1036_v58 = vrot.slane %v1028_v29, %v5226_v4  ;;  %v910_v55 = vpack.c.bf16 %v6777_v60, %v6776_v49  ;;  %v913_v44 = vpack.c.bf16 %v6780_v25, %v6779_v21  ;;  %v6793_v49 = vld [vmem:[#allocation9_spill] sm:$0xff] }
 0x128   : > { %v5331_v36 = vpop.f32.mrf.mxu0  ;;  %1806 = vmatpush1.bf16.msra.mxu0 %v1565_v56  ;;  %v5338_v37 = vpop.f32.mrf.mxu1  ;;  %1999 = vmatpush1.bf16.msra.mxu1 %v1567_v24  ;;  %v915_v5 = vpack.c.bf16 %v6782_v52, %v6781_v51  ;;  %v1493_v50 = vadd.bf16 %v4391_v13, %v917_v54  ;;  %v1561_v40 = vmax.bf16 %v6764_v23, %v1497_v8 }
 0x129   : > { %6775 = vst [vmem:[#allocation36_spill] sm:$0xff] %v5331_v36  ;;  %6778 = vst [vmem:[#allocation12_spill] sm:$0xff] %v5338_v37  ;;  %1807 = vmatprep.subr.bf16.mxu0 %v1562_v62  ;;  %2000 = vmatprep.subr.bf16.mxu1 %v1564_v10  ;;  %v1490_v9 = vadd.bf16 %v4390_v15, %v914_v18  ;;  %v1495_v14 = vadd.bf16 %v4391_v13, %v919_v33  ;;  %v6788_v33 = vld [vmem:[#allocation4_spill] sm:$0xff] }
 0x12a   : > { %v5345_v48 = vpop.f32.mrf.mxu0  ;;  %v1563_v11 = vmax.bf16 %v6764_v23, %v1499_v20  ;;  %v5348_v0 = vpop.f32.mrf.mxu1  ;;  %v1558_v12 = vmax.bf16 %v6764_v23, %v1494_v61  ;;  %v912_v34 = vpack.c.bf16 %v6786_v7, %v6785_v28  ;;  %v1492_v35 = vadd.bf16 %v4390_v15, %v916_v27  ;;  %v6789_v61 = vld [vmem:[#allocation8_spill] sm:$0xff] }
 0x12b   : > { %6783 = vst [vmem:[#allocation16_spill] sm:$0xff] %v5345_v48  ;;  %6784 = vst [vmem:[#allocation18_spill] sm:$0xff] %v5348_v0  ;;  %v1560_v53 = vmax.bf16 %v6764_v23, %v1496_v31  ;;  %v4389_v54 = vcombine.low %v1036_v58, %v1048_v43  ;;  %v1024_v18 = vrot.slane %v1016_v59, %v5226_v4  ;;  %v6792_v58 = vld [vmem:[#allocation5_spill] sm:$0xff] }
 0x12c   : > { %v5353_v41 = vpop.f32.mrf.mxu0  ;;  %1808 = vmatpush1.bf16.msra.mxu0 %v1561_v40  ;;  %v1012_v13 = vrot.slane %v1004_v63, %v5226_v4  ;;  %v5358_v29 = vpop.f32.mrf.mxu1  ;;  %2001 = vmatpush1.bf16.msra.mxu1 %v1563_v11  ;;  %v906_v8 = vpack.c.bf16 %v6789_v61, %v6788_v33  ;;  %v1489_v56 = vadd.bf16 %v4390_v15, %v913_v44  ;;  %v6799_v11 = vld [vmem:[#allocation11_spill] sm:$0xff]  ;;  %v6802_v33 = vld [vmem:[#allocation6_spill] sm:$0xff] }
 0x12d   : > { %6787 = vst [vmem:[#allocation20_spill] sm:$0xff] %v5358_v29  ;;  %1809 = vmatprep.subr.bf16.mxu0 %v1558_v12  ;;  %v1557_v20 = vmax.bf16 %v6764_v23, %v1493_v50  ;;  %2002 = vmatprep.subr.bf16.mxu1 %v1560_v53  ;;  %v1486_v62 = vadd.bf16 %v4389_v54, %v910_v55  ;;  %v6796_v55 = vld [vmem:[#allocation10_spill] sm:$0xff] }
 0x12e   : > { %v5363_v24 = vpop.f32.mrf.mxu0  ;;  %v1491_v27 = vadd.bf16 %v4390_v15, %v915_v5  ;;  %v1559_v31 = vmax.bf16 %v6764_v23, %v1495_v14  ;;  %v5366_v10 = vpop.f32.mrf.mxu1  ;;  %v1554_v43 = vmax.bf16 %v6764_v23, %v1490_v9  ;;  %v908_v60 = vpack.c.bf16 %v6793_v49, %v6792_v58  ;;  %v6795_v15 = vld [vmem:[#allocation14_spill] sm:$0xff]  ;;  %v6798_v14 = vld [vmem:[#allocation15_spill] sm:$0xff] }
 0x12f   : > { %6790 = vst [vmem:[#allocation19_spill] sm:$0xff] %v5363_v24  ;;  %6791 = vst [vmem:[#allocation21_spill] sm:$0xff] %v5366_v10  ;;  %v1488_v21 = vadd.bf16 %v4389_v54, %v912_v34  ;;  %v1556_v44 = vmax.bf16 %v6764_v23, %v1492_v35  ;;  %v4388_v51 = vcombine.low %v1012_v13, %v1024_v18  ;;  %v6803_v61 = vld [vmem:[#allocation2_spill] sm:$0xff] }
 0x130   : > { %v5371_v25 = vpop.f32.mrf.mxu0  ;;  %1810 = vmatpush1.bf16.msra.mxu0 %v1557_v20  ;;  %v5374_v52 = vpop.f32.mrf.mxu1  ;;  %2003 = vmatpush1.bf16.msra.mxu1 %v1559_v31  ;;  %v6797_v5 = vpack.c.bf16 %v6795_v15, %v6796_v55  ;;  %v1553_v40 = vmax.bf16 %v6764_v23, %v1489_v56  ;;  %v6800_v12 = vpack.c.bf16 %v6798_v14, %v6799_v11 }
 0x131   : > { %6794 = vst [vmem:[#allocation13_spill] sm:$0xff] %v5374_v52  ;;  %1811 = vmatprep.subr.bf16.mxu0 %v1554_v43  ;;  %2004 = vmatprep.subr.bf16.mxu1 %v1556_v44  ;;  %v1482_v9 = vadd.bf16 %v4388_v51, %v906_v8  ;;  %v1555_v28 = vmax.bf16 %v6764_v23, %v1491_v27  ;;  %v6806_v27 = vld [vmem:[#allocation3_spill] sm:$0xff] }
 0x132   : > { %v1485_v50 = vadd.bf16 %v4389_v54, %v6797_v5  ;;  %v5380_v59 = vpop.f32.mrf.mxu0  ;;  %v1487_v63 = vadd.bf16 %v4389_v54, %v6800_v12  ;;  %v5386_v7 = vpop.f32.mrf.mxu1  ;;  %v1550_v34 = vmax.bf16 %v6764_v23, %v1486_v62  ;;  %v1484_v35 = vadd.bf16 %v4388_v51, %v908_v60  ;;  %v6805_v62 = vld [vmem:[#allocation7_spill] sm:$0xff] }
 0x133   : > { %6801 = vst [vmem:[#allocation17_spill] sm:$0xff] %v5386_v7  ;;  %v1552_v18 = vmax.bf16 %v6764_v23, %v1488_v21  ;;  %v6804_v8 = vpack.c.bf16 %v6802_v33, %v6803_v61  ;;  %v6807_v31 = vpack.c.bf16 %v6805_v62, %v6806_v27  ;;  %v1546_v60 = vmax.bf16 %v6764_v23, %v1482_v9 }
 0x134   : > { %v5389_v53 = vpop.f32.mrf.mxu0  ;;  %1812 = vmatpush1.bf16.msra.mxu0 %v1553_v40  ;;  %v5392_v13 = vpop.f32.mrf.mxu1  ;;  %2005 = vmatpush1.bf16.msra.mxu1 %v1555_v28  ;;  %v1549_v56 = vmax.bf16 %v6764_v23, %v1485_v50  ;;  %v1551_v58 = vmax.bf16 %v6764_v23, %v1487_v63  ;;  %v1548_v44 = vmax.bf16 %v6764_v23, %v1484_v35 }
 0x135   : > { %1813 = vmatprep.subr.bf16.mxu0 %v1550_v34  ;;  %v1481_v54 = vadd.bf16 %v4388_v51, %v6804_v8  ;;  %2006 = vmatprep.subr.bf16.mxu1 %v1552_v18  ;;  %v1483_v43 = vadd.bf16 %v4388_v51, %v6807_v31  ;;  %v1376_v63 = vpop.permute.xlu1 %1375  ;;  %v1364_v34 = vpop.permute.xlu0 %1363 }
 0x136   : > { %v5398_v20 = vpop.f32.mrf.mxu0  ;;  %v5404_v49 = vpop.f32.mrf.mxu1  ;;  %v1384_v46 = vrot.slane %v1376_v63, %v5226_v4  ;;  %v1372_v1 = vrot.slane %v1364_v34, %v5226_v4 }
 0x137   : > { %6808 = vst [vmem:[#allocation4_spill] sm:$0xff] %v5404_v49  ;;  %v1545_v55 = vmax.bf16 %v6764_v23, %v1481_v54  ;;  %v1547_v51 = vmax.bf16 %v6764_v23, %v1483_v43 }
 0x138   : > { %v5407_v21 = vpop.f32.mrf.mxu0  ;;  %1814 = vmatpush1.bf16.msra.mxu0 %v1549_v56  ;;  %v5410_v15 = vpop.f32.mrf.mxu1  ;;  %2007 = vmatpush1.bf16.msra.mxu1 %v1551_v58  ;;  %v4403_v47 = vcombine.low %v1372_v1, %v1384_v46 }
 0x139   : > { %1815 = vmatprep.subr.bf16.mxu0 %v1546_v60  ;;  %2008 = vmatprep.subr.bf16.mxu1 %v1548_v44  ;;  %v1352_v54 = vpop.permute.xlu1 %1351  ;;  %v1340_v62 = vpop.permute.xlu0 %1339 }
 0x13a   : > { %v5413_v5 = vpop.f32.mrf.mxu0  ;;  %v5416_v50 = vpop.f32.mrf.mxu1  ;;  %v1360_v17 = vrot.slane %v1352_v54, %v5226_v4  ;;  %v1348_v3 = vrot.slane %v1340_v62, %v5226_v4 }
 0x13c   : > { %v5418_v40 = vpop.f32.mrf.mxu0  ;;  %1816 = vmatpush1.bf16.msra.mxu0 %v1545_v55  ;;  %v5420_v9 = vpop.f32.mrf.mxu1  ;;  %2009 = vmatpush1.bf16.msra.mxu1 %v1547_v51  ;;  %v4402_v54 = vcombine.low %v1348_v3, %v1360_v17 }
 0x13d   : > { %v1328_v44 = vpop.permute.xlu1 %1327  ;;  %v1316_v51 = vpop.permute.xlu0 %1315 }
 0x13e   : > { %v5422_v14 = vpop.f32.mrf.mxu0  ;;  %v5424_v11 = vpop.f32.mrf.mxu1  ;;  %v1336_v19 = vrot.slane %v1328_v44, %v5226_v4  ;;  %v1324_v42 = vrot.slane %v1316_v51, %v5226_v4 }
 0x140   : > { %v5426_v12 = vpop.f32.mrf.mxu0  ;;  %v5428_v28 = vpop.f32.mrf.mxu1  ;;  %v4401_v52 = vcombine.low %v1324_v42, %v1336_v19 }
 0x141   : > { %v1304_v57 = vpop.permute.xlu1 %1303  ;;  %v1292_v30 = vpop.permute.xlu0 %1291  ;;  %v954_v42 = vpack.c.bf16 %v5426_v12, %v5418_v40 }
 0x142   : > { %v5430_v35 = vpop.f32.mrf.mxu0  ;;  %v5432_v18 = vpop.f32.mrf.mxu1  ;;  %v1312_v34 = vrot.slane %v1304_v57, %v5226_v4  ;;  %v1300_v24 = vrot.slane %v1292_v30, %v5226_v4 }
 0x144   : > { %v5434_v33 = vpop.f32.mrf.mxu0  ;;  %v5436_v61 = vpop.f32.mrf.mxu1 }
 0x145   : > { %v1280_v44 = vpop.permute.xlu1 %1279  ;;  %v1268_v49 = vpop.permute.xlu0 %1267 }
 0x146   : > { %v5438_v8 = vpop.f32.mrf.mxu0  ;;  %v5440_v56 = vpop.f32.mrf.mxu1  ;;  %v1288_v19 = vrot.slane %v1280_v44, %v5226_v4  ;;  %v1276_v40 = vrot.slane %v1268_v49, %v5226_v4  ;;  %v6812_v44 = vld [vmem:[#allocation13_spill] sm:$0xff] }
 0x148   : > { %v689_v27 = vpop.f32.mrf.mxu0  ;;  %v5442_v31 = vpop.f32.mrf.mxu1 }
 0x149   : > { %v958_v51 = vpack.c.bf16 %v689_v27, %v5434_v33 }
 0x14a   : > { %v693_v43 = vpop.f32.mrf.mxu0  ;;  %v886_v58 = vpop.f32.mrf.mxu1 }
 0x14b   : > { %v1534_v30 = vadd.bf16 %v4401_v52, %v958_v51 }
 0x14c   : > { %v695_v60 = vpop.f32.mrf.mxu0  ;;  %v888_v55 = vpop.f32.mrf.mxu1 }
 0x14e   : > { %v697_v38 = vpop.f32.mrf.mxu0  ;;  %v890_v45 = vpop.f32.mrf.mxu1 }
 0x14f   : > { %v961_v7 = vpack.c.bf16 %v697_v38, %v693_v43  ;;  %v957_v38 = vpack.c.bf16 %v5438_v8, %v5430_v35  ;;  %v950_v35 = vpack.c.bf16 %v5407_v21, %v5389_v53  ;;  %v952_v21 = vpack.c.bf16 %v5410_v15, %v5392_v13  ;;  %v6809_v43 = vld [vmem:[#allocation17_spill] sm:$0xff] }
 0x150   : > { %v699_v16 = vpop.f32.mrf.mxu0  ;;  %v892_v26 = vpop.f32.mrf.mxu1 }
 0x151   : > { %v962_v10 = vpack.c.bf16 %v699_v16, %v695_v60  ;;  %v964_v48 = vpack.c.bf16 %v892_v26, %v888_v55  ;;  %v4400_v60 = vcombine.low %v1300_v24, %v1312_v34  ;;  %v956_v24 = vpack.c.bf16 %v5428_v28, %v5420_v9 }
 0x152   : > { %v703_v22 = vpop.f32.mrf.mxu0  ;;  %v896_v32 = vpop.f32.mrf.mxu1  ;;  %v955_v9 = vpack.c.bf16 %v5424_v11, %v5416_v50  ;;  %v1533_v28 = vadd.bf16 %v4401_v52, %v957_v38  ;;  %v4399_v50 = vcombine.low %v1276_v40, %v1288_v19  ;;  %v6821_v40 = vld [vmem:[#allocation24_spill] sm:$0xff] }
 0x153   : > { %v1538_v16 = vadd.bf16 %v4402_v54, %v962_v10  ;;  %v1540_v26 = vadd.bf16 %v4402_v54, %v964_v48  ;;  %v1532_v27 = vadd.bf16 %v4400_v60, %v956_v24 }
 0x154   : > { %v705_v6 = vpop.f32.mrf.mxu0  ;;  %v898_v2 = vpop.f32.mrf.mxu1  ;;  %v1597_v13 = vmax.bf16 %v6764_v23, %v1533_v28  ;;  %v1526_v15 = vadd.bf16 %v4399_v50, %v950_v35  ;;  %v1531_v34 = vadd.bf16 %v4400_v60, %v955_v9 }
 0x155   : > { %v1602_v48 = vmax.bf16 %v6764_v23, %v1538_v16  ;;  %v6814_v16 = vld [vmem:[#allocation36_spill] sm:$0xff] }
 0x156   : > { %v707_v37 = vpop.f32.mrf.mxu0  ;;  %v900_v63 = vpop.f32.mrf.mxu1 }
 0x157   : > { %v965_v0 = vpack.c.bf16 %v707_v37, %v703_v22  ;;  %v967_v36 = vpack.c.bf16 %v900_v63, %v896_v32  ;;  %v963_v22 = vpack.c.bf16 %v890_v45, %v886_v58  ;;  %v960_v32 = vpack.c.bf16 %v5442_v31, %v5436_v61  ;;  %v6810_v58 = vld [vmem:[#allocation4_spill] sm:$0xff] }
 0x158   : > { %v709_v39 = vpop.f32.mrf.mxu0  ;;  %v902_v29 = vpop.f32.mrf.mxu1  ;;  %v959_v45 = vpack.c.bf16 %v5440_v56, %v5432_v18  ;;  %v953_v18 = vpack.c.bf16 %v5422_v14, %v5413_v5  ;;  %v1530_v61 = vadd.bf16 %v4400_v60, %v954_v42  ;;  %v1598_v56 = vmax.bf16 %v6764_v23, %v1534_v30 }
 0x159   : > { %v966_v62 = vpack.c.bf16 %v709_v39, %v705_v6  ;;  %v1541_v1 = vadd.bf16 %v4403_v47, %v965_v0  ;;  %v968_v46 = vpack.c.bf16 %v902_v29, %v898_v2  ;;  %v1543_v37 = vadd.bf16 %v4403_v47, %v967_v36  ;;  %v1256_v0 = vpop.permute.xlu1 %1255  ;;  %v1244_v29 = vpop.permute.xlu0 %1243 }
 0x15a   : > { %v1537_v6 = vadd.bf16 %v4402_v54, %v961_v7  ;;  %v1536_v10 = vadd.bf16 %v4401_v52, %v960_v32  ;;  %v1604_v7 = vmax.bf16 %v6764_v23, %v1540_v26  ;;  %v1264_v12 = vrot.slane %v1256_v0, %v5226_v4  ;;  %v6817_v26 = vld [vmem:[#allocation18_spill] sm:$0xff] }
 0x15b   : > { %v1542_v57 = vadd.bf16 %v4403_v47, %v966_v62  ;;  %v1544_v3 = vadd.bf16 %v4403_v47, %v968_v46  ;;  %v1605_v39 = vmax.bf16 %v6764_v23, %v1541_v1  ;;  %v1539_v47 = vadd.bf16 %v4402_v54, %v963_v22  ;;  %v6811_v62 = vld [vmem:[#allocation20_spill] sm:$0xff] }
 0x15c   : > { %v1607_v36 = vmax.bf16 %v6764_v23, %v1543_v37  ;;  %v1601_v33 = vmax.bf16 %v6764_v23, %v1537_v6  ;;  %v1535_v8 = vadd.bf16 %v4401_v52, %v959_v45  ;;  %v1252_v53 = vrot.slane %v1244_v29, %v5226_v4  ;;  %v6813_v22 = vld [vmem:[#allocation32_spill] sm:$0xff] }
 0x15d   : > { %v1606_v2 = vmax.bf16 %v6764_v23, %v1542_v57  ;;  %v1608_v17 = vmax.bf16 %v6764_v23, %v1544_v3  ;;  %v1603_v49 = vmax.bf16 %v6764_v23, %v1539_v47  ;;  %v1600_v5 = vmax.bf16 %v6764_v23, %v1536_v10  ;;  %v1232_v52 = vpop.permute.xlu1 %1231  ;;  %v1220_v11 = vpop.permute.xlu0 %1219  ;;  %v6815_v57 = vld [vmem:[#allocation16_spill] sm:$0xff]  ;;  %v6818_v3 = vld [vmem:[#allocation21_spill] sm:$0xff] }
 0x15e   : > { %v946_v14 = vpack.c.bf16 %v5371_v25, %v5353_v41  ;;  %v949_v31 = vpack.c.bf16 %v5398_v20, %v5380_v59  ;;  %v951_v55 = vpack.c.bf16 %v6810_v58, %v6809_v43  ;;  %v1529_v63 = vadd.bf16 %v4400_v60, %v953_v18  ;;  %v6816_v60 = vld [vmem:[#allocation19_spill] sm:$0xff]  ;;  %v6819_v47 = vld [vmem:[#allocation33_spill] sm:$0xff] }
 0x15f   : > { %1817 = vmatprep.subr.bf16.mxu0 %v1606_v2  ;;  %2010 = vmatprep.subr.bf16.mxu1 %v1608_v17  ;;  %v1599_v54 = vmax.bf16 %v6764_v23, %v1535_v8  ;;  %v1594_v41 = vmax.bf16 %v6764_v23, %v1530_v61  ;;  %v4398_v25 = vcombine.low %v1252_v53, %v1264_v12  ;;  %v6822_v12 = vld [vmem:[#allocation28_spill] sm:$0xff]  ;;  %v6828_v58 = vld [vmem:[#allocation35_spill] sm:$0xff] }
 0x160   : > { %1818 = vmatpush2.bf16.msra.mxu0 %v1605_v39  ;;  %2011 = vmatpush2.bf16.msra.mxu1 %v1607_v36  ;;  %v948_v51 = vpack.c.bf16 %v6812_v44, %v6811_v62  ;;  %v1528_v1 = vadd.bf16 %v4399_v50, %v952_v21  ;;  %v1596_v59 = vmax.bf16 %v6764_v23, %v1532_v27  ;;  %v6820_v36 = vld [vmem:[#allocation12_spill] sm:$0xff]  ;;  %v6832_v62 = vld [vmem:[#allocation22_spill] sm:$0xff] }
 0x161   : > { %1819 = vmatprep.subr.bf16.mxu0 %v1602_v48  ;;  %2012 = vmatprep.subr.bf16.mxu1 %v1604_v7  ;;  %v1240_v20 = vrot.slane %v1232_v52, %v5226_v4  ;;  %v1228_v46 = vrot.slane %v1220_v11, %v5226_v4  ;;  %v942_v37 = vpack.c.bf16 %v6814_v16, %v6813_v22  ;;  %v1208_v17 = vpop.permute.xlu1 %1207  ;;  %v1196_v30 = vpop.permute.xlu0 %1195 }
 0x162   : > { %v945_v32 = vpack.c.bf16 %v6816_v60, %v6815_v57  ;;  %v947_v19 = vpack.c.bf16 %v6818_v3, %v6817_v26  ;;  %v1525_v42 = vadd.bf16 %v4399_v50, %v949_v31  ;;  %v1593_v38 = vmax.bf16 %v6764_v23, %v1529_v63  ;;  %v4532_v26 = vld [vmem:[%s6658_s3] ss:$8 sps:$4 sm:$0xff]   ;;  %v4535_v3 = vld [vmem:[%s6658_s3 + $0x14] ss:$8 sps:$4 sm:$0xff]  }
 0x163   : > { %v1522_v2 = vadd.bf16 %v4398_v25, %v946_v14  ;;  %v1527_v45 = vadd.bf16 %v4399_v50, %v951_v55  ;;  %v1595_v6 = vmax.bf16 %v6764_v23, %v1531_v34  ;;  %v1590_v39 = vmax.bf16 %v6764_v23, %v1526_v15  ;;  %v6825_v50 = vld [vmem:[#allocation34_spill] sm:$0xff]  ;;  %v6829_v55 = vld [vmem:[#allocation31_spill] sm:$0xff] }
 0x164   : > { %1820 = vmatpush2.bf16.msra.mxu0 %v1601_v33  ;;  %2013 = vmatpush2.bf16.msra.mxu1 %v1603_v49  ;;  %v944_v48 = vpack.c.bf16 %v6820_v36, %v6819_v47  ;;  %v1524_v0 = vadd.bf16 %v4398_v25, %v948_v51  ;;  %v1592_v29 = vmax.bf16 %v6764_v23, %v1528_v1  ;;  %v6823_v49 = vld [vmem:[#allocation25_spill] sm:$0xff]  ;;  %v6826_v14 = vld [vmem:[#allocation30_spill] sm:$0xff] }
 0x165   : > { %1821 = vmatprep.subr.bf16.mxu0 %v1598_v56  ;;  %2014 = vmatprep.subr.bf16.mxu1 %v1600_v5  ;;  %v4397_v24 = vcombine.low %v1228_v46, %v1240_v20  ;;  %v1216_v10 = vrot.slane %v1208_v17, %v5226_v4  ;;  %v1204_v7 = vrot.slane %v1196_v30, %v5226_v4  ;;  %v6824_v56 = vld [vmem:[#allocation29_spill] sm:$0xff]  ;;  %v6835_v20 = vld [vmem:[#allocation23_spill] sm:$0xff] }
 0x166   : > { %v938_v35 = vpack.c.bf16 %v6822_v12, %v6821_v40  ;;  %v1521_v18 = vadd.bf16 %v4398_v25, %v945_v32  ;;  %v1589_v9 = vmax.bf16 %v6764_v23, %v1525_v42  ;;  %v1523_v33 = vadd.bf16 %v4398_v25, %v947_v19  ;;  %v6831_v25 = vld [vmem:[#allocation26_spill] sm:$0xff]  ;;  %v4537_v19 = vld [vmem:[%s6658_s3 + $0x10] ss:$8 sps:$4 sm:$0xff]   ;;  %v4547_v17 = vld [vmem:[%s6658_s3 + $0x54] ss:$8 sps:$4 sm:$0xff]  }
 0x167   : > { %v1518_v28 = vadd.bf16 %v4397_v24, %v942_v37  ;;  %v1591_v61 = vmax.bf16 %v6764_v23, %v1527_v45  ;;  %v1586_v8 = vmax.bf16 %v6764_v23, %v1522_v2  ;;  %v940_v53 = vpack.c.bf16 %v6824_v56, %v6823_v49  ;;  %v4538_v42 = vld [vmem:[%s6658_s3 + $0x24] ss:$8 sps:$4 sm:$0xff]   ;;  %v4541_v2 = vld [vmem:[%s6658_s3 + $0x34] ss:$8 sps:$4 sm:$0xff]   ;;  %v4543_v45 = vld [vmem:[%s6658_s3 + $0x30] ss:$8 sps:$4 sm:$0xff]  }
 0x168   : > { %1822 = vmatpush2.bf16.msra.mxu0 %v1597_v13  ;;  %2015 = vmatpush2.bf16.msra.mxu1 %v1599_v54  ;;  %v1520_v21 = vadd.bf16 %v4397_v24, %v944_v48  ;;  %v1588_v27 = vmax.bf16 %v6764_v23, %v1524_v0  ;;  %v4396_v5 = vcombine.low %v1204_v7, %v1216_v10  ;;  %v4549_v30 = vld [vmem:[%s6658_s3 + $0x50] ss:$8 sps:$4 sm:$0xff]   ;;  %v4550_v47 = vld [vmem:[%s6658_s3 + $0x64] ss:$8 sps:$4 sm:$0xff]   ;;  %v4552_v36 = vld [vmem:[%s6658_s3 + $0x60] ss:$8 sps:$4 sm:$0xff]  }
 0x169   : > { %1823 = vmatprep.subr.bf16.mxu0 %v1594_v41  ;;  %2016 = vmatprep.subr.bf16.mxu1 %v1596_v59  ;;  %v6827_v52 = vpack.c.bf16 %v6825_v50, %v6826_v14  ;;  %v1585_v31 = vmax.bf16 %v6764_v23, %v1521_v18  ;;  %v6830_v63 = vpack.c.bf16 %v6828_v58, %v6829_v55  ;;  %v6834_v59 = vld [vmem:[#allocation27_spill] sm:$0xff]  ;;  %v4553_v48 = vld [vmem:[%s6658_s3 + $0x74] ss:$8 sps:$4 sm:$0xff]   ;;  %v4555_v0 = vld [vmem:[%s6658_s3 + $0x70] ss:$8 sps:$4 sm:$0xff]  }
 0x16a   : > { %v1514_v43 = vadd.bf16 %v4396_v5, %v938_v35  ;;  %v1587_v15 = vmax.bf16 %v6764_v23, %v1523_v33  ;;  %v1582_v34 = vmax.bf16 %v6764_v23, %v1518_v28  ;;  %v1516_v54 = vadd.bf16 %v4396_v5, %v940_v53  ;;  %v4559_v10 = vld [vmem:[%s6658_s3 + $0x94] ss:$8 sps:$4 sm:$0xff]   ;;  %v4561_v7 = vld [vmem:[%s6658_s3 + $0x90] ss:$8 sps:$4 sm:$0xff]   ;;  %v4562_v40 = vld [vmem:[%s6658_s3 + $0xa4] ss:$8 sps:$4 sm:$0xff]  }
 0x16b   : > { %v1517_v11 = vadd.bf16 %v4397_v24, %v6827_v52  ;;  %v1519_v13 = vadd.bf16 %v4397_v24, %v6830_v63  ;;  %v1584_v41 = vmax.bf16 %v6764_v23, %v1520_v21  ;;  %v6833_v44 = vpack.c.bf16 %v6831_v25, %v6832_v62  ;;  %v4558_v24 = vld [vmem:[%s6658_s3 + $0x80] ss:$8 sps:$4 sm:$0xff]   ;;  %v4565_v35 = vld [vmem:[%s6658_s3 + $0xb4] ss:$8 sps:$4 sm:$0xff]   ;;  %v4567_v18 = vld [vmem:[%s6658_s3 + $0xb0] ss:$8 sps:$4 sm:$0xff]  }
 0x16c   : > { %1824 = vmatpush2.bf16.msra.mxu0 %v1593_v38  ;;  %2017 = vmatpush2.bf16.msra.mxu1 %v1595_v6  ;;  %v6836_v46 = vpack.c.bf16 %v6834_v59, %v6835_v20  ;;  %v1578_v37 = vmax.bf16 %v6764_v23, %v1514_v43  ;;  %v1580_v57 = vmax.bf16 %v6764_v23, %v1516_v54  ;;  %v4540_v38 = vld [vmem:[%s6658_s3 + $0x20] ss:$8 sps:$4 sm:$0xff]   ;;  %v4544_v6 = vld [vmem:[%s6658_s3 + $0x44] ss:$8 sps:$4 sm:$0xff]   ;;  %v4573_v33 = vld [vmem:[%s6658_s3 + $0xd4] ss:$8 sps:$4 sm:$0xff]  }
 0x16d   : > { %1825 = vmatprep.subr.bf16.mxu0 %v1590_v39  ;;  %2018 = vmatprep.subr.bf16.mxu1 %v1592_v29  ;;  %v1513_v51 = vadd.bf16 %v4396_v5, %v6833_v44  ;;  %v1581_v1 = vmax.bf16 %v6764_v23, %v1517_v11  ;;  %v1583_v16 = vmax.bf16 %v6764_v23, %v1519_v13  ;;  %v4546_v39 = vld [vmem:[%s6658_s3 + $0x40] ss:$8 sps:$4 sm:$0xff]   ;;  %v4556_v29 = vld [vmem:[%s6658_s3 + $0x84] ss:$8 sps:$4 sm:$0xff]   ;;  %v4579_v56 = vld [vmem:[%s6658_s3 + $0xf4] ss:$8 sps:$4 sm:$0xff]  }
 0x16e   : > { %v1515_v22 = vadd.bf16 %v4396_v5, %v6836_v46  ;;  %v4564_v12 = vld [vmem:[%s6658_s3 + $0xa0] ss:$8 sps:$4 sm:$0xff]   ;;  %v4577_v53 = vld [vmem:[%s6658_s3 + $0xf0] ss:$8 sps:$4 sm:$0xff]  }
 0x16f   : > { %v1577_v60 = vmax.bf16 %v6764_v23, %v1513_v51  ;;  %v4568_v28 = vld [vmem:[%s6658_s3 + $0xc0] ss:$8 sps:$4 sm:$0xff]  }
 0x170   : > { %1826 = vmatpush2.bf16.msra.mxu0 %v1589_v9  ;;  %2019 = vmatpush2.bf16.msra.mxu1 %v1591_v61  ;;  %v1579_v32 = vmax.bf16 %v6764_v23, %v1515_v22  ;;  %v4570_v9 = vld [vmem:[%s6658_s3 + $0xc4] ss:$8 sps:$4 sm:$0xff]   ;;  %v4571_v61 = vld [vmem:[%s6658_s3 + $0xd0] ss:$8 sps:$4 sm:$0xff]   ;;  %v4574_v49 = vld [vmem:[%s6658_s3 + $0xe0] ss:$8 sps:$4 sm:$0xff]  }
 0x171   : > { %1827 = vmatprep.subr.bf16.mxu0 %v1586_v8  ;;  %2020 = vmatprep.subr.bf16.mxu1 %v1588_v27  ;;  %v4576_v8 = vld [vmem:[%s6658_s3 + $0xe4] ss:$8 sps:$4 sm:$0xff]  }
 0x174   : > { %1828 = vmatpush2.bf16.msra.mxu0 %v1585_v31  ;;  %2021 = vmatpush2.bf16.msra.mxu1 %v1587_v15 }
 0x175   : > { %1829 = vmatprep.subr.bf16.mxu0 %v1582_v34  ;;  %2022 = vmatprep.subr.bf16.mxu1 %v1584_v41 }
 0x178   : > { %1830 = vmatpush2.bf16.msra.mxu0 %v1581_v1  ;;  %2023 = vmatpush2.bf16.msra.mxu1 %v1583_v16 }
 0x179   : > { %1831 = vmatprep.subr.bf16.mxu0 %v1578_v37  ;;  %2024 = vmatprep.subr.bf16.mxu1 %v1580_v57 }
 0x17c   : > { %1832 = vmatpush2.bf16.msra.mxu0 %v1577_v60  ;;  %2025 = vmatpush2.bf16.msra.mxu1 %v1579_v32 }
 0x17f   : > { %1834 = vmatmul.mubr.bf16.vlgmr.msra.gmra.mxu0 %v4532_v26  ;;  %2027 = vmatmul.mubr.bf16.vlgmr.msra.gmra.mxu1 %v4532_v26  ;;  %v2466_v26 = vpop.permute.xlu1 %2465 }
 0x180   : > { %1843 = vmatprep.mubr.bf16.mxu0 %v4535_v3  ;;  %2036 = vmatprep.mubr.bf16.mxu1 %v4535_v3 }
 0x187   : > { %1844 = vmatmul.mubr.bf16.gmra.mxu0 %v4537_v19  ;;  %2037 = vmatmul.mubr.bf16.gmra.mxu1 %v4537_v19  ;;  %v2454_v19 = vpop.permute.xlu0 %2453 }
 0x188   : > { %1853 = vmatprep.mubr.bf16.mxu0 %v4538_v42  ;;  %2046 = vmatprep.mubr.bf16.mxu1 %v4538_v42 }
 0x18f   : > { %1854 = vmatmul.mubr.bf16.gmra.mxu0 %v4540_v38  ;;  %2047 = vmatmul.mubr.bf16.gmra.mxu1 %v4540_v38 }
 0x190   : > { %1863 = vmatprep.mubr.bf16.mxu0 %v4541_v2  ;;  %2056 = vmatprep.mubr.bf16.mxu1 %v4541_v2 }
 0x197   : > { %1864 = vmatmul.mubr.bf16.gmra.mxu0 %v4543_v45  ;;  %2057 = vmatmul.mubr.bf16.gmra.mxu1 %v4543_v45 }
 0x198   : > { %1873 = vmatprep.mubr.bf16.mxu0 %v4544_v6  ;;  %2066 = vmatprep.mubr.bf16.mxu1 %v4544_v6 }
 0x19f   : > { %1874 = vmatmul.mubr.bf16.gmra.mxu0 %v4546_v39  ;;  %2067 = vmatmul.mubr.bf16.gmra.mxu1 %v4546_v39  ;;  %v2442_v39 = vpop.permute.xlu1 %2441 }
 0x1a0   : > { %1883 = vmatprep.mubr.bf16.mxu0 %v4547_v17  ;;  %2076 = vmatprep.mubr.bf16.mxu1 %v4547_v17 }
 0x1a7   : > { %1884 = vmatmul.mubr.bf16.gmra.mxu0 %v4549_v30  ;;  %2077 = vmatmul.mubr.bf16.gmra.mxu1 %v4549_v30  ;;  %v2430_v30 = vpop.permute.xlu0 %2429 }
 0x1a8   : > { %1893 = vmatprep.mubr.bf16.mxu0 %v4550_v47  ;;  %2086 = vmatprep.mubr.bf16.mxu1 %v4550_v47 }
 0x1af   : > { %1894 = vmatmul.mubr.bf16.gmra.mxu0 %v4552_v36  ;;  %2087 = vmatmul.mubr.bf16.gmra.mxu1 %v4552_v36 }
 0x1b0   : > { %1903 = vmatprep.mubr.bf16.mxu0 %v4553_v48  ;;  %2096 = vmatprep.mubr.bf16.mxu1 %v4553_v48  ;;  %v4582_v48 = vld [vmem:[%s6660_s5 + $0x4] ss:$8 sps:$4 sm:$0xff]  }
 0x1b7   : > { %1904 = vmatmul.mubr.bf16.gmra.mxu0 %v4555_v0  ;;  %2097 = vmatmul.mubr.bf16.gmra.mxu1 %v4555_v0 }
 0x1b8   : > { %1913 = vmatprep.mubr.bf16.mxu0 %v4556_v29  ;;  %2106 = vmatprep.mubr.bf16.mxu1 %v4556_v29 }
 0x1bf   : > { %1914 = vmatmul.mubr.bf16.gmra.mxu0 %v4558_v24  ;;  %2107 = vmatmul.mubr.bf16.gmra.mxu1 %v4558_v24 }
 0x1c0   : > { %1923 = vmatprep.mubr.bf16.mxu0 %v4559_v10  ;;  %2116 = vmatprep.mubr.bf16.mxu1 %v4559_v10  ;;  %v2418_v10 = vpop.permute.xlu1 %2417 }
 0x1c7   : > { %1924 = vmatmul.mubr.bf16.gmra.mxu0 %v4561_v7  ;;  %2117 = vmatmul.mubr.bf16.gmra.mxu1 %v4561_v7 }
 0x1c8   : > { %1933 = vmatprep.mubr.bf16.mxu0 %v4562_v40  ;;  %2126 = vmatprep.mubr.bf16.mxu1 %v4562_v40  ;;  %v2406_v40 = vpop.permute.xlu0 %2405 }
 0x1cf   : > { %1934 = vmatmul.mubr.bf16.gmra.mxu0 %v4564_v12  ;;  %2127 = vmatmul.mubr.bf16.gmra.mxu1 %v4564_v12 }
 0x1d0   : > { %1943 = vmatprep.mubr.bf16.mxu0 %v4565_v35  ;;  %2136 = vmatprep.mubr.bf16.mxu1 %v4565_v35 }
 0x1d7   : > { %1944 = vmatmul.mubr.bf16.gmra.mxu0 %v4567_v18  ;;  %2137 = vmatmul.mubr.bf16.gmra.mxu1 %v4567_v18 }
 0x1d8   : > { %1953 = vmatprep.mubr.bf16.mxu0 %v4570_v9  ;;  %2146 = vmatprep.mubr.bf16.mxu1 %v4570_v9 }
 0x1df   : > { %1954 = vmatmul.mubr.bf16.gmra.mxu0 %v4568_v28  ;;  %2147 = vmatmul.mubr.bf16.gmra.mxu1 %v4568_v28 }
 0x1e0   : > { %1963 = vmatprep.mubr.bf16.mxu0 %v4573_v33  ;;  %2156 = vmatprep.mubr.bf16.mxu1 %v4573_v33  ;;  %v2394_v33 = vpop.permute.xlu1 %2393 }
 0x1e4   : > { %v2370_v52 = vpop.permute.xlu1 %2369 }
 0x1e7   : > { %1964 = vmatmul.mubr.bf16.gmra.mxu0 %v4571_v61  ;;  %2157 = vmatmul.mubr.bf16.gmra.mxu1 %v4571_v61 }
 0x1e8   : > { %1973 = vmatprep.mubr.bf16.mxu0 %v4576_v8  ;;  %2166 = vmatprep.mubr.bf16.mxu1 %v4576_v8  ;;  %v2382_v8 = vpop.permute.xlu0 %2381 }
 0x1ec   : > { %v2358_v54 = vpop.permute.xlu0 %2357 }
 0x1ef   : > { %1974 = vmatmul.mubr.bf16.gmra.mxu0 %v4574_v49  ;;  %2167 = vmatmul.mubr.bf16.gmra.mxu1 %v4574_v49 }
 0x1f0   : > { %1983 = vmatprep.mubr.bf16.mxu0 %v4579_v56  ;;  %2176 = vmatprep.mubr.bf16.mxu1 %v4579_v56 }
 0x1f7   : > { %1984 = vmatmul.mubr.bf16.gmra.mxu0 %v4577_v53  ;;  %2177 = vmatmul.mubr.bf16.gmra.mxu1 %v4577_v53 }
 0x1f8   : > { %3115 = vmatprep.mubr.bf16.mxu0 %v4582_v48  ;;  %3308 = vmatprep.mubr.bf16.mxu1 %v4582_v48 }
 0x23f   : > { %v5636_v21 = vpop.f32.mrf.mxu0  ;;  %v5638_v27 = vpop.f32.mrf.mxu1 }
 0x240   : > { %6837 = vst [vmem:[#allocation8_spill] sm:$0xff] %v5636_v21  ;;  %6838 = vst [vmem:[#allocation5_spill] sm:$0xff] %v5638_v27 }
 0x241   : > { %v5640_v5 = vpop.f32.mrf.mxu0  ;;  %v5642_v50 = vpop.f32.mrf.mxu1 }
 0x242   : > { %6839 = vst [vmem:[#allocation9_spill] sm:$0xff] %v5640_v5  ;;  %6840 = vst [vmem:[#allocation14_spill] sm:$0xff] %v5642_v50  ;;  %v2346_v50 = vpop.permute.xlu1 %2345  ;;  %v2426_v5 = vrot.slane %v2418_v10, %v5226_v4 }
 0x243   : > { %v5644_v14 = vpop.f32.mrf.mxu0  ;;  %v5648_v11 = vpop.f32.mrf.mxu1 }
 0x244   : > { %6841 = vst [vmem:[#allocation10_spill] sm:$0xff] %v5644_v14  ;;  %6842 = vst [vmem:[#allocation15_spill] sm:$0xff] %v5648_v11 }
 0x245   : > { %v5652_v43 = vpop.f32.mrf.mxu0  ;;  %v5654_v58 = vpop.f32.mrf.mxu1 }
 0x246   : > { %6843 = vst [vmem:[#allocation11_spill] sm:$0xff] %v5652_v43  ;;  %6844 = vst [vmem:[#allocation6_spill] sm:$0xff] %v5654_v58  ;;  %v2438_v58 = vrot.slane %v2430_v30, %v5226_v4 }
 0x247   : > { %v5656_v55 = vpop.f32.mrf.mxu0  ;;  %v5658_v63 = vpop.f32.mrf.mxu1 }
 0x248   : > { %6845 = vst [vmem:[#allocation2_spill] sm:$0xff] %v5656_v55  ;;  %6846 = vst [vmem:[#allocation7_spill] sm:$0xff] %v5658_v63  ;;  %v2462_v55 = vrot.slane %v2454_v19, %v5226_v4  ;;  %v2366_v19 = vrot.slane %v2358_v54, %v5226_v4 }
 0x249   : > { %v5660_v13 = vpop.f32.mrf.mxu0  ;;  %v5662_v15 = vpop.f32.mrf.mxu1 }
 0x24a   : > { %6847 = vst [vmem:[#allocation3_spill] sm:$0xff] %v5660_v13  ;;  %6848 = vst [vmem:[#allocation17_spill] sm:$0xff] %v5662_v15  ;;  %v2402_v15 = vrot.slane %v2394_v33, %v5226_v4 }
 0x24b   : > { %v5664_v34 = vpop.f32.mrf.mxu0  ;;  %v5668_v41 = vpop.f32.mrf.mxu1 }
 0x24c   : > { %6849 = vst [vmem:[#allocation4_spill] sm:$0xff] %v5664_v34  ;;  %6850 = vst [vmem:[#allocation20_spill] sm:$0xff] %v5668_v41  ;;  %v2474_v41 = vrot.slane %v2466_v26, %v5226_v4  ;;  %v2450_v34 = vrot.slane %v2442_v39, %v5226_v4  ;;  %v2378_v26 = vrot.slane %v2370_v52, %v5226_v4 }
 0x24d   : > { %v5672_v62 = vpop.f32.mrf.mxu0  ;;  %v5674_v44 = vpop.f32.mrf.mxu1  ;;  %v2354_v39 = vrot.slane %v2346_v50, %v5226_v4 }
 0x24e   : > { %6851 = vst [vmem:[#allocation13_spill] sm:$0xff] %v5672_v62  ;;  %6852 = vst [vmem:[#allocation32_spill] sm:$0xff] %v5674_v44  ;;  %v2414_v44 = vrot.slane %v2406_v40, %v5226_v4  ;;  %v4443_v13 = vcombine.low %v2462_v55, %v2474_v41  ;;  %v5761_v52 = vcombine.low %v2366_v19, %v2378_v26 }
 0x24f   : > { %v5676_v51 = vpop.f32.mrf.mxu0  ;;  %v5678_v1 = vpop.f32.mrf.mxu1 }
 0x250   : > { %6853 = vst [vmem:[#allocation36_spill] sm:$0xff] %v5676_v51  ;;  %6854 = vst [vmem:[#allocation16_spill] sm:$0xff] %v5678_v1  ;;  %v2334_v1 = vpop.permute.xlu0 %2333  ;;  %v4441_v33 = vcombine.low %v2414_v44, %v2426_v5 }
 0x251   : > { %v5680_v59 = vpop.f32.mrf.mxu0  ;;  %v5682_v20 = vpop.f32.mrf.mxu1  ;;  %v2342_v30 = vrot.slane %v2334_v1, %v5226_v4 }
 0x252   : > { %6855 = vst [vmem:[#allocation19_spill] sm:$0xff] %v5682_v20  ;;  %v4442_v20 = vcombine.low %v2438_v58, %v2450_v34 }
 0x253   : > { %v5684_v46 = vpop.f32.mrf.mxu0  ;;  %v5686_v22 = vpop.f32.mrf.mxu1  ;;  %v5763_v54 = vcombine.low %v2342_v30, %v2354_v39 }
 0x254   : > { %6856 = vst [vmem:[#allocation18_spill] sm:$0xff] %v5684_v46  ;;  %6857 = vst [vmem:[#allocation21_spill] sm:$0xff] %v5686_v22  ;;  %v2390_v22 = vrot.slane %v2382_v8, %v5226_v4 }
 0x255   : > { %v5688_v16 = vpop.f32.mrf.mxu0  ;;  %v5690_v37 = vpop.f32.mrf.mxu1 }
 0x256   : > { %6858 = vst [vmem:[#allocation33_spill] sm:$0xff] %v5690_v37 }
 0x257   : > { %v5692_v57 = vpop.f32.mrf.mxu0  ;;  %v5694_v60 = vpop.f32.mrf.mxu1 }
 0x258   : > { %6859 = vst [vmem:[#allocation12_spill] sm:$0xff] %v5692_v57  ;;  %6860 = vst [vmem:[#allocation24_spill] sm:$0xff] %v5694_v60 }
 0x259   : > { %v5696_v32 = vpop.f32.mrf.mxu0  ;;  %v5698_v3 = vpop.f32.mrf.mxu1 }
 0x25b   : > { %v5700_v42 = vpop.f32.mrf.mxu0  ;;  %v5702_v38 = vpop.f32.mrf.mxu1 }
 0x25c   : > { %6861 = vst [vmem:[#allocation28_spill] sm:$0xff] %v5700_v42  ;;  %6862 = vst [vmem:[#allocation25_spill] sm:$0xff] %v5702_v38  ;;  %v5759_v42 = vcombine.low %v2390_v22, %v2402_v15 }
 0x25d   : > { %v5704_v2 = vpop.f32.mrf.mxu0  ;;  %v5706_v45 = vpop.f32.mrf.mxu1 }
 0x25f   : > { %v5708_v6 = vpop.f32.mrf.mxu0  ;;  %v5710_v17 = vpop.f32.mrf.mxu1 }
 0x261   : > { %v5712_v47 = vpop.f32.mrf.mxu0  ;;  %v5714_v36 = vpop.f32.mrf.mxu1 }
 0x263   : > { %v5719_v0 = vpop.f32.mrf.mxu0  ;;  %v5721_v29 = vpop.f32.mrf.mxu1 }
 0x265   : > { %v5723_v24 = vpop.f32.mrf.mxu0  ;;  %v5725_v7 = vpop.f32.mrf.mxu1 }
 0x266   : > { %v2204_v34 = vpack.c.bf16 %v5723_v24, %v5712_v47  ;;  %v2206_v44 = vpack.c.bf16 %v5725_v7, %v5714_v36 }
 0x267   : > { %v5727_v12 = vpop.f32.mrf.mxu0  ;;  %v5729_v35 = vpop.f32.mrf.mxu1 }
 0x269   : > { %v5731_v18 = vpop.f32.mrf.mxu0  ;;  %v5733_v9 = vpop.f32.mrf.mxu1 }
 0x26b   : > { %v5735_v28 = vpop.f32.mrf.mxu0  ;;  %v5737_v61 = vpop.f32.mrf.mxu1 }
 0x26d   : > { %v5739_v49 = vpop.f32.mrf.mxu0  ;;  %v5741_v56 = vpop.f32.mrf.mxu1 }
 0x26e   : > { %v2208_v1 = vpack.c.bf16 %v5739_v49, %v5731_v18  ;;  %v2210_v41 = vpack.c.bf16 %v5741_v56, %v5733_v9 }
 0x26f   : > { %v5743_v53 = vpop.f32.mrf.mxu0  ;;  %v5745_v48 = vpop.f32.mrf.mxu1 }
 0x271   : > { %v1897_v31 = vpop.f32.mrf.mxu0  ;;  %v2090_v25 = vpop.f32.mrf.mxu1 }
 0x273   : > { %v1899_v27 = vpop.f32.mrf.mxu0  ;;  %v2092_v11 = vpop.f32.mrf.mxu1 }
 0x274   : > { %v2213_v5 = vpack.c.bf16 %v2092_v11, %v5745_v48  ;;  %v2207_v11 = vpack.c.bf16 %v5735_v28, %v5727_v12  ;;  %v2200_v28 = vpack.c.bf16 %v5704_v2, %v5696_v32  ;;  %v2322_v2 = vpop.permute.xlu1 %2321 }
 0x275   : > { %v1901_v21 = vpop.f32.mrf.mxu0  ;;  %v2094_v14 = vpop.f32.mrf.mxu1 }
 0x276   : > { %v2212_v10 = vpack.c.bf16 %v1901_v21, %v1897_v31  ;;  %v2214_v38 = vpack.c.bf16 %v2094_v14, %v2090_v25  ;;  %v2211_v21 = vpack.c.bf16 %v1899_v27, %v5743_v53  ;;  %v2789_v47 = vadd.bf16 %v4442_v20, %v2213_v5 }
 0x277   : > { %v1905_v63 = vpop.f32.mrf.mxu0  ;;  %v2098_v43 = vpop.f32.mrf.mxu1  ;;  %v2205_v53 = vpack.c.bf16 %v5721_v29, %v5710_v17  ;;  %v2783_v48 = vadd.bf16 %v4441_v33, %v2207_v11  ;;  %v2330_v17 = vrot.slane %v2322_v2, %v5226_v4 }
 0x278   : > { %v2788_v14 = vadd.bf16 %v4442_v20, %v2212_v10  ;;  %v2790_v25 = vadd.bf16 %v4442_v20, %v2214_v38  ;;  %v2853_v39 = vmax.bf16 %v6764_v23, %v2789_v47  ;;  %v2310_v29 = vpop.permute.xlu0 %2309  ;;  %v6884_v47 = vld [vmem:[#allocation3_spill] sm:$0xff] }
 0x279   : > { %v1907_v46 = vpop.f32.mrf.mxu0  ;;  %v2100_v51 = vpop.f32.mrf.mxu1 }
 0x27a   : > { %v2852_v12 = vmax.bf16 %v6764_v23, %v2788_v14 }
 0x27b   : > { %v1909_v62 = vpop.f32.mrf.mxu0  ;;  %v2102_v40 = vpop.f32.mrf.mxu1 }
 0x27c   : > { %v2215_v37 = vpack.c.bf16 %v1909_v62, %v1905_v63  ;;  %v2217_v8 = vpack.c.bf16 %v2102_v40, %v2098_v43  ;;  %v2202_v40 = vpack.c.bf16 %v5706_v45, %v5698_v3  ;;  %v6877_v3 = vld [vmem:[#allocation24_spill] sm:$0xff]  ;;  %v6878_v45 = vld [vmem:[#allocation25_spill] sm:$0xff] }
 0x27d   : > { %v1911_v60 = vpop.f32.mrf.mxu0  ;;  %v2104_v57 = vpop.f32.mrf.mxu1 }
 0x27e   : > { %v2216_v50 = vpack.c.bf16 %v1911_v60, %v1907_v46  ;;  %v2791_v31 = vadd.bf16 %v4443_v13, %v2215_v37  ;;  %v2218_v55 = vpack.c.bf16 %v2104_v57, %v2100_v51  ;;  %v2793_v43 = vadd.bf16 %v4443_v13, %v2217_v8 }
 0x27f   : > { %v5768_v58 = vpop.f32.mrf.mxu0  ;;  %v5771_v15 = vpop.f32.mrf.mxu1  ;;  %v2209_v51 = vpack.c.bf16 %v5737_v61, %v5729_v35  ;;  %v2784_v37 = vadd.bf16 %v4441_v33, %v2208_v1  ;;  %v2787_v57 = vadd.bf16 %v4442_v20, %v2211_v21  ;;  %v2786_v35 = vadd.bf16 %v4441_v33, %v2210_v41 }
 0x280   : > { %6863 = vst [vmem:[#allocation29_spill] sm:$0xff] %v5768_v58  ;;  %v2792_v63 = vadd.bf16 %v4443_v13, %v2216_v50  ;;  %6864 = vst [vmem:[#allocation34_spill] sm:$0xff] %v5771_v15  ;;  %v2794_v62 = vadd.bf16 %v4443_v13, %v2218_v55  ;;  %v2855_v60 = vmax.bf16 %v6764_v23, %v2791_v31  ;;  %v6874_v31 = vld [vmem:[#allocation12_spill] sm:$0xff] }
 0x281   : > { %v5777_v27 = vpop.f32.mrf.mxu0  ;;  %v5785_v46 = vpop.f32.mrf.mxu1  ;;  %v2857_v36 = vmax.bf16 %v6764_v23, %v2793_v43  ;;  %v2854_v20 = vmax.bf16 %v6764_v23, %v2790_v25  ;;  %v2203_v61 = vpack.c.bf16 %v5719_v0, %v5708_v6  ;;  %v2851_v26 = vmax.bf16 %v6764_v23, %v2787_v57  ;;  %v6875_v55 = vld [vmem:[#allocation28_spill] sm:$0xff] }
 0x282   : > { %6865 = vst [vmem:[#allocation30_spill] sm:$0xff] %v5777_v27  ;;  %6866 = vst [vmem:[#allocation35_spill] sm:$0xff] %v5785_v46  ;;  %v2856_v22 = vmax.bf16 %v6764_v23, %v2792_v63  ;;  %v2858_v38 = vmax.bf16 %v6764_v23, %v2794_v62  ;;  %v2780_v6 = vadd.bf16 %v5759_v42, %v2204_v34 }
 0x283   : > { %v5789_v13 = vpop.f32.mrf.mxu0  ;;  %v5795_v7 = vpop.f32.mrf.mxu1  ;;  %v2785_v0 = vadd.bf16 %v4441_v33, %v2209_v51  ;;  %v2848_v10 = vmax.bf16 %v6764_v23, %v2784_v37  ;;  %v2782_v8 = vadd.bf16 %v5759_v42, %v2206_v44  ;;  %v2850_v1 = vmax.bf16 %v6764_v23, %v2786_v35  ;;  %v6881_v51 = vld [vmem:[#allocation19_spill] sm:$0xff]  ;;  %v6886_v35 = vld [vmem:[#allocation36_spill] sm:$0xff] }
 0x284   : > { %6867 = vst [vmem:[#allocation31_spill] sm:$0xff] %v5789_v13  ;;  %6868 = vst [vmem:[#allocation26_spill] sm:$0xff] %v5795_v7  ;;  %3083 = vmatprep.subr.bf16.mxu0 %v2856_v22  ;;  %3276 = vmatprep.subr.bf16.mxu1 %v2858_v38  ;;  %v2318_v33 = vrot.slane %v2310_v29, %v5226_v4  ;;  %v2196_v21 = vpack.c.bf16 %v5688_v16, %v5680_v59  ;;  %v6882_v22 = vld [vmem:[#allocation33_spill] sm:$0xff]  ;;  %v2298_v29 = vpop.permute.xlu1 %2297 }
 0x285   : > { %v5800_v9 = vpop.f32.mrf.mxu0  ;;  %3084 = vmatpush1.bf16.msra.mxu0 %v2855_v60  ;;  %v5809_v56 = vpop.f32.mrf.mxu1  ;;  %3277 = vmatpush1.bf16.msra.mxu1 %v2857_v36  ;;  %v2199_v5 = vpack.c.bf16 %v6875_v55, %v6874_v31  ;;  %v2201_v43 = vpack.c.bf16 %v6878_v45, %v6877_v3  ;;  %v2776_v63 = vadd.bf16 %v5761_v52, %v2200_v28  ;;  %v6885_v36 = vld [vmem:[#allocation13_spill] sm:$0xff]  ;;  %v6894_v45 = vld [vmem:[#allocation32_spill] sm:$0xff] }
 0x286   : > { %6869 = vst [vmem:[#allocation22_spill] sm:$0xff] %v5800_v9  ;;  %6870 = vst [vmem:[#allocation27_spill] sm:$0xff] %v5809_v56  ;;  %3085 = vmatprep.subr.bf16.mxu0 %v2852_v12  ;;  %3278 = vmatprep.subr.bf16.mxu1 %v2854_v20  ;;  %v2779_v34 = vadd.bf16 %v5759_v42, %v2203_v61  ;;  %v2847_v41 = vmax.bf16 %v6764_v23, %v2783_v48  ;;  %v6887_v20 = vld [vmem:[#allocation18_spill] sm:$0xff]  ;;  %v6889_v48 = vld [vmem:[#allocation16_spill] sm:$0xff] }
 0x287   : > { %v5816_v32 = vpop.f32.mrf.mxu0  ;;  %v5820_v30 = vpop.f32.mrf.mxu1  ;;  %v2781_v59 = vadd.bf16 %v5759_v42, %v2205_v53  ;;  %v2849_v16 = vmax.bf16 %v6764_v23, %v2785_v0  ;;  %v2844_v11 = vmax.bf16 %v6764_v23, %v2780_v6  ;;  %v2198_v37 = vpack.c.bf16 %v6882_v22, %v6881_v51  ;;  %v6893_v3 = vld [vmem:[#allocation17_spill] sm:$0xff]  ;;  %v6897_v51 = vld [vmem:[#allocation11_spill] sm:$0xff] }
 0x288   : > { %6871 = vst [vmem:[#allocation23_spill] sm:$0xff] %v5816_v32  ;;  %6872 = vst [vmem:[#allocation37_spill] sm:$0xff] %v5820_v30  ;;  %v2778_v57 = vadd.bf16 %v5761_v52, %v2202_v40  ;;  %v2846_v42 = vmax.bf16 %v6764_v23, %v2782_v8  ;;  %v2192_v12 = vpack.c.bf16 %v6885_v36, %v6884_v47 }
 0x289   : > { %v5827_v50 = vpop.f32.mrf.mxu0  ;;  %3086 = vmatpush1.bf16.msra.mxu0 %v2851_v26  ;;  %v5835_v14 = vpop.f32.mrf.mxu1  ;;  %3279 = vmatpush1.bf16.msra.mxu1 %v2853_v39  ;;  %v2195_v28 = vpack.c.bf16 %v6887_v20, %v6886_v35  ;;  %v6890_v26 = vld [vmem:[#allocation21_spill] sm:$0xff]  ;;  %v2775_v6 = vadd.bf16 %v5761_v52, %v2199_v5  ;;  %v2843_v0 = vmax.bf16 %v6764_v23, %v2779_v34  ;;  %v6900_v20 = vld [vmem:[#allocation14_spill] sm:$0xff] }
 0x28a   : > { %6873 = vst [vmem:[#allocation38_spill] sm:$0xff] %v5827_v50  ;;  %6876 = vst [vmem:[#allocation12_spill] sm:$0xff] %v5835_v14  ;;  %3087 = vmatprep.subr.bf16.mxu0 %v2848_v10  ;;  %3280 = vmatprep.subr.bf16.mxu1 %v2850_v1  ;;  %v2197_v2 = vpack.c.bf16 %v6890_v26, %v6889_v48  ;;  %v2772_v40 = vadd.bf16 %v5763_v54, %v2196_v21  ;;  %v2286_v5 = vpop.permute.xlu0 %2285  ;;  %v6901_v48 = vld [vmem:[#allocation6_spill] sm:$0xff] }
 0x28b   : > { %v5842_v25 = vpop.f32.mrf.mxu0  ;;  %v5848_v44 = vpop.f32.mrf.mxu1  ;;  %v2777_v8 = vadd.bf16 %v5761_v52, %v2201_v43  ;;  %v2845_v1 = vmax.bf16 %v6764_v23, %v2781_v59  ;;  %v2840_v55 = vmax.bf16 %v6764_v23, %v2776_v63  ;;  %v2194_v34 = vpack.c.bf16 %v6894_v45, %v6893_v3  ;;  %v6896_v63 = vld [vmem:[#allocation9_spill] sm:$0xff]  ;;  %v6906_v3 = vld [vmem:[#allocation20_spill] sm:$0xff]  ;;  %v6907_v45 = vld [vmem:[#allocation7_spill] sm:$0xff] }
 0x28c   : > { %6879 = vst [vmem:[#allocation28_spill] sm:$0xff] %v5842_v25  ;;  %6880 = vst [vmem:[#allocation24_spill] sm:$0xff] %v5848_v44  ;;  %v4437_v21 = vcombine.low %v2318_v33, %v2330_v17  ;;  %v2306_v52 = vrot.slane %v2298_v29, %v5226_v4  ;;  %v2294_v43 = vrot.slane %v2286_v5, %v5226_v4 }
 0x28d   : > { %v5856_v38 = vpop.f32.mrf.mxu0  ;;  %3088 = vmatpush1.bf16.msra.mxu0 %v2847_v41  ;;  %v5865_v53 = vpop.f32.mrf.mxu1  ;;  %3281 = vmatpush1.bf16.msra.mxu1 %v2849_v16  ;;  %v2774_v41 = vadd.bf16 %v5763_v54, %v2198_v37  ;;  %v2188_v22 = vpack.c.bf16 %v6897_v51, %v6896_v63  ;;  %v2839_v37 = vmax.bf16 %v6764_v23, %v2775_v6 }
 0x28e   : > { %6883 = vst [vmem:[#allocation25_spill] sm:$0xff] %v5856_v38  ;;  %6888 = vst [vmem:[#allocation19_spill] sm:$0xff] %v5865_v53  ;;  %3089 = vmatprep.subr.bf16.mxu0 %v2844_v11  ;;  %3282 = vmatprep.subr.bf16.mxu1 %v2846_v42  ;;  %v2842_v11 = vmax.bf16 %v6764_v23, %v2778_v57  ;;  %v2771_v42 = vadd.bf16 %v5763_v54, %v2195_v28 }
 0x28f   : > { %v5873_v10 = vpop.f32.mrf.mxu0  ;;  %v5878_v31 = vpop.f32.mrf.mxu1  ;;  %v2768_v57 = vadd.bf16 %v4437_v21, %v2192_v12  ;;  %v2773_v17 = vadd.bf16 %v5763_v54, %v2197_v2  ;;  %v2841_v33 = vmax.bf16 %v6764_v23, %v2777_v8  ;;  %v2836_v35 = vmax.bf16 %v6764_v23, %v2772_v40  ;;  %v6903_v54 = vld [vmem:[#allocation4_spill] sm:$0xff]  ;;  %v6904_v12 = vld [vmem:[#allocation2_spill] sm:$0xff] }
 0x290   : > { %6891 = vst [vmem:[#allocation33_spill] sm:$0xff] %v5873_v10  ;;  %6892 = vst [vmem:[#allocation3_spill] sm:$0xff] %v5878_v31  ;;  %v2190_v26 = vpack.c.bf16 %v6901_v48, %v6900_v20  ;;  %v2838_v28 = vmax.bf16 %v6764_v23, %v2774_v41  ;;  %v4436_v6 = vcombine.low %v2294_v43, %v2306_v52  ;;  %v6914_v48 = vld [vmem:[#allocation5_spill] sm:$0xff] }
 0x291   : > { %v5884_v16 = vpop.f32.mrf.mxu0  ;;  %3090 = vmatpush1.bf16.msra.mxu0 %v2843_v0  ;;  %v5889_v59 = vpop.f32.mrf.mxu1  ;;  %3283 = vmatpush1.bf16.msra.mxu1 %v2845_v1  ;;  %v2770_v0 = vadd.bf16 %v4437_v21, %v2194_v34  ;;  %v6905_v2 = vpack.c.bf16 %v6903_v54, %v6904_v12  ;;  %v2835_v40 = vmax.bf16 %v6764_v23, %v2771_v42 }
 0x292   : > { %6895 = vst [vmem:[#allocation13_spill] sm:$0xff] %v5889_v59  ;;  %3091 = vmatprep.subr.bf16.mxu0 %v2840_v55  ;;  %3284 = vmatprep.subr.bf16.mxu1 %v2842_v11  ;;  %v2764_v5 = vadd.bf16 %v4436_v6, %v2188_v22  ;;  %v6908_v34 = vpack.c.bf16 %v6906_v3, %v6907_v45  ;;  %v6910_v22 = vld [vmem:[#allocation10_spill] sm:$0xff] }
 0x293   : > { %v5895_v47 = vpop.f32.mrf.mxu0  ;;  %v5899_v36 = vpop.f32.mrf.mxu1  ;;  %v2767_v8 = vadd.bf16 %v4437_v21, %v6905_v2  ;;  %v2837_v41 = vmax.bf16 %v6764_v23, %v2773_v17  ;;  %v2832_v43 = vmax.bf16 %v6764_v23, %v2768_v57  ;;  %v2766_v63 = vadd.bf16 %v4436_v6, %v2190_v26  ;;  %v6913_v57 = vld [vmem:[#allocation15_spill] sm:$0xff] }
 0x294   : > { %6898 = vst [vmem:[#allocation36_spill] sm:$0xff] %v5895_v47  ;;  %6899 = vst [vmem:[#allocation18_spill] sm:$0xff] %v5899_v36  ;;  %v2769_v11 = vadd.bf16 %v4437_v21, %v6908_v34  ;;  %v2834_v42 = vmax.bf16 %v6764_v23, %v2770_v0  ;;  %v6915_v26 = vpack.c.bf16 %v6913_v57, %v6914_v48 }
 0x295   : > { %v5904_v29 = vpop.f32.mrf.mxu0  ;;  %3092 = vmatpush1.bf16.msra.mxu0 %v2839_v37  ;;  %v5907_v1 = vpop.f32.mrf.mxu1  ;;  %3285 = vmatpush1.bf16.msra.mxu1 %v2841_v33  ;;  %v6911_v33 = vld [vmem:[#allocation8_spill] sm:$0xff]  ;;  %v2831_v17 = vmax.bf16 %v6764_v23, %v2767_v8  ;;  %v2828_v12 = vmax.bf16 %v6764_v23, %v2764_v5 }
 0x296   : > { %6902 = vst [vmem:[#allocation16_spill] sm:$0xff] %v5907_v1  ;;  %3093 = vmatprep.subr.bf16.mxu0 %v2836_v35  ;;  %3286 = vmatprep.subr.bf16.mxu1 %v2838_v28  ;;  %v6912_v35 = vpack.c.bf16 %v6910_v22, %v6911_v33  ;;  %v2765_v28 = vadd.bf16 %v4436_v6, %v6915_v26  ;;  %v2646_v33 = vpop.permute.xlu0 %2645 }
 0x297   : > { %v5913_v55 = vpop.f32.mrf.mxu0  ;;  %v5919_v52 = vpop.f32.mrf.mxu1  ;;  %v2833_v54 = vmax.bf16 %v6764_v23, %v2769_v11  ;;  %v2654_v46 = vrot.slane %v2646_v33, %v5226_v4 }
 0x298   : > { %6909 = vst [vmem:[#allocation21_spill] sm:$0xff] %v5919_v52  ;;  %v2763_v21 = vadd.bf16 %v4436_v6, %v6912_v35  ;;  %v2829_v6 = vmax.bf16 %v6764_v23, %v2765_v28 }
 0x299   : > { %v5922_v51 = vpop.f32.mrf.mxu0  ;;  %3094 = vmatpush1.bf16.msra.mxu0 %v2835_v40  ;;  %v5925_v37 = vpop.f32.mrf.mxu1  ;;  %3287 = vmatpush1.bf16.msra.mxu1 %v2837_v41  ;;  %v2830_v40 = vmax.bf16 %v6764_v23, %v2766_v63 }
 0x29a   : > { %3095 = vmatprep.subr.bf16.mxu0 %v2832_v43  ;;  %3288 = vmatprep.subr.bf16.mxu1 %v2834_v42  ;;  %v2827_v8 = vmax.bf16 %v6764_v23, %v2763_v21  ;;  %v2658_v42 = vpop.permute.xlu1 %2657 }
 0x29b   : > { %v5931_v20 = vpop.f32.mrf.mxu0  ;;  %v5937_v0 = vpop.f32.mrf.mxu1  ;;  %v2666_v13 = vrot.slane %v2658_v42, %v5226_v4 }
 0x29c   : > { %6916 = vst [vmem:[#allocation17_spill] sm:$0xff] %v5937_v0 }
 0x29d   : > { %v5940_v2 = vpop.f32.mrf.mxu0  ;;  %3096 = vmatpush1.bf16.msra.mxu0 %v2831_v17  ;;  %v5943_v3 = vpop.f32.mrf.mxu1  ;;  %3289 = vmatpush1.bf16.msra.mxu1 %v2833_v54  ;;  %v4451_v36 = vcombine.low %v2654_v46, %v2666_v13 }
 0x29e   : > { %3097 = vmatprep.subr.bf16.mxu0 %v2828_v12  ;;  %3290 = vmatprep.subr.bf16.mxu1 %v2830_v40  ;;  %v2634_v26 = vpop.permute.xlu1 %2633  ;;  %v2622_v54 = vpop.permute.xlu0 %2621 }
 0x29f   : > { %v5946_v45 = vpop.f32.mrf.mxu0  ;;  %v5949_v34 = vpop.f32.mrf.mxu1  ;;  %v2642_v56 = vrot.slane %v2634_v26, %v5226_v4  ;;  %v2630_v30 = vrot.slane %v2622_v54, %v5226_v4 }
 0x2a1   : > { %v5951_v11 = vpop.f32.mrf.mxu0  ;;  %3098 = vmatpush1.bf16.msra.mxu0 %v2827_v8  ;;  %v5953_v5 = vpop.f32.mrf.mxu1  ;;  %3291 = vmatpush1.bf16.msra.mxu1 %v2829_v6  ;;  %v4450_v31 = vcombine.low %v2630_v30, %v2642_v56 }
 0x2a2   : > { %v2610_v24 = vpop.permute.xlu1 %2609  ;;  %v2598_v60 = vpop.permute.xlu0 %2597 }
 0x2a3   : > { %v5955_v41 = vpop.f32.mrf.mxu0  ;;  %v5957_v43 = vpop.f32.mrf.mxu1  ;;  %v2618_v9 = vrot.slane %v2610_v24, %v5226_v4  ;;  %v2606_v32 = vrot.slane %v2598_v60, %v5226_v4 }
 0x2a5   : > { %v5959_v63 = vpop.f32.mrf.mxu0  ;;  %v5961_v22 = vpop.f32.mrf.mxu1  ;;  %v4449_v10 = vcombine.low %v2606_v32, %v2618_v9 }
 0x2a6   : > { %v2586_v7 = vpop.permute.xlu1 %2585  ;;  %v2574_v44 = vpop.permute.xlu0 %2573  ;;  %v2236_v32 = vpack.c.bf16 %v5959_v63, %v5951_v11  ;;  %v2232_v11 = vpack.c.bf16 %v5940_v2, %v5922_v51  ;;  %v2237_v63 = vpack.c.bf16 %v5957_v43, %v5949_v34  ;;  %v2234_v51 = vpack.c.bf16 %v5943_v3, %v5925_v37  ;;  %v6918_v37 = vld [vmem:[#allocation17_spill] sm:$0xff] }
 0x2a7   : > { %v5963_v35 = vpop.f32.mrf.mxu0  ;;  %v5965_v21 = vpop.f32.mrf.mxu1  ;;  %v2594_v26 = vrot.slane %v2586_v7, %v5226_v4  ;;  %v2582_v54 = vrot.slane %v2574_v44, %v5226_v4  ;;  %v2228_v43 = vpack.c.bf16 %v5904_v29, %v5884_v16  ;;  %v6919_v29 = vld [vmem:[#allocation13_spill] sm:$0xff] }
 0x2a9   : > { %v5967_v17 = vpop.f32.mrf.mxu0  ;;  %v5969_v57 = vpop.f32.mrf.mxu1 }
 0x2aa   : > { %v2562_v24 = vpop.permute.xlu1 %2561  ;;  %v2550_v0 = vpop.permute.xlu0 %2549 }
 0x2ab   : > { %v5971_v48 = vpop.f32.mrf.mxu0  ;;  %v5973_v28 = vpop.f32.mrf.mxu1 }
 0x2ad   : > { %v1971_v12 = vpop.f32.mrf.mxu0  ;;  %v5975_v40 = vpop.f32.mrf.mxu1 }
 0x2ae   : > { %v2240_v60 = vpack.c.bf16 %v1971_v12, %v5967_v17  ;;  %v2242_v7 = vpack.c.bf16 %v5975_v40, %v5969_v57  ;;  %v2231_v12 = vpack.c.bf16 %v5931_v20, %v5913_v55  ;;  %v6917_v40 = vld [vmem:[#allocation21_spill] sm:$0xff] }
 0x2af   : > { %v1975_v8 = vpop.f32.mrf.mxu0  ;;  %v2168_v6 = vpop.f32.mrf.mxu1  ;;  %v2233_v3 = vpack.c.bf16 %v6918_v37, %v6917_v40 }
 0x2b1   : > { %v1977_v18 = vpop.f32.mrf.mxu0  ;;  %v2170_v19 = vpop.f32.mrf.mxu1 }
 0x2b3   : > { %v1979_v49 = vpop.f32.mrf.mxu0  ;;  %v2172_v62 = vpop.f32.mrf.mxu1 }
 0x2b4   : > { %v2243_v52 = vpack.c.bf16 %v1979_v49, %v1975_v8  ;;  %v2239_v49 = vpack.c.bf16 %v5971_v48, %v5963_v35 }
 0x2b5   : > { %v1981_v39 = vpop.f32.mrf.mxu0  ;;  %v2174_v61 = vpop.f32.mrf.mxu1 }
 0x2b6   : > { %v2244_v53 = vpack.c.bf16 %v1981_v39, %v1977_v18  ;;  %v2246_v42 = vpack.c.bf16 %v2174_v61, %v2170_v19  ;;  %v2815_v35 = vadd.bf16 %v4449_v10, %v2239_v49 }
 0x2b7   : > { %v1985_v15 = vpop.f32.mrf.mxu0  ;;  %v2178_v58 = vpop.f32.mrf.mxu1 }
 0x2b8   : > { %v2820_v46 = vadd.bf16 %v4450_v31, %v2244_v53  ;;  %v2822_v9 = vadd.bf16 %v4450_v31, %v2246_v42 }
 0x2b9   : > { %v1987_v27 = vpop.f32.mrf.mxu0  ;;  %v2180_v25 = vpop.f32.mrf.mxu1 }
 0x2ba   : > { %v2884_v39 = vmax.bf16 %v6764_v23, %v2820_v46  ;;  %v6922_v46 = vld [vmem:[#allocation36_spill] sm:$0xff] }
 0x2bb   : > { %v1989_v14 = vpop.f32.mrf.mxu0  ;;  %v2182_v38 = vpop.f32.mrf.mxu1 }
 0x2bc   : > { %v2247_v50 = vpack.c.bf16 %v1989_v14, %v1985_v15  ;;  %v2249_v47 = vpack.c.bf16 %v2182_v38, %v2178_v58  ;;  %v2245_v14 = vpack.c.bf16 %v2172_v62, %v2168_v6  ;;  %v2570_v58 = vrot.slane %v2562_v24, %v5226_v4 }
 0x2bd   : > { %v1991_v33 = vpop.f32.mrf.mxu0  ;;  %v2184_v59 = vpop.f32.mrf.mxu1  ;;  %v2816_v38 = vadd.bf16 %v4449_v10, %v2240_v60  ;;  %v2879_v6 = vmax.bf16 %v6764_v23, %v2815_v35  ;;  %v6929_v35 = vld [vmem:[#allocation12_spill] sm:$0xff] }
 0x2be   : > { %v2248_v1 = vpack.c.bf16 %v1991_v33, %v1987_v27  ;;  %v2823_v18 = vadd.bf16 %v4451_v36, %v2247_v50  ;;  %v2250_v15 = vpack.c.bf16 %v2184_v59, %v2180_v25  ;;  %v2825_v13 = vadd.bf16 %v4451_v36, %v2249_v47  ;;  %v2538_v59 = vpop.permute.xlu1 %2537  ;;  %v2526_v47 = vpop.permute.xlu0 %2525 }
 0x2bf   : > { %v2558_v27 = vrot.slane %v2550_v0, %v5226_v4  ;;  %v2241_v50 = vpack.c.bf16 %v5973_v28, %v5965_v21  ;;  %v2819_v25 = vadd.bf16 %v4450_v31, %v2243_v52  ;;  %v2821_v61 = vadd.bf16 %v4450_v31, %v2245_v14  ;;  %v6921_v14 = vld [vmem:[#allocation33_spill] sm:$0xff] }
 0x2c0   : > { %v2824_v56 = vadd.bf16 %v4451_v36, %v2248_v1  ;;  %v2826_v19 = vadd.bf16 %v4451_v36, %v2250_v15  ;;  %v2887_v62 = vmax.bf16 %v6764_v23, %v2823_v18  ;;  %v2889_v53 = vmax.bf16 %v6764_v23, %v2825_v13 }
 0x2c1   : > { %v2238_v36 = vpack.c.bf16 %v5961_v22, %v5953_v5  ;;  %v2818_v1 = vadd.bf16 %v4449_v10, %v2242_v7  ;;  %v2886_v52 = vmax.bf16 %v6764_v23, %v2822_v9  ;;  %v4448_v0 = vcombine.low %v2582_v54, %v2594_v26  ;;  %v6920_v54 = vld [vmem:[#allocation16_spill] sm:$0xff] }
 0x2c2   : > { %v2888_v30 = vmax.bf16 %v6764_v23, %v2824_v56  ;;  %v2890_v44 = vmax.bf16 %v6764_v23, %v2826_v19  ;;  %v2235_v31 = vpack.c.bf16 %v5955_v41, %v5946_v45  ;;  %v2883_v5 = vmax.bf16 %v6764_v23, %v2819_v25  ;;  %v2502_v28 = vpop.permute.xlu0 %2501  ;;  %v6923_v56 = vld [vmem:[#allocation3_spill] sm:$0xff] }
 0x2c3   : > { %v2812_v22 = vadd.bf16 %v4448_v0, %v2236_v32  ;;  %v2817_v21 = vadd.bf16 %v4449_v10, %v2241_v50  ;;  %v2885_v17 = vmax.bf16 %v6764_v23, %v2821_v61  ;;  %v2880_v57 = vmax.bf16 %v6764_v23, %v2816_v38  ;;  %v2514_v10 = vpop.permute.xlu1 %2513 }
 0x2c4   : > { %3099 = vmatprep.subr.bf16.mxu0 %v2888_v30  ;;  %3292 = vmatprep.subr.bf16.mxu1 %v2890_v44  ;;  %v4447_v48 = vcombine.low %v2558_v27, %v2570_v58  ;;  %v2814_v2 = vadd.bf16 %v4448_v0, %v2238_v36  ;;  %v2882_v45 = vmax.bf16 %v6764_v23, %v2818_v1  ;;  %v6924_v58 = vld [vmem:[#allocation18_spill] sm:$0xff] }
 0x2c5   : > { %3100 = vmatpush2.bf16.msra.mxu0 %v2887_v62  ;;  %3293 = vmatpush2.bf16.msra.mxu1 %v2889_v53  ;;  %v2546_v34 = vrot.slane %v2538_v59, %v5226_v4  ;;  %v2534_v41 = vrot.slane %v2526_v47, %v5226_v4  ;;  %v2811_v8 = vadd.bf16 %v4448_v0, %v2235_v31  ;;  %v6925_v47 = vld [vmem:[#allocation25_spill] sm:$0xff]  ;;  %v6926_v36 = vld [vmem:[#allocation38_spill] sm:$0xff] }
 0x2c6   : > { %3101 = vmatprep.subr.bf16.mxu0 %v2884_v39  ;;  %3294 = vmatprep.subr.bf16.mxu1 %v2886_v52  ;;  %v2808_v42 = vadd.bf16 %v4447_v48, %v2232_v11  ;;  %v2813_v33 = vadd.bf16 %v4448_v0, %v2237_v63  ;;  %v2881_v26 = vmax.bf16 %v6764_v23, %v2817_v21  ;;  %v2478_v25 = vpop.permute.xlu0 %2477  ;;  %v6928_v63 = vld [vmem:[#allocation19_spill] sm:$0xff] }
 0x2c7   : > { %v2876_v16 = vmax.bf16 %v6764_v23, %v2812_v22  ;;  %v2230_v24 = vpack.c.bf16 %v6920_v54, %v6919_v29  ;;  %v2810_v60 = vadd.bf16 %v4447_v48, %v2234_v51  ;;  %v2878_v55 = vmax.bf16 %v6764_v23, %v2814_v2  ;;  %v2490_v50 = vpop.permute.xlu1 %2489  ;;  %v6943_v29 = vld [vmem:[#allocation31_spill] sm:$0xff]  ;;  %v6944_v54 = vld [vmem:[#allocation29_spill] sm:$0xff] }
 0x2c8   : > { %v4446_v20 = vcombine.low %v2534_v41, %v2546_v34  ;;  %v2522_v18 = vrot.slane %v2514_v10, %v5226_v4  ;;  %v2510_v15 = vrot.slane %v2502_v28, %v5226_v4  ;;  %v2227_v13 = vpack.c.bf16 %v6922_v46, %v6921_v14  ;;  %v6934_v34 = vld [vmem:[#allocation22_spill] sm:$0xff]  ;;  %v6937_v28 = vld [vmem:[#allocation24_spill] sm:$0xff] }
 0x2c9   : > { %3102 = vmatpush2.bf16.msra.mxu0 %v2883_v5  ;;  %3295 = vmatpush2.bf16.msra.mxu1 %v2885_v17  ;;  %v2229_v7 = vpack.c.bf16 %v6924_v58, %v6923_v56  ;;  %v2807_v9 = vadd.bf16 %v4447_v48, %v2231_v12  ;;  %v2875_v19 = vmax.bf16 %v6764_v23, %v2811_v8  ;;  %v6935_v41 = vld [vmem:[#allocation30_spill] sm:$0xff]  ;;  %v6938_v12 = vld [vmem:[#allocation37_spill] sm:$0xff] }
 0x2ca   : > { %3103 = vmatprep.subr.bf16.mxu0 %v2880_v57  ;;  %3296 = vmatprep.subr.bf16.mxu1 %v2882_v45  ;;  %v2804_v27 = vadd.bf16 %v4446_v20, %v2228_v43  ;;  %v2809_v32 = vadd.bf16 %v4447_v48, %v2233_v3  ;;  %v2877_v49 = vmax.bf16 %v6764_v23, %v2813_v33  ;;  %v6931_v57 = vld [vmem:[#allocation28_spill] sm:$0xff]  ;;  %v6932_v48 = vld [vmem:[#allocation23_spill] sm:$0xff] }
 0x2cb   : > { %v2872_v30 = vmax.bf16 %v6764_v23, %v2808_v42  ;;  %v2806_v62 = vadd.bf16 %v4446_v20, %v2230_v24  ;;  %v2874_v44 = vmax.bf16 %v6764_v23, %v2810_v60  ;;  %v4445_v38 = vcombine.low %v2510_v15, %v2522_v18  ;;  %v6941_v42 = vld [vmem:[#allocation35_spill] sm:$0xff]  ;;  %v6947_v18 = vld [vmem:[#allocation34_spill] sm:$0xff] }
 0x2cc   : > { %v2498_v61 = vrot.slane %v2490_v50, %v5226_v4  ;;  %v2486_v53 = vrot.slane %v2478_v25, %v5226_v4  ;;  %v2803_v39 = vadd.bf16 %v4446_v20, %v2227_v13  ;;  %v2871_v59 = vmax.bf16 %v6764_v23, %v2807_v9  ;;  %v4580_v9 = vld [vmem:[%s6660_s5] ss:$8 sps:$4 sm:$0xff]   ;;  %v4589_v50 = vld [vmem:[%s6660_s5 + $0x30] ss:$8 sps:$4 sm:$0xff]   ;;  %v4594_v25 = vld [vmem:[%s6660_s5 + $0x44] ss:$8 sps:$4 sm:$0xff]  }
 0x2cd   : > { %3104 = vmatpush2.bf16.msra.mxu0 %v2879_v6  ;;  %3297 = vmatpush2.bf16.msra.mxu1 %v2881_v26  ;;  %v6927_v1 = vpack.c.bf16 %v6925_v47, %v6926_v36  ;;  %v2805_v0 = vadd.bf16 %v4446_v20, %v2229_v7  ;;  %v2873_v11 = vmax.bf16 %v6764_v23, %v2809_v32  ;;  %v6940_v6 = vld [vmem:[#allocation27_spill] sm:$0xff]  ;;  %v6946_v20 = vld [vmem:[#allocation26_spill] sm:$0xff] }
 0x2ce   : > { %3105 = vmatprep.subr.bf16.mxu0 %v2876_v16  ;;  %3298 = vmatprep.subr.bf16.mxu1 %v2878_v55  ;;  %v2868_v31 = vmax.bf16 %v6764_v23, %v2804_v27  ;;  %v6930_v5 = vpack.c.bf16 %v6928_v63, %v6929_v35  ;;  %v2870_v21 = vmax.bf16 %v6764_v23, %v2806_v62  ;;  %v4583_v27 = vld [vmem:[%s6660_s5 + $0x10] ss:$8 sps:$4 sm:$0xff]   ;;  %v4588_v32 = vld [vmem:[%s6660_s5 + $0x24] ss:$8 sps:$4 sm:$0xff]   ;;  %v4592_v62 = vld [vmem:[%s6660_s5 + $0x40] ss:$8 sps:$4 sm:$0xff]  }
 0x2cf   : > { %v2800_v52 = vadd.bf16 %v4445_v38, %v6927_v1  ;;  %v4444_v17 = vcombine.low %v2486_v53, %v2498_v61  ;;  %v6933_v51 = vpack.c.bf16 %v6931_v57, %v6932_v48  ;;  %v2867_v45 = vmax.bf16 %v6764_v23, %v2803_v39  ;;  %v4600_v61 = vld [vmem:[%s6660_s5 + $0x64] ss:$8 sps:$4 sm:$0xff]   ;;  %v4598_v53 = vld [vmem:[%s6660_s5 + $0x60] ss:$8 sps:$4 sm:$0xff]   ;;  %v4603_v39 = vld [vmem:[%s6660_s5 + $0x74] ss:$8 sps:$4 sm:$0xff]  }
 0x2d0   : > { %v2802_v22 = vadd.bf16 %v4445_v38, %v6930_v5  ;;  %v6936_v43 = vpack.c.bf16 %v6934_v34, %v6935_v41  ;;  %v6939_v40 = vpack.c.bf16 %v6937_v28, %v6938_v12  ;;  %v2869_v3 = vmax.bf16 %v6764_v23, %v2805_v0  ;;  %v4606_v47 = vld [vmem:[%s6660_s5 + $0x84] ss:$8 sps:$4 sm:$0xff]   ;;  %v4604_v36 = vld [vmem:[%s6660_s5 + $0x80] ss:$8 sps:$4 sm:$0xff]   ;;  %v4609_v1 = vld [vmem:[%s6660_s5 + $0x94] ss:$8 sps:$4 sm:$0xff]  }
 0x2d1   : > { %3106 = vmatpush2.bf16.msra.mxu0 %v2875_v19  ;;  %3299 = vmatpush2.bf16.msra.mxu1 %v2877_v49  ;;  %v2799_v2 = vadd.bf16 %v4445_v38, %v6933_v51  ;;  %v2864_v8 = vmax.bf16 %v6764_v23, %v2800_v52  ;;  %v6942_v33 = vpack.c.bf16 %v6940_v6, %v6941_v42  ;;  %v4585_v19 = vld [vmem:[%s6660_s5 + $0x14] ss:$8 sps:$4 sm:$0xff]   ;;  %v4586_v49 = vld [vmem:[%s6660_s5 + $0x20] ss:$8 sps:$4 sm:$0xff]   ;;  %v4607_v52 = vld [vmem:[%s6660_s5 + $0x90] ss:$8 sps:$4 sm:$0xff]  }
 0x2d2   : > { %3107 = vmatprep.subr.bf16.mxu0 %v2872_v30  ;;  %3300 = vmatprep.subr.bf16.mxu1 %v2874_v44  ;;  %v2796_v10 = vadd.bf16 %v4444_v17, %v6936_v43  ;;  %v2801_v37 = vadd.bf16 %v4445_v38, %v6939_v40  ;;  %v2866_v16 = vmax.bf16 %v6764_v23, %v2802_v22  ;;  %v4591_v30 = vld [vmem:[%s6660_s5 + $0x34] ss:$8 sps:$4 sm:$0xff]   ;;  %v4595_v38 = vld [vmem:[%s6660_s5 + $0x50] ss:$8 sps:$4 sm:$0xff]   ;;  %v4612_v0 = vld [vmem:[%s6660_s5 + $0xa4] ss:$8 sps:$4 sm:$0xff]  }
 0x2d3   : > { %v2798_v26 = vadd.bf16 %v4444_v17, %v6942_v33  ;;  %v6945_v24 = vpack.c.bf16 %v6943_v29, %v6944_v54  ;;  %v2863_v55 = vmax.bf16 %v6764_v23, %v2799_v2  ;;  %v6948_v15 = vpack.c.bf16 %v6946_v20, %v6947_v18  ;;  %v4597_v44 = vld [vmem:[%s6660_s5 + $0x54] ss:$8 sps:$4 sm:$0xff]   ;;  %v4613_v63 = vld [vmem:[%s6660_s5 + $0xb0] ss:$8 sps:$4 sm:$0xff]   ;;  %v4618_v35 = vld [vmem:[%s6660_s5 + $0xc4] ss:$8 sps:$4 sm:$0xff]  }
 0x2d4   : > { %v2865_v46 = vmax.bf16 %v6764_v23, %v2801_v37  ;;  %v2860_v13 = vmax.bf16 %v6764_v23, %v2796_v10  ;;  %v4616_v5 = vld [vmem:[%s6660_s5 + $0xc0] ss:$8 sps:$4 sm:$0xff]   ;;  %v4621_v22 = vld [vmem:[%s6660_s5 + $0xd4] ss:$8 sps:$4 sm:$0xff]   ;;  %v4625_v51 = vld [vmem:[%s6660_s5 + $0xf0] ss:$8 sps:$4 sm:$0xff]  }
 0x2d5   : > { %3108 = vmatpush2.bf16.msra.mxu0 %v2871_v59  ;;  %3301 = vmatpush2.bf16.msra.mxu1 %v2873_v11  ;;  %v2795_v60 = vadd.bf16 %v4444_v17, %v6945_v24  ;;  %v2797_v14 = vadd.bf16 %v4444_v17, %v6948_v15  ;;  %v2862_v56 = vmax.bf16 %v6764_v23, %v2798_v26  ;;  %v4601_v59 = vld [vmem:[%s6660_s5 + $0x70] ss:$8 sps:$4 sm:$0xff]   ;;  %v4610_v11 = vld [vmem:[%s6660_s5 + $0xa0] ss:$8 sps:$4 sm:$0xff]   ;;  %v4624_v17 = vld [vmem:[%s6660_s5 + $0xe4] ss:$8 sps:$4 sm:$0xff]  }
 0x2d6   : > { %3109 = vmatprep.subr.bf16.mxu0 %v2868_v31  ;;  %3302 = vmatprep.subr.bf16.mxu1 %v2870_v21  ;;  %v4615_v31 = vld [vmem:[%s6660_s5 + $0xb4] ss:$8 sps:$4 sm:$0xff]   ;;  %v4619_v21 = vld [vmem:[%s6660_s5 + $0xd0] ss:$8 sps:$4 sm:$0xff]   ;;  %v4622_v57 = vld [vmem:[%s6660_s5 + $0xe0] ss:$8 sps:$4 sm:$0xff]  }
 0x2d7   : > { %v2859_v58 = vmax.bf16 %v6764_v23, %v2795_v60  ;;  %v2861_v7 = vmax.bf16 %v6764_v23, %v2797_v14  ;;  %v4627_v48 = vld [vmem:[%s6660_s5 + $0xf4] ss:$8 sps:$4 sm:$0xff]  }
 0x2d9   : > { %3110 = vmatpush2.bf16.msra.mxu0 %v2867_v45  ;;  %3303 = vmatpush2.bf16.msra.mxu1 %v2869_v3 }
 0x2da   : > { %3111 = vmatprep.subr.bf16.mxu0 %v2864_v8  ;;  %3304 = vmatprep.subr.bf16.mxu1 %v2866_v16 }
 0x2dd   : > { %3112 = vmatpush2.bf16.msra.mxu0 %v2863_v55  ;;  %3305 = vmatpush2.bf16.msra.mxu1 %v2865_v46 }
 0x2de   : > { %3113 = vmatprep.subr.bf16.mxu0 %v2860_v13  ;;  %3306 = vmatprep.subr.bf16.mxu1 %v2862_v56 }
 0x2e1   : > { %3114 = vmatpush2.bf16.msra.mxu0 %v2859_v58  ;;  %3307 = vmatpush2.bf16.msra.mxu1 %v2861_v7 }
 0x2e4   : > { %3116 = vmatmul.mubr.bf16.vlgmr.msra.gmra.mxu0 %v4580_v9  ;;  %3309 = vmatmul.mubr.bf16.vlgmr.msra.gmra.mxu1 %v4580_v9 }
 0x2e5   : > { %3125 = vmatprep.mubr.bf16.mxu0 %v4585_v19  ;;  %3318 = vmatprep.mubr.bf16.mxu1 %v4585_v19 }
 0x2ec   : > { %3126 = vmatmul.mubr.bf16.gmra.mxu0 %v4583_v27  ;;  %3319 = vmatmul.mubr.bf16.gmra.mxu1 %v4583_v27 }
 0x2ed   : > { %3135 = vmatprep.mubr.bf16.mxu0 %v4588_v32  ;;  %3328 = vmatprep.mubr.bf16.mxu1 %v4588_v32 }
 0x2f4   : > { %3136 = vmatmul.mubr.bf16.gmra.mxu0 %v4586_v49  ;;  %3329 = vmatmul.mubr.bf16.gmra.mxu1 %v4586_v49 }
 0x2f5   : > { %3145 = vmatprep.mubr.bf16.mxu0 %v4591_v30  ;;  %3338 = vmatprep.mubr.bf16.mxu1 %v4591_v30 }
 0x2fc   : > { %3146 = vmatmul.mubr.bf16.gmra.mxu0 %v4589_v50  ;;  %3339 = vmatmul.mubr.bf16.gmra.mxu1 %v4589_v50 }
 0x2fd   : > { %3155 = vmatprep.mubr.bf16.mxu0 %v4594_v25  ;;  %3348 = vmatprep.mubr.bf16.mxu1 %v4594_v25 }
 0x304   : > { %3156 = vmatmul.mubr.bf16.gmra.mxu0 %v4592_v62  ;;  %3349 = vmatmul.mubr.bf16.gmra.mxu1 %v4592_v62  ;;  %v3748_v62 = vpop.permute.xlu1 %3747 }
 0x305   : > { %3165 = vmatprep.mubr.bf16.mxu0 %v4597_v44  ;;  %3358 = vmatprep.mubr.bf16.mxu1 %v4597_v44 }
 0x30c   : > { %3166 = vmatmul.mubr.bf16.gmra.mxu0 %v4595_v38  ;;  %3359 = vmatmul.mubr.bf16.gmra.mxu1 %v4595_v38  ;;  %v3736_v38 = vpop.permute.xlu0 %3735 }
 0x30d   : > { %3175 = vmatprep.mubr.bf16.mxu0 %v4600_v61  ;;  %3368 = vmatprep.mubr.bf16.mxu1 %v4600_v61 }
 0x314   : > { %3176 = vmatmul.mubr.bf16.gmra.mxu0 %v4598_v53  ;;  %3369 = vmatmul.mubr.bf16.gmra.mxu1 %v4598_v53 }
 0x315   : > { %3185 = vmatprep.mubr.bf16.mxu0 %v4603_v39  ;;  %3378 = vmatprep.mubr.bf16.mxu1 %v4603_v39 }
 0x31c   : > { %3186 = vmatmul.mubr.bf16.gmra.mxu0 %v4601_v59  ;;  %3379 = vmatmul.mubr.bf16.gmra.mxu1 %v4601_v59  ;;  %v6262_v59 = vld [vmem:[%s6662_s7] sm:$0xff] }
 0x31d   : > { %3195 = vmatprep.mubr.bf16.mxu0 %v4606_v47  ;;  %3388 = vmatprep.mubr.bf16.mxu1 %v4606_v47  ;;  %6972 = vst [vmem:[#allocation19_spill] sm:$0xff] %v6262_v59 }
 0x324   : > { %3196 = vmatmul.mubr.bf16.gmra.mxu0 %v4604_v36  ;;  %3389 = vmatmul.mubr.bf16.gmra.mxu1 %v4604_v36  ;;  %v4501_v36 = vcombine.high %v6262_v59, %v6262_v59 }
 0x325   : > { %3205 = vmatprep.mubr.bf16.mxu0 %v4609_v1  ;;  %3398 = vmatprep.mubr.bf16.mxu1 %v4609_v1 }
 0x32c   : > { %3206 = vmatmul.mubr.bf16.gmra.mxu0 %v4607_v52  ;;  %3399 = vmatmul.mubr.bf16.gmra.mxu1 %v4607_v52  ;;  %v3724_v52 = vpop.permute.xlu1 %3723 }
 0x32d   : > { %3215 = vmatprep.mubr.bf16.mxu0 %v4612_v0  ;;  %3408 = vmatprep.mubr.bf16.mxu1 %v4612_v0 }
 0x334   : > { %3216 = vmatmul.mubr.bf16.gmra.mxu0 %v4610_v11  ;;  %3409 = vmatmul.mubr.bf16.gmra.mxu1 %v4610_v11  ;;  %v3712_v11 = vpop.permute.xlu0 %3711 }
 0x335   : > { %3225 = vmatprep.mubr.bf16.mxu0 %v4615_v31  ;;  %3418 = vmatprep.mubr.bf16.mxu1 %v4615_v31 }
 0x33c   : > { %3226 = vmatmul.mubr.bf16.gmra.mxu0 %v4613_v63  ;;  %3419 = vmatmul.mubr.bf16.gmra.mxu1 %v4613_v63 }
 0x33d   : > { %3235 = vmatprep.mubr.bf16.mxu0 %v4618_v35  ;;  %3428 = vmatprep.mubr.bf16.mxu1 %v4618_v35 }
 0x344   : > { %3236 = vmatmul.mubr.bf16.gmra.mxu0 %v4616_v5  ;;  %3429 = vmatmul.mubr.bf16.gmra.mxu1 %v4616_v5 }
 0x345   : > { %3245 = vmatprep.mubr.bf16.mxu0 %v4621_v22  ;;  %3438 = vmatprep.mubr.bf16.mxu1 %v4621_v22 }
 0x34c   : > { %3246 = vmatmul.mubr.bf16.gmra.mxu0 %v4619_v21  ;;  %3439 = vmatmul.mubr.bf16.gmra.mxu1 %v4619_v21  ;;  %v3700_v21 = vpop.permute.xlu1 %3699 }
 0x34d   : > { %3255 = vmatprep.mubr.bf16.mxu0 %v4624_v17  ;;  %3448 = vmatprep.mubr.bf16.mxu1 %v4624_v17 }
 0x350   : > { %v3676_v8 = vpop.permute.xlu1 %3675 }
 0x354   : > { %3256 = vmatmul.mubr.bf16.gmra.mxu0 %v4622_v57  ;;  %3449 = vmatmul.mubr.bf16.gmra.mxu1 %v4622_v57  ;;  %v3688_v57 = vpop.permute.xlu0 %3687 }
 0x355   : > { %3265 = vmatprep.mubr.bf16.mxu0 %v4627_v48  ;;  %3458 = vmatprep.mubr.bf16.mxu1 %v4627_v48 }
 0x358   : > { %v3664_v37 = vpop.permute.xlu0 %3663 }
 0x35c   : > { %3266 = vmatmul.mubr.bf16.gmra.mxu0 %v4625_v51  ;;  %3459 = vmatmul.mubr.bf16.gmra.mxu1 %v4625_v51 }
 0x35d   : > { %4219 = vmatprep.mubr.bf16.mxu0 %v4501_v36  ;;  %4260 = vmatprep.mubr.bf16.mxu1 %v4501_v36 }
 0x3a4   : > { %v6173_v2 = vpop.f32.mrf.mxu0  ;;  %v6175_v45 = vpop.f32.mrf.mxu1 }
 0x3a5   : > { %6949 = vst [vmem:[#allocation32_spill] sm:$0xff] %v6173_v2  ;;  %6950 = vst [vmem:[#allocation9_spill] sm:$0xff] %v6175_v45 }
 0x3a6   : > { %v6177_v34 = vpop.f32.mrf.mxu0  ;;  %v6179_v41 = vpop.f32.mrf.mxu1 }
 0x3a7   : > { %6951 = vst [vmem:[#allocation11_spill] sm:$0xff] %v6177_v34  ;;  %6952 = vst [vmem:[#allocation14_spill] sm:$0xff] %v6179_v41  ;;  %v3720_v34 = vrot.slane %v3712_v11, %v5226_v4 }
 0x3a8   : > { %v6181_v43 = vpop.f32.mrf.mxu0  ;;  %v6185_v28 = vpop.f32.mrf.mxu1 }
 0x3a9   : > { %6953 = vst [vmem:[#allocation6_spill] sm:$0xff] %v6181_v43  ;;  %6954 = vst [vmem:[#allocation4_spill] sm:$0xff] %v6185_v28  ;;  %v3652_v28 = vpop.permute.xlu1 %3651  ;;  %v3640_v43 = vpop.permute.xlu0 %3639 }
 0x3aa   : > { %v6189_v40 = vpop.f32.mrf.mxu0  ;;  %v6193_v3 = vpop.f32.mrf.mxu1 }
 0x3ab   : > { %6955 = vst [vmem:[#allocation2_spill] sm:$0xff] %v6189_v40  ;;  %6956 = vst [vmem:[#allocation20_spill] sm:$0xff] %v6193_v3  ;;  %v3756_v3 = vrot.slane %v3748_v62, %v5226_v4  ;;  %v3648_v62 = vrot.slane %v3640_v43, %v5226_v4 }
 0x3ac   : > { %v6197_v6 = vpop.f32.mrf.mxu0  ;;  %v6199_v42 = vpop.f32.mrf.mxu1 }
 0x3ad   : > { %6957 = vst [vmem:[#allocation7_spill] sm:$0xff] %v6197_v6  ;;  %6958 = vst [vmem:[#allocation10_spill] sm:$0xff] %v6199_v42  ;;  %v3744_v42 = vrot.slane %v3736_v38, %v5226_v4  ;;  %v3708_v6 = vrot.slane %v3700_v21, %v5226_v4 }
 0x3ae   : > { %v6201_v33 = vpop.f32.mrf.mxu0  ;;  %v6203_v26 = vpop.f32.mrf.mxu1 }
 0x3af   : > { %6959 = vst [vmem:[#allocation8_spill] sm:$0xff] %v6201_v33  ;;  %6960 = vst [vmem:[#allocation15_spill] sm:$0xff] %v6203_v26  ;;  %v3684_v26 = vrot.slane %v3676_v8, %v5226_v4  ;;  %v6312_v8 = vpop.permute.xlu0 %3615 }
 0x3b0   : > { %v6205_v16 = vpop.f32.mrf.mxu0  ;;  %v6209_v54 = vpop.f32.mrf.mxu1 }
 0x3b1   : > { %6961 = vst [vmem:[#allocation5_spill] sm:$0xff] %v6205_v16  ;;  %6962 = vst [vmem:[#allocation21_spill] sm:$0xff] %v6209_v54  ;;  %v3732_v54 = vrot.slane %v3724_v52, %v5226_v4  ;;  %v3696_v16 = vrot.slane %v3688_v57, %v5226_v4 }
 0x3b2   : > { %v6213_v60 = vpop.f32.mrf.mxu0  ;;  %v6217_v20 = vpop.f32.mrf.mxu1 }
 0x3b3   : > { %6963 = vst [vmem:[#allocation17_spill] sm:$0xff] %v6213_v60  ;;  %6964 = vst [vmem:[#allocation13_spill] sm:$0xff] %v6217_v20  ;;  %v3672_v20 = vrot.slane %v3664_v37, %v5226_v4  ;;  %v3660_v60 = vrot.slane %v3652_v28, %v5226_v4  ;;  %v4490_v52 = vcombine.low %v3720_v34, %v3732_v54 }
 0x3b4   : > { %v6221_v15 = vpop.f32.mrf.mxu0  ;;  %v6223_v14 = vpop.f32.mrf.mxu1  ;;  %v3624_v34 = vrot.slane %v6312_v8, %v5226_v4 }
 0x3b5   : > { %6965 = vst [vmem:[#allocation16_spill] sm:$0xff] %v6221_v15  ;;  %6966 = vst [vmem:[#allocation33_spill] sm:$0xff] %v6223_v14  ;;  %v4491_v14 = vcombine.low %v3744_v42, %v3756_v3  ;;  %v6310_v57 = vcombine.low %v3672_v20, %v3684_v26  ;;  %v6314_v28 = vcombine.low %v3648_v62, %v3660_v60 }
 0x3b6   : > { %v6225_v46 = vpop.f32.mrf.mxu0  ;;  %v6227_v13 = vpop.f32.mrf.mxu1 }
 0x3b7   : > { %6967 = vst [vmem:[#allocation36_spill] sm:$0xff] %v6227_v13 }
 0x3b8   : > { %v6229_v56 = vpop.f32.mrf.mxu0  ;;  %v6231_v58 = vpop.f32.mrf.mxu1 }
 0x3b9   : > { %6968 = vst [vmem:[#allocation3_spill] sm:$0xff] %v6229_v56  ;;  %6969 = vst [vmem:[#allocation18_spill] sm:$0xff] %v6231_v58  ;;  %v6308_v56 = vpop.permute.xlu1 %3627 }
 0x3ba   : > { %v6233_v7 = vpop.f32.mrf.mxu0  ;;  %v6235_v9 = vpop.f32.mrf.mxu1  ;;  %v3636_v43 = vrot.slane %v6308_v56, %v5226_v4 }
 0x3bb   : > { %6970 = vst [vmem:[#allocation25_spill] sm:$0xff] %v6235_v9  ;;  %v4489_v9 = vcombine.low %v3696_v16, %v3708_v6 }
 0x3bc   : > { %v6237_v19 = vpop.f32.mrf.mxu0  ;;  %v6239_v27 = vpop.f32.mrf.mxu1 }
 0x3be   : > { %v6241_v32 = vpop.f32.mrf.mxu0  ;;  %v6243_v49 = vpop.f32.mrf.mxu1 }
 0x3c0   : > { %v6245_v30 = vpop.f32.mrf.mxu0  ;;  %v6247_v50 = vpop.f32.mrf.mxu1 }
 0x3c1   : > { %6971 = vst [vmem:[#allocation38_spill] sm:$0xff] %v6247_v50 }
 0x3c2   : > { %v6249_v25 = vpop.f32.mrf.mxu0  ;;  %v6251_v44 = vpop.f32.mrf.mxu1 }
 0x3c4   : > { %v6253_v61 = vpop.f32.mrf.mxu0  ;;  %v6255_v53 = vpop.f32.mrf.mxu1 }
 0x3c6   : > { %v6257_v39 = vpop.f32.mrf.mxu0  ;;  %v6264_v47 = vpop.f32.mrf.mxu1 }
 0x3c8   : > { %v6268_v1 = vpop.f32.mrf.mxu0  ;;  %v6270_v0 = vpop.f32.mrf.mxu1 }
 0x3c9   : > { %v3485_v62 = vpack.c.bf16 %v6268_v1, %v6253_v61 }
 0x3ca   : > { %v6272_v31 = vpop.f32.mrf.mxu0  ;;  %v6274_v63 = vpop.f32.mrf.mxu1 }
 0x3cc   : > { %v6276_v35 = vpop.f32.mrf.mxu0  ;;  %v6278_v5 = vpop.f32.mrf.mxu1 }
 0x3ce   : > { %v6280_v22 = vpop.f32.mrf.mxu0  ;;  %v6282_v17 = vpop.f32.mrf.mxu1 }
 0x3d0   : > { %v6284_v48 = vpop.f32.mrf.mxu0  ;;  %v6286_v51 = vpop.f32.mrf.mxu1 }
 0x3d2   : > { %v6288_v36 = vpop.f32.mrf.mxu0  ;;  %v6290_v12 = vpop.f32.mrf.mxu1 }
 0x3d3   : > { %v3492_v20 = vpack.c.bf16 %v6290_v12, %v6282_v17 }
 0x3d4   : > { %v6292_v10 = vpop.f32.mrf.mxu0  ;;  %v6294_v24 = vpop.f32.mrf.mxu1 }
 0x3d6   : > { %v3179_v29 = vpop.f32.mrf.mxu0  ;;  %v3372_v18 = vpop.f32.mrf.mxu1 }
 0x3d8   : > { %v3181_v55 = vpop.f32.mrf.mxu0  ;;  %v6296_v59 = vpop.f32.mrf.mxu1 }
 0x3d9   : > { %v3493_v6 = vpack.c.bf16 %v3181_v55, %v6292_v10 }
 0x3da   : > { %v3183_v45 = vpop.f32.mrf.mxu0  ;;  %v3376_v2 = vpop.f32.mrf.mxu1 }
 0x3db   : > { %v3494_v11 = vpack.c.bf16 %v3183_v45, %v3179_v29  ;;  %v3496_v37 = vpack.c.bf16 %v3376_v2, %v3372_v18 }
 0x3dc   : > { %v3187_v41 = vpop.f32.mrf.mxu0  ;;  %v3380_v40 = vpop.f32.mrf.mxu1 }
 0x3dd   : > { %v4070_v16 = vadd.bf16 %v4490_v52, %v3494_v11  ;;  %v4072_v18 = vadd.bf16 %v4490_v52, %v3496_v37  ;;  %v3487_v11 = vpack.c.bf16 %v6270_v0, %v6255_v53  ;;  %v3604_v53 = vpop.permute.xlu1 %3603  ;;  %v3484_v0 = vpack.c.bf16 %v6251_v44, %v6243_v49  ;;  %v3592_v49 = vpop.permute.xlu0 %3591  ;;  %v6985_v44 = vld [vmem:[#allocation38_spill] sm:$0xff] }
 0x3de   : > { %v3189_v33 = vpop.f32.mrf.mxu0  ;;  %v3382_v58 = vpop.f32.mrf.mxu1 }
 0x3e0   : > { %v3191_v38 = vpop.f32.mrf.mxu0  ;;  %v3384_v21 = vpop.f32.mrf.mxu1 }
 0x3e1   : > { %v3497_v15 = vpack.c.bf16 %v3191_v38, %v3187_v41  ;;  %v3499_v13 = vpack.c.bf16 %v3384_v21, %v3380_v40  ;;  %v3490_v41 = vpack.c.bf16 %v6288_v36, %v6280_v22  ;;  %v3495_v40 = vpack.c.bf16 %v6296_v59, %v6294_v24 }
 0x3e2   : > { %v3193_v50 = vpop.f32.mrf.mxu0  ;;  %v3386_v45 = vpop.f32.mrf.mxu1  ;;  %v3489_v24 = vpack.c.bf16 %v6284_v48, %v6276_v35  ;;  %v4068_v22 = vadd.bf16 %v4489_v9, %v3492_v20  ;;  %v3482_v36 = vpack.c.bf16 %v6249_v25, %v6241_v32 }
 0x3e3   : > { %v3498_v3 = vpack.c.bf16 %v3193_v50, %v3189_v33  ;;  %v4073_v42 = vadd.bf16 %v4491_v14, %v3497_v15  ;;  %v3500_v26 = vpack.c.bf16 %v3386_v45, %v3382_v58  ;;  %v4075_v29 = vadd.bf16 %v4491_v14, %v3499_v13 }
 0x3e4   : > { %v6323_v2 = vpop.f32.mrf.mxu0  ;;  %v6327_v60 = vpop.f32.mrf.mxu1  ;;  %v3486_v33 = vpack.c.bf16 %v6272_v31, %v6257_v39  ;;  %v3488_v15 = vpack.c.bf16 %v6274_v63, %v6264_v47  ;;  %v3491_v13 = vpack.c.bf16 %v6286_v51, %v6278_v5  ;;  %v4066_v50 = vadd.bf16 %v4489_v9, %v3490_v41 }
 0x3e5   : > { %6973 = vst [vmem:[#allocation12_spill] sm:$0xff] %v6323_v2  ;;  %v4074_v54 = vadd.bf16 %v4491_v14, %v3498_v3  ;;  %6974 = vst [vmem:[#allocation28_spill] sm:$0xff] %v6327_v60  ;;  %v4076_v10 = vadd.bf16 %v4491_v14, %v3500_v26  ;;  %v4069_v39 = vadd.bf16 %v4490_v52, %v3493_v6 }
 0x3e6   : > { %v6333_v55 = vpop.f32.mrf.mxu0  ;;  %v6341_v56 = vpop.f32.mrf.mxu1  ;;  %v4137_v12 = vmax.bf16 %v6764_v23, %v4073_v42  ;;  %v4071_v31 = vadd.bf16 %v4490_v52, %v3495_v40  ;;  %v4139_v47 = vmax.bf16 %v6764_v23, %v4075_v29  ;;  %v4134_v5 = vmax.bf16 %v6764_v23, %v4070_v16 }
 0x3e7   : > { %6975 = vst [vmem:[#allocation23_spill] sm:$0xff] %v6333_v55  ;;  %6976 = vst [vmem:[#allocation22_spill] sm:$0xff] %v6341_v56  ;;  %v4138_v58 = vmax.bf16 %v6764_v23, %v4074_v54  ;;  %v4140_v59 = vmax.bf16 %v6764_v23, %v4076_v10  ;;  %v4136_v51 = vmax.bf16 %v6764_v23, %v4072_v18  ;;  %v6988_v18 = vld [vmem:[#allocation36_spill] sm:$0xff]  ;;  %v6989_v10 = vld [vmem:[#allocation25_spill] sm:$0xff] }
 0x3e8   : > { %v6345_v14 = vpop.f32.mrf.mxu0  ;;  %v6351_v35 = vpop.f32.mrf.mxu1  ;;  %v4065_v21 = vadd.bf16 %v4489_v9, %v3489_v24  ;;  %v4133_v8 = vmax.bf16 %v6764_v23, %v4069_v39  ;;  %v4062_v25 = vadd.bf16 %v6310_v57, %v3486_v33  ;;  %v4067_v61 = vadd.bf16 %v4489_v9, %v3491_v13  ;;  %v6991_v39 = vld [vmem:[#allocation16_spill] sm:$0xff] }
 0x3e9   : > { %6977 = vst [vmem:[#allocation30_spill] sm:$0xff] %v6345_v14  ;;  %6978 = vst [vmem:[#allocation24_spill] sm:$0xff] %v6351_v35  ;;  %4187 = vmatprep.subr.bf16.mxu0 %v4138_v58  ;;  %4228 = vmatprep.subr.bf16.mxu1 %v4140_v59  ;;  %v4135_v1 = vmax.bf16 %v6764_v23, %v4071_v31  ;;  %v4130_v45 = vmax.bf16 %v6764_v23, %v4066_v50 }
 0x3ea   : > { %v6356_v48 = vpop.f32.mrf.mxu0  ;;  %4188 = vmatpush1.bf16.msra.mxu0 %v4137_v12  ;;  %v6365_v52 = vpop.f32.mrf.mxu1  ;;  %4229 = vmatpush1.bf16.msra.mxu1 %v4139_v47  ;;  %v6379_v41 = vcombine.low %v3624_v34, %v3636_v43  ;;  %v4064_v6 = vadd.bf16 %v6310_v57, %v3488_v15  ;;  %v4132_v26 = vmax.bf16 %v6764_v23, %v4068_v22  ;;  %v6992_v12 = vld [vmem:[#allocation3_spill] sm:$0xff]  ;;  %v6995_v22 = vld [vmem:[#allocation18_spill] sm:$0xff] }
 0x3eb   : > { %6979 = vst [vmem:[#allocation37_spill] sm:$0xff] %v6356_v48  ;;  %6980 = vst [vmem:[#allocation27_spill] sm:$0xff] %v6365_v52  ;;  %4189 = vmatprep.subr.bf16.mxu0 %v4134_v5  ;;  %4230 = vmatprep.subr.bf16.mxu1 %v4136_v51  ;;  %v3612_v9 = vrot.slane %v3604_v53, %v5226_v4  ;;  %v3478_v40 = vpack.c.bf16 %v6233_v7, %v6225_v46  ;;  %v6994_v5 = vld [vmem:[#allocation33_spill] sm:$0xff] }
 0x3ec   : > { %v6372_v32 = vpop.f32.mrf.mxu0  ;;  %v6376_v3 = vpop.f32.mrf.mxu1  ;;  %v3481_v43 = vpack.c.bf16 %v6245_v30, %v6237_v19  ;;  %v3483_v16 = vpack.c.bf16 %v6985_v44, %v6239_v27  ;;  %v4058_v29 = vadd.bf16 %v6314_v28, %v3482_v36  ;;  %v4061_v54 = vadd.bf16 %v6310_v57, %v3485_v62 }
 0x3ed   : > { %6981 = vst [vmem:[#allocation35_spill] sm:$0xff] %v6372_v32  ;;  %6982 = vst [vmem:[#allocation31_spill] sm:$0xff] %v6376_v3  ;;  %v4129_v33 = vmax.bf16 %v6764_v23, %v4065_v21  ;;  %v4063_v46 = vadd.bf16 %v6310_v57, %v3487_v11  ;;  %v4131_v7 = vmax.bf16 %v6764_v23, %v4067_v61 }
 0x3ee   : > { %v6384_v42 = vpop.f32.mrf.mxu0  ;;  %4190 = vmatpush1.bf16.msra.mxu0 %v4133_v8  ;;  %v6392_v34 = vpop.f32.mrf.mxu1  ;;  %4231 = vmatpush1.bf16.msra.mxu1 %v4135_v1  ;;  %v4126_v27 = vmax.bf16 %v6764_v23, %v4062_v25  ;;  %v3480_v15 = vpack.c.bf16 %v6989_v10, %v6988_v18  ;;  %v4060_v24 = vadd.bf16 %v6314_v28, %v3484_v0 }
 0x3ef   : > { %6983 = vst [vmem:[#allocation29_spill] sm:$0xff] %v6384_v42  ;;  %6984 = vst [vmem:[#allocation26_spill] sm:$0xff] %v6392_v34  ;;  %4191 = vmatprep.subr.bf16.mxu0 %v4130_v45  ;;  %4232 = vmatprep.subr.bf16.mxu1 %v4132_v26  ;;  %v4128_v57 = vmax.bf16 %v6764_v23, %v4064_v6  ;;  %v3600_v50 = vrot.slane %v3592_v49, %v5226_v4  ;;  %v3580_v8 = vpop.permute.xlu1 %3579  ;;  %v3568_v0 = vpop.permute.xlu0 %3567 }
 0x3f0   : > { %v6399_v20 = vpop.f32.mrf.mxu0  ;;  %v6405_v30 = vpop.f32.mrf.mxu1  ;;  %v3477_v59 = vpack.c.bf16 %v6992_v12, %v6991_v39  ;;  %v3479_v51 = vpack.c.bf16 %v6995_v22, %v6994_v5  ;;  %v4057_v36 = vadd.bf16 %v6314_v28, %v3481_v43  ;;  %v4125_v62 = vmax.bf16 %v6764_v23, %v4061_v54 }
 0x3f1   : > { %6986 = vst [vmem:[#allocation34_spill] sm:$0xff] %v6399_v20  ;;  %6987 = vst [vmem:[#allocation38_spill] sm:$0xff] %v6405_v30  ;;  %v4054_v25 = vadd.bf16 %v6379_v41, %v3478_v40  ;;  %v4059_v61 = vadd.bf16 %v6314_v28, %v3483_v16  ;;  %v4127_v1 = vmax.bf16 %v6764_v23, %v4063_v46  ;;  %v7001_v46 = vld [vmem:[#allocation8_spill] sm:$0xff] }
 0x3f2   : > { %v6413_v58 = vpop.f32.mrf.mxu0  ;;  %4192 = vmatpush1.bf16.msra.mxu0 %v4129_v33  ;;  %v6421_v47 = vpop.f32.mrf.mxu1  ;;  %4233 = vmatpush1.bf16.msra.mxu1 %v4131_v7  ;;  %v4122_v53 = vmax.bf16 %v6764_v23, %v4058_v29  ;;  %v4056_v6 = vadd.bf16 %v6379_v41, %v3480_v15  ;;  %v4124_v43 = vmax.bf16 %v6764_v23, %v4060_v24  ;;  %v7000_v33 = vld [vmem:[#allocation17_spill] sm:$0xff] }
 0x3f3   : > { %6990 = vst [vmem:[#allocation36_spill] sm:$0xff] %v6413_v58  ;;  %6993 = vst [vmem:[#allocation25_spill] sm:$0xff] %v6421_v47  ;;  %4193 = vmatprep.subr.bf16.mxu0 %v4126_v27  ;;  %4234 = vmatprep.subr.bf16.mxu1 %v4128_v57  ;;  %v4485_v49 = vcombine.low %v3600_v50, %v3612_v9  ;;  %v3588_v44 = vrot.slane %v3580_v8, %v5226_v4  ;;  %v7004_v24 = vld [vmem:[#allocation13_spill] sm:$0xff]  ;;  %v7005_v57 = vld [vmem:[#allocation15_spill] sm:$0xff] }
 0x3f4   : > { %v6429_v21 = vpop.f32.mrf.mxu0  ;;  %v6434_v45 = vpop.f32.mrf.mxu1  ;;  %v3576_v40 = vrot.slane %v3568_v0, %v5226_v4  ;;  %v4053_v16 = vadd.bf16 %v6379_v41, %v3477_v59  ;;  %v4121_v29 = vmax.bf16 %v6764_v23, %v4057_v36  ;;  %v7002_v7 = vpack.c.bf16 %v7000_v33, %v7001_v46 }
 0x3f5   : > { %6996 = vst [vmem:[#allocation16_spill] sm:$0xff] %v6429_v21  ;;  %6997 = vst [vmem:[#allocation3_spill] sm:$0xff] %v6434_v45  ;;  %v4055_v9 = vadd.bf16 %v6379_v41, %v3479_v51  ;;  %v4123_v18 = vmax.bf16 %v6764_v23, %v4059_v61  ;;  %v4118_v15 = vmax.bf16 %v6764_v23, %v4054_v25  ;;  %v7008_v41 = vld [vmem:[#allocation5_spill] sm:$0xff]  ;;  %v7009_v51 = vld [vmem:[#allocation7_spill] sm:$0xff] }
 0x3f6   : > { %v6438_v26 = vpop.f32.mrf.mxu0  ;;  %4194 = vmatpush1.bf16.msra.mxu0 %v4125_v62  ;;  %v6443_v28 = vpop.f32.mrf.mxu1  ;;  %4235 = vmatpush1.bf16.msra.mxu1 %v4127_v1  ;;  %v4050_v27 = vadd.bf16 %v4485_v49, %v7002_v7  ;;  %v7006_v50 = vpack.c.bf16 %v7004_v24, %v7005_v57  ;;  %v4120_v59 = vmax.bf16 %v6764_v23, %v4056_v6  ;;  %v7011_v61 = vld [vmem:[#allocation2_spill] sm:$0xff]  ;;  %v7012_v1 = vld [vmem:[#allocation11_spill] sm:$0xff]  ;;  %v7018_v7 = vld [vmem:[#allocation20_spill] sm:$0xff] }
 0x3f7   : > { %6998 = vst [vmem:[#allocation33_spill] sm:$0xff] %v6443_v28  ;;  %4195 = vmatprep.subr.bf16.mxu0 %v4122_v53  ;;  %4236 = vmatprep.subr.bf16.mxu1 %v4124_v43  ;;  %v4484_v5 = vcombine.low %v3576_v40, %v3588_v44  ;;  %v7010_v36 = vpack.c.bf16 %v7008_v41, %v7009_v51  ;;  %v7014_v43 = vld [vmem:[#allocation21_spill] sm:$0xff]  ;;  %v7015_v6 = vld [vmem:[#allocation10_spill] sm:$0xff] }
 0x3f8   : > { %v6447_v54 = vpop.f32.mrf.mxu0  ;;  %v6454_v10 = vpop.f32.mrf.mxu1  ;;  %v4052_v39 = vadd.bf16 %v4485_v49, %v7006_v50  ;;  %v4117_v8 = vmax.bf16 %v6764_v23, %v4053_v16  ;;  %v7013_v53 = vpack.c.bf16 %v7011_v61, %v7012_v1  ;;  %v7016_v44 = vpack.c.bf16 %v7014_v43, %v7015_v6  ;;  %v7025_v61 = vld [vmem:[#allocation9_spill] sm:$0xff] }
 0x3f9   : > { %6999 = vst [vmem:[#allocation18_spill] sm:$0xff] %v6447_v54  ;;  %7003 = vst [vmem:[#allocation17_spill] sm:$0xff] %v6454_v10  ;;  %v4049_v62 = vadd.bf16 %v4485_v49, %v7010_v36  ;;  %v4114_v46 = vmax.bf16 %v6764_v23, %v4050_v27  ;;  %v7024_v36 = vld [vmem:[#allocation4_spill] sm:$0xff] }
 0x3fa   : > { %v6460_v12 = vpop.f32.mrf.mxu0  ;;  %4196 = vmatpush1.bf16.msra.mxu0 %v4121_v29  ;;  %v6463_v22 = vpop.f32.mrf.mxu1  ;;  %4237 = vmatpush1.bf16.msra.mxu1 %v4123_v18  ;;  %v4046_v0 = vadd.bf16 %v4484_v5, %v7013_v53  ;;  %v4051_v40 = vadd.bf16 %v4485_v49, %v7016_v44  ;;  %v4119_v29 = vmax.bf16 %v6764_v23, %v4055_v9  ;;  %v7019_v18 = vld [vmem:[#allocation14_spill] sm:$0xff] }
 0x3fb   : > { %7007 = vst [vmem:[#allocation8_spill] sm:$0xff] %v6463_v22  ;;  %4197 = vmatprep.subr.bf16.mxu0 %v4118_v15  ;;  %4238 = vmatprep.subr.bf16.mxu1 %v4120_v59  ;;  %v7020_v16 = vpack.c.bf16 %v7018_v7, %v7019_v18  ;;  %v4116_v57 = vmax.bf16 %v6764_v23, %v4052_v39  ;;  %v7021_v49 = vld [vmem:[#allocation6_spill] sm:$0xff]  ;;  %v7022_v59 = vld [vmem:[#allocation32_spill] sm:$0xff] }
 0x3fc   : > { %v6469_v25 = vpop.f32.mrf.mxu0  ;;  %v6478_v33 = vpop.f32.mrf.mxu1  ;;  %v7023_v9 = vpack.c.bf16 %v7021_v49, %v7022_v59  ;;  %v4113_v51 = vmax.bf16 %v6764_v23, %v4049_v62  ;;  %v7026_v1 = vpack.c.bf16 %v7024_v36, %v7025_v61  ;;  %v4110_v43 = vmax.bf16 %v6764_v23, %v4046_v0 }
 0x3fd   : > { %7017 = vst [vmem:[#allocation13_spill] sm:$0xff] %v6478_v33  ;;  %v4048_v15 = vadd.bf16 %v4484_v5, %v7020_v16  ;;  %v3940_v16 = vpop.permute.xlu1 %3939 }
 0x3fe   : > { %v6484_v24 = vpop.f32.mrf.mxu0  ;;  %4198 = vmatpush1.bf16.msra.mxu0 %v4117_v8  ;;  %v6487_v50 = vpop.f32.mrf.mxu1  ;;  %4239 = vmatpush1.bf16.msra.mxu1 %v4119_v29  ;;  %v4045_v41 = vadd.bf16 %v4484_v5, %v7023_v9  ;;  %v4047_v53 = vadd.bf16 %v4484_v5, %v7026_v1  ;;  %v4115_v8 = vmax.bf16 %v6764_v23, %v4051_v40 }
 0x3ff   : > { %4199 = vmatprep.subr.bf16.mxu0 %v4114_v46  ;;  %4240 = vmatprep.subr.bf16.mxu1 %v4116_v57  ;;  %v4112_v44 = vmax.bf16 %v6764_v23, %v4048_v15  ;;  %v3928_v57 = vpop.permute.xlu0 %3927  ;;  %v3948_v56 = vrot.slane %v3940_v16, %v5226_v4 }
 0x400   : > { %v6493_v27 = vpop.f32.mrf.mxu0  ;;  %v6499_v39 = vpop.f32.mrf.mxu1  ;;  %v4109_v62 = vmax.bf16 %v6764_v23, %v4045_v41  ;;  %v4111_v5 = vmax.bf16 %v6764_v23, %v4047_v53  ;;  %v3936_v52 = vrot.slane %v3928_v57, %v5226_v4 }
 0x401   : > { %7027 = vst [vmem:[#allocation15_spill] sm:$0xff] %v6499_v39  ;;  %v3916_v36 = vpop.permute.xlu1 %3915 }
 0x402   : > { %v6502_v6 = vpop.f32.mrf.mxu0  ;;  %4200 = vmatpush1.bf16.msra.mxu0 %v4113_v51  ;;  %v6505_v29 = vpop.f32.mrf.mxu1  ;;  %4241 = vmatpush1.bf16.msra.mxu1 %v4115_v8  ;;  %v3924_v3 = vrot.slane %v3916_v36, %v5226_v4  ;;  %v4499_v45 = vcombine.low %v3936_v52, %v3948_v56 }
 0x403   : > { %4201 = vmatprep.subr.bf16.mxu0 %v4110_v43  ;;  %4242 = vmatprep.subr.bf16.mxu1 %v4112_v44  ;;  %v3904_v1 = vpop.permute.xlu0 %3903 }
 0x404   : > { %v6508_v46 = vpop.f32.mrf.mxu0  ;;  %v6511_v40 = vpop.f32.mrf.mxu1  ;;  %v3912_v30 = vrot.slane %v3904_v1, %v5226_v4 }
 0x406   : > { %v6513_v7 = vpop.f32.mrf.mxu0  ;;  %4202 = vmatpush1.bf16.msra.mxu0 %v4109_v62  ;;  %v6515_v0 = vpop.f32.mrf.mxu1  ;;  %4243 = vmatpush1.bf16.msra.mxu1 %v4111_v5  ;;  %v4498_v54 = vcombine.low %v3912_v30, %v3924_v3 }
 0x407   : > { %v3892_v5 = vpop.permute.xlu1 %3891  ;;  %v3880_v63 = vpop.permute.xlu0 %3879 }
 0x408   : > { %v6517_v18 = vpop.f32.mrf.mxu0  ;;  %v6519_v15 = vpop.f32.mrf.mxu1  ;;  %v3900_v48 = vrot.slane %v3892_v5, %v5226_v4  ;;  %v3888_v32 = vrot.slane %v3880_v63, %v5226_v4 }
 0x40a   : > { %v6521_v49 = vpop.f32.mrf.mxu0  ;;  %v6523_v59 = vpop.f32.mrf.mxu1  ;;  %v4497_v36 = vcombine.low %v3888_v32, %v3900_v48 }
 0x40b   : > { %v3868_v31 = vpop.permute.xlu1 %3867  ;;  %v3856_v35 = vpop.permute.xlu0 %3855 }
 0x40c   : > { %v6525_v9 = vpop.f32.mrf.mxu0  ;;  %v6527_v41 = vpop.f32.mrf.mxu1  ;;  %v3876_v1 = vrot.slane %v3868_v31, %v5226_v4  ;;  %v3864_v28 = vrot.slane %v3856_v35, %v5226_v4  ;;  %v3518_v35 = vpack.c.bf16 %v6521_v49, %v6513_v7  ;;  %v3519_v7 = vpack.c.bf16 %v6519_v15, %v6511_v40 }
 0x40e   : > { %v6529_v51 = vpop.f32.mrf.mxu0  ;;  %v6531_v61 = vpop.f32.mrf.mxu1 }
 0x40f   : > { %v3844_v47 = vpop.permute.xlu1 %3843  ;;  %v3832_v16 = vpop.permute.xlu0 %3831 }
 0x410   : > { %v6533_v53 = vpop.f32.mrf.mxu0  ;;  %v6535_v8 = vpop.f32.mrf.mxu1 }
 0x412   : > { %v6537_v43 = vpop.f32.mrf.mxu0  ;;  %v6539_v44 = vpop.f32.mrf.mxu1 }
 0x413   : > { %v3522_v63 = vpack.c.bf16 %v6537_v43, %v6529_v51  ;;  %v7028_v43 = vld [vmem:[#allocation13_spill] sm:$0xff] }
 0x414   : > { %v3257_v62 = vpop.f32.mrf.mxu0  ;;  %v3450_v17 = vpop.f32.mrf.mxu1 }
 0x415   : > { %v4098_v31 = vadd.bf16 %v4497_v36, %v3522_v63 }
 0x416   : > { %v3259_v37 = vpop.f32.mrf.mxu0  ;;  %v3452_v13 = vpop.f32.mrf.mxu1 }
 0x418   : > { %v3261_v38 = vpop.f32.mrf.mxu0  ;;  %v3454_v19 = vpop.f32.mrf.mxu1 }
 0x419   : > { %v3525_v33 = vpack.c.bf16 %v3261_v38, %v3257_v62  ;;  %v3521_v38 = vpack.c.bf16 %v6533_v53, %v6525_v9  ;;  %v3510_v53 = vpack.c.bf16 %v6460_v12, %v6438_v26  ;;  %v7031_v26 = vld [vmem:[#allocation8_spill] sm:$0xff] }
 0x41a   : > { %v3263_v11 = vpop.f32.mrf.mxu0  ;;  %v3456_v60 = vpop.f32.mrf.mxu1 }
 0x41b   : > { %v3526_v42 = vpack.c.bf16 %v3263_v11, %v3259_v37  ;;  %v3528_v21 = vpack.c.bf16 %v3456_v60, %v3452_v13  ;;  %v3852_v60 = vrot.slane %v3844_v47, %v5226_v4  ;;  %v4101_v30 = vadd.bf16 %v4498_v54, %v3525_v33 }
 0x41c   : > { %v3267_v2 = vpop.f32.mrf.mxu0  ;;  %v3460_v14 = vpop.f32.mrf.mxu1  ;;  %v4496_v33 = vcombine.low %v3864_v28, %v3876_v1  ;;  %v4097_v49 = vadd.bf16 %v4497_v36, %v3521_v38  ;;  %v4162_v28 = vmax.bf16 %v6764_v23, %v4098_v31 }
 0x41d   : > { %v4102_v56 = vadd.bf16 %v4498_v54, %v3526_v42  ;;  %v4104_v48 = vadd.bf16 %v4498_v54, %v3528_v21  ;;  %v3820_v42 = vpop.permute.xlu1 %3819 }
 0x41e   : > { %v3269_v55 = vpop.f32.mrf.mxu0  ;;  %v3462_v20 = vpop.f32.mrf.mxu1 }
 0x41f   : > { %v4166_v21 = vmax.bf16 %v6764_v23, %v4102_v56 }
 0x420   : > { %v3271_v34 = vpop.f32.mrf.mxu0  ;;  %v3464_v10 = vpop.f32.mrf.mxu1 }
 0x421   : > { %v3529_v58 = vpack.c.bf16 %v3271_v34, %v3267_v2  ;;  %v3531_v57 = vpack.c.bf16 %v3464_v10, %v3460_v14  ;;  %v3527_v34 = vpack.c.bf16 %v3454_v19, %v3450_v17  ;;  %v3524_v14 = vpack.c.bf16 %v6539_v44, %v6531_v61  ;;  %v7029_v44 = vld [vmem:[#allocation15_spill] sm:$0xff] }
 0x422   : > { %v3273_v22 = vpop.f32.mrf.mxu0  ;;  %v3466_v39 = vpop.f32.mrf.mxu1  ;;  %v3523_v19 = vpack.c.bf16 %v6535_v8, %v6527_v41  ;;  %v3516_v61 = vpack.c.bf16 %v6505_v29, %v6487_v50  ;;  %v3513_v8 = vpack.c.bf16 %v6493_v27, %v6469_v25  ;;  %v3515_v62 = vpack.c.bf16 %v7029_v44, %v7028_v43 }
 0x423   : > { %v3530_v5 = vpack.c.bf16 %v3273_v22, %v3269_v55  ;;  %v4105_v37 = vadd.bf16 %v4499_v45, %v3529_v58  ;;  %v3532_v2 = vpack.c.bf16 %v3466_v39, %v3462_v20  ;;  %v4107_v52 = vadd.bf16 %v4499_v45, %v3531_v57  ;;  %v3808_v20 = vpop.permute.xlu0 %3807 }
 0x424   : > { %v3840_v55 = vrot.slane %v3832_v16, %v5226_v4  ;;  %v4103_v47 = vadd.bf16 %v4498_v54, %v3527_v34  ;;  %v4100_v10 = vadd.bf16 %v4497_v36, %v3524_v14  ;;  %v4168_v22 = vmax.bf16 %v6764_v23, %v4104_v48  ;;  %v7034_v14 = vld [vmem:[#allocation3_spill] sm:$0xff]  ;;  %v7035_v48 = vld [vmem:[#allocation17_spill] sm:$0xff] }
 0x425   : > { %v4106_v3 = vadd.bf16 %v4499_v45, %v3530_v5  ;;  %v4108_v32 = vadd.bf16 %v4499_v45, %v3532_v2  ;;  %v4169_v13 = vmax.bf16 %v6764_v23, %v4105_v37  ;;  %v4171_v11 = vmax.bf16 %v6764_v23, %v4107_v52  ;;  %v7030_v5 = vld [vmem:[#allocation33_spill] sm:$0xff]  ;;  %v7032_v52 = vld [vmem:[#allocation16_spill] sm:$0xff] }
 0x426   : > { %v3520_v45 = vpack.c.bf16 %v6523_v59, %v6515_v0  ;;  %v3514_v39 = vpack.c.bf16 %v6502_v6, %v6484_v24  ;;  %v3517_v54 = vpack.c.bf16 %v6517_v18, %v6508_v46  ;;  %v4165_v0 = vmax.bf16 %v6764_v23, %v4101_v30  ;;  %v3796_v24 = vpop.permute.xlu1 %3795 }
 0x427   : > { %v4170_v17 = vmax.bf16 %v6764_v23, %v4106_v3  ;;  %v4172_v58 = vmax.bf16 %v6764_v23, %v4108_v32  ;;  %v4094_v59 = vadd.bf16 %v4496_v33, %v3518_v35  ;;  %v4099_v9 = vadd.bf16 %v4497_v36, %v3523_v19  ;;  %v3784_v6 = vpop.permute.xlu0 %3783  ;;  %v7033_v3 = vld [vmem:[#allocation18_spill] sm:$0xff] }
 0x428   : > { %v4167_v41 = vmax.bf16 %v6764_v23, %v4103_v47  ;;  %v4495_v51 = vcombine.low %v3840_v55, %v3852_v60  ;;  %v4096_v46 = vadd.bf16 %v4496_v33, %v3520_v45  ;;  %v4164_v40 = vmax.bf16 %v6764_v23, %v4100_v10  ;;  %v7037_v45 = vld [vmem:[#allocation29_spill] sm:$0xff] }
 0x429   : > { %4203 = vmatprep.subr.bf16.mxu0 %v4170_v17  ;;  %4244 = vmatprep.subr.bf16.mxu1 %v4172_v58  ;;  %v3828_v18 = vrot.slane %v3820_v42, %v5226_v4  ;;  %v3816_v15 = vrot.slane %v3808_v20, %v5226_v4  ;;  %v4093_v50 = vadd.bf16 %v4496_v33, %v3517_v54 }
 0x42a   : > { %4204 = vmatpush2.bf16.msra.mxu0 %v4169_v13  ;;  %4245 = vmatpush2.bf16.msra.mxu1 %v4171_v11  ;;  %v4161_v29 = vmax.bf16 %v6764_v23, %v4097_v49  ;;  %v4090_v16 = vadd.bf16 %v4495_v51, %v3514_v39  ;;  %v4095_v57 = vadd.bf16 %v4496_v33, %v3519_v7  ;;  %v3772_v34 = vpop.permute.xlu1 %3771  ;;  %v7039_v7 = vld [vmem:[#allocation25_spill] sm:$0xff]  ;;  %v7040_v49 = vld [vmem:[#allocation26_spill] sm:$0xff] }
 0x42b   : > { %4205 = vmatprep.subr.bf16.mxu0 %v4166_v21  ;;  %4246 = vmatprep.subr.bf16.mxu1 %v4168_v22  ;;  %v4163_v36 = vmax.bf16 %v6764_v23, %v4099_v9  ;;  %v4158_v1 = vmax.bf16 %v6764_v23, %v4094_v59  ;;  %v3512_v12 = vpack.c.bf16 %v7031_v26, %v7030_v5  ;;  %v3760_v56 = vpop.permute.xlu0 %3759  ;;  %v7036_v21 = vld [vmem:[#allocation36_spill] sm:$0xff] }
 0x42c   : > { %v4092_v63 = vadd.bf16 %v4495_v51, %v3516_v61  ;;  %v4160_v25 = vmax.bf16 %v6764_v23, %v4096_v46  ;;  %v4494_v27 = vcombine.low %v3816_v15, %v3828_v18  ;;  %v3804_v37 = vrot.slane %v3796_v24, %v5226_v4  ;;  %v7045_v61 = vld [vmem:[#allocation37_spill] sm:$0xff]  ;;  %v7046_v46 = vld [vmem:[#allocation23_spill] sm:$0xff]  ;;  %v7048_v15 = vld [vmem:[#allocation38_spill] sm:$0xff] }
 0x42d   : > { %v3792_v2 = vrot.slane %v3784_v6, %v5226_v4  ;;  %v3509_v60 = vpack.c.bf16 %v7033_v3, %v7032_v52  ;;  %v3511_v32 = vpack.c.bf16 %v7035_v48, %v7034_v14  ;;  %v4089_v55 = vadd.bf16 %v4495_v51, %v3513_v8  ;;  %v7055_v5 = vld [vmem:[#allocation12_spill] sm:$0xff]  ;;  %v7060_v14 = vld [vmem:[#allocation19_spill] sm:$0xff] }
 0x42e   : > { %4206 = vmatpush2.bf16.msra.mxu0 %v4165_v0  ;;  %4247 = vmatpush2.bf16.msra.mxu1 %v4167_v41  ;;  %v4157_v35 = vmax.bf16 %v6764_v23, %v4093_v50  ;;  %v4086_v38 = vadd.bf16 %v4494_v27, %v3510_v53  ;;  %v4091_v17 = vadd.bf16 %v4495_v51, %v3515_v62  ;;  %v7042_v41 = vld [vmem:[#allocation34_spill] sm:$0xff]  ;;  %v7049_v53 = vld [vmem:[#allocation31_spill] sm:$0xff] }
 0x42f   : > { %4207 = vmatprep.subr.bf16.mxu0 %v4162_v28  ;;  %4248 = vmatprep.subr.bf16.mxu1 %v4164_v40  ;;  %v4159_v42 = vmax.bf16 %v6764_v23, %v4095_v57  ;;  %v4154_v20 = vmax.bf16 %v6764_v23, %v4090_v16  ;;  %v4088_v19 = vadd.bf16 %v4494_v27, %v3512_v12  ;;  %v7043_v28 = vld [vmem:[#allocation35_spill] sm:$0xff] }
 0x430   : > { %v4156_v30 = vmax.bf16 %v6764_v23, %v4092_v63  ;;  %v4493_v13 = vcombine.low %v3792_v2, %v3804_v37  ;;  %v3780_v58 = vrot.slane %v3772_v34, %v5226_v4  ;;  %v3768_v31 = vrot.slane %v3760_v56, %v5226_v4  ;;  %v7051_v50 = vld [vmem:[#allocation27_spill] sm:$0xff] }
 0x431   : > { %v4085_v47 = vadd.bf16 %v4494_v27, %v3509_v60  ;;  %v4153_v11 = vmax.bf16 %v6764_v23, %v4089_v55  ;;  %v7038_v10 = vpack.c.bf16 %v7036_v21, %v7037_v45  ;;  %v4087_v33 = vadd.bf16 %v4494_v27, %v3511_v32  ;;  %v7058_v27 = vld [vmem:[#allocation28_spill] sm:$0xff]  ;;  %v4178_v32 = vpop.permute.xlu0 %4177 }
 0x432   : > { %4208 = vmatpush2.bf16.msra.mxu0 %v4161_v29  ;;  %4249 = vmatpush2.bf16.msra.mxu1 %v4163_v36  ;;  %v4155_v39 = vmax.bf16 %v6764_v23, %v4091_v17  ;;  %v4150_v54 = vmax.bf16 %v6764_v23, %v4086_v38  ;;  %v7041_v0 = vpack.c.bf16 %v7039_v7, %v7040_v49  ;;  %v7052_v29 = vld [vmem:[#allocation22_spill] sm:$0xff] }
 0x433   : > { %4209 = vmatprep.subr.bf16.mxu0 %v4158_v1  ;;  %4250 = vmatprep.subr.bf16.mxu1 %v4160_v25  ;;  %v4082_v22 = vadd.bf16 %v4493_v13, %v7038_v10  ;;  %v4152_v4 = vmax.bf16 %v6764_v23, %v4088_v19  ;;  %v4492_v9 = vcombine.low %v3768_v31, %v3780_v58  ;;  %v7054_v1 = vld [vmem:[#allocation30_spill] sm:$0xff]  ;;  %v7057_v25 = vld [vmem:[#allocation24_spill] sm:$0xff] }
 0x434   : > { %v4084_v59 = vadd.bf16 %v4493_v13, %v7041_v0  ;;  %v7044_v51 = vpack.c.bf16 %v7042_v41, %v7043_v28  ;;  %v4149_v6 = vmax.bf16 %v6764_v23, %v4085_v47  ;;  %v7047_v40 = vpack.c.bf16 %v7045_v61, %v7046_v46 }
 0x435   : > { %v7050_v8 = vpack.c.bf16 %v7048_v15, %v7049_v53  ;;  %v4151_v44 = vmax.bf16 %v6764_v23, %v4087_v33  ;;  %v4146_v62 = vmax.bf16 %v6764_v23, %v4082_v22  ;;  %v7053_v16 = vpack.c.bf16 %v7051_v50, %v7052_v29 }
 0x436   : > { %4210 = vmatpush2.bf16.msra.mxu0 %v4157_v35  ;;  %4251 = vmatpush2.bf16.msra.mxu1 %v4159_v42  ;;  %v4081_v24 = vadd.bf16 %v4493_v13, %v7044_v51  ;;  %v4078_v18 = vadd.bf16 %v4492_v9, %v7047_v40  ;;  %v4148_v36 = vmax.bf16 %v6764_v23, %v4084_v59 }
 0x437   : > { %4211 = vmatprep.subr.bf16.mxu0 %v4154_v20  ;;  %4252 = vmatprep.subr.bf16.mxu1 %v4156_v30  ;;  %v4083_v43 = vadd.bf16 %v4493_v13, %v7050_v8  ;;  %v4080_v57 = vadd.bf16 %v4492_v9, %v7053_v16  ;;  %v7056_v26 = vpack.c.bf16 %v7054_v1, %v7055_v5 }
 0x438   : > { %v4145_v63 = vmax.bf16 %v6764_v23, %v4081_v24  ;;  %v7059_v37 = vpack.c.bf16 %v7057_v25, %v7058_v27  ;;  %v4142_v56 = vmax.bf16 %v6764_v23, %v4078_v18  ;;  %v4500_v48 = vcombine.low %v7060_v14, %v7060_v14 }
 0x439   : > { %v4077_v12 = vadd.bf16 %v4492_v9, %v7056_v26  ;;  %v4147_v34 = vmax.bf16 %v6764_v23, %v4083_v43  ;;  %v4144_v52 = vmax.bf16 %v6764_v23, %v4080_v57 }
 0x43a   : > { %4212 = vmatpush2.bf16.msra.mxu0 %v4153_v11  ;;  %4253 = vmatpush2.bf16.msra.mxu1 %v4155_v39  ;;  %v4079_v2 = vadd.bf16 %v4492_v9, %v7059_v37 }
 0x43b   : > { %4213 = vmatprep.subr.bf16.mxu0 %v4150_v54  ;;  %4254 = vmatprep.subr.bf16.mxu1 %v4152_v4  ;;  %v4141_v3 = vmax.bf16 %v6764_v23, %v4077_v12 }
 0x43c   : > { %v4143_v60 = vmax.bf16 %v6764_v23, %v4079_v2 }
 0x43e   : > { %4214 = vmatpush2.bf16.msra.mxu0 %v4149_v6  ;;  %4255 = vmatpush2.bf16.msra.mxu1 %v4151_v44 }
 0x43f   : > { %4215 = vmatprep.subr.bf16.mxu0 %v4146_v62  ;;  %4256 = vmatprep.subr.bf16.mxu1 %v4148_v36 }
 0x442   : > { %4216 = vmatpush2.bf16.msra.mxu0 %v4145_v63  ;;  %4257 = vmatpush2.bf16.msra.mxu1 %v4147_v34 }
 0x443   : > { %4217 = vmatprep.subr.bf16.mxu0 %v4142_v56  ;;  %4258 = vmatprep.subr.bf16.mxu1 %v4144_v52 }
 0x446   : > { %4218 = vmatpush2.bf16.msra.mxu0 %v4141_v3  ;;  %4259 = vmatpush2.bf16.msra.mxu1 %v4143_v60 }
 0x449   : > { %4220 = vmatmul.mubr.bf16.vlgmr.msra.gmra.mxu0 %v4500_v48  ;;  %4261 = vmatmul.mubr.bf16.vlgmr.msra.gmra.mxu1 %v4500_v48 }
 0x509   : > { %v4221_v55 = vpop.f32.mrf.mxu0  ;;  %v4262_v38 = vpop.f32.mrf.mxu1 }
 0x50a   : > { %v4222_v35 = vadd.f32 %v4221_v55, %v4178_v32  ;;  %v4263_v20 = vadd.f32 %v4262_v38, %v4178_v32 }
 0x50b   : > { %v4223_v17 = vpop.f32.mrf.mxu0  ;;  %v4264_v23 = vpop.f32.mrf.mxu1 }
 0x50c   : > { %4269 = vst [vmem:[%s334_s12] sm:$0xff] %v4222_v35  ;;  %v4224_v42 = vadd.f32 %v4223_v17, %v4178_v32  ;;  %v4265_v30 = vadd.f32 %v4264_v23, %v4178_v32  ;;  %4271 = vst [vmem:[%s334_s12 + $0x10] sm:$0xff] %v4263_v20 }
 0x50d   : > { %v4225_v19 = vpop.f32.mrf.mxu0  ;;  %v4266_v13 = vpop.f32.mrf.mxu1 }
 0x50e   : > { %4270 = vst [vmem:[%s334_s12 + $0x8] sm:$0xff] %v4224_v42  ;;  %4272 = vst [vmem:[%s334_s12 + $0x18] sm:$0xff] %v4265_v30 }
 0x50f   : > { %v4226_v58 = vpop.f32.mrf.mxu0  ;;  %v4267_v31 = vpop.f32.mrf.mxu1 }
 0x510 PF: > { %s19_s30 = sadd.s32 1, %s4636_s30  }
 0x511   : > { %p16_p4 = scmp.ge.s32.totalorder %s19_s30, 4  }
 0x513   :  { %18 = sbr.rel (!%p16_p4) target bundleno = 1 (0x1), region = 86 }

</bundles_post_ra>
